<compile_context>
chip_gen: v6e
topology: v6e:2x2x1
jax: 0.10.0
libtpu: 0.0.40
codegen_flags: <defaults>
</compile_context>

<pallas_src>
import math
from functools import partial

import jax
import jax.numpy as jnp
from jax.experimental import pallas as pl
from jax.experimental.pallas import tpu as pltpu

# Stay below v7x's 64 MiB physical VMEM per TensorCore (v5e/v6e have 128 MiB).
_VMEM_LIMIT = 48 * 1024 * 1024


# ----------------------------- small helpers -----------------------------

def _silu(x):
    return x * jax.nn.sigmoid(x)


def _softplus(x):
    # matches torch.nn.functional.softplus (beta=1, threshold=20); log1p for accuracy
    return jnp.where(x > 20.0, x, jnp.log1p(jnp.exp(jnp.minimum(x, 20.0))))


def _pick_tile(dim, target, align):
    """Largest divisor of `dim` that is <= target and a multiple of `align`.
    Falls back to the full dim (block == full array dim is always legal)."""
    for cand in range(min(target, dim), 0, -1):
        if dim % cand == 0 and cand % align == 0:
            return cand
    return dim


# ------------------- fused Add + LayerNorm + Mamba mixer -------------------

def _mamba_block_kernel(
    h_ref, r_ref, lng_ref, lnb_ref,
    wixz_ref, convw_ref, convb_ref,
    wxall_ref, wdt_ref, dtb_ref,
    negA_ref, dD_ref, wo_ref,
    out_ref, resout_ref, state_ref,
    xbuf, delta_s, u_s, bc_s, y_s, z_s, st_s,
    *, d_conv, d_inner, d_state, t_sub, pad, eps,
):
    ci = pl.program_id(1)                       # sequence-chunk index
    Lc = h_ref.shape[1]
    N = d_state

    # ---- fused residual add + LayerNorm (prenorm), f32 statistics ----
    res = h_ref[0].astype(jnp.float32) + r_ref[0]               # (Lc, D) f32
    resout_ref[0] = res
    mean = jnp.mean(res, axis=-1, keepdims=True)
    cent = res - mean
    var = jnp.mean(cent * cent, axis=-1, keepdims=True)
    hs = cent * jax.lax.rsqrt(var + eps) * lng_ref[...] + lnb_ref[...]

    # ---- fused in_proj (x | z): one lane-dense bf16 MXU matmul ----
    xz = jnp.dot(hs.astype(jnp.bfloat16), wixz_ref[...],
                 preferred_element_type=jnp.float32)            # (Lc, 2*d_inner) f32
    x = xz[:, :d_inner]
    z_s[...] = xz[:, d_inner:].astype(z_s.dtype)                # keep z live in bf16 only

    # ---- per-(batch, chunk-0) init: SSM state and conv left-padding ----
    @pl.when(ci == 0)
    def _():
        state_ref[...] = jnp.zeros_like(state_ref)

    if d_conv > 1:
        @pl.when(ci == 0)
        def _():
            xbuf[0:pad, :] = jnp.zeros((pad, d_inner), jnp.float32)

        @pl.when(ci > 0)
        def _():
            # carry the last `pad` pre-conv rows of the previous chunk (aligned copy)
            xbuf[0:pad, :] = xbuf[Lc:Lc + pad, :]

    # ---- depthwise causal conv1d: d_conv shifted VPU multiply-adds ----
    # Tap d_conv-1 is un-shifted -> use the in-register value (no scratch read).
    # TODO(synk): the remaining d_conv-1 shifted reads are sublane-unaligned; a
    # pltpu.roll of the full buffer would move that shuffle work onto the XLU.
    acc = convw_ref[d_conv - 1:d_conv, :] * x
    if d_conv > 1:
        xbuf[pad:pad + Lc, :] = x
        for k in range(d_conv - 1):
            start = pad - (d_conv - 1) + k
            acc = acc + convw_ref[k:k + 1, :] * xbuf[start:start + Lc, :]
    x_act = _silu(acc + convb_ref[...])                         # (Lc, d_inner) f32

    # ---- fused x_proj (B | C | dt) in one matmul, then dt_proj ----
    xdbl = jnp.dot(x_act.astype(jnp.bfloat16), wxall_ref[...],
                   preferred_element_type=jnp.float32)          # (Lc, 2N + R)
    bc_s[...] = xdbl[:, :2 * N]                                 # B|C extract starts at lane 0
    dt_lin = jnp.dot(xdbl[:, 2 * N:].astype(jnp.bfloat16), wdt_ref[...],
                     preferred_element_type=jnp.float32)        # (Lc, d_inner)
    delta_s[...] = _softplus(dt_lin + dtb_ref[...])             # f32
    u_s[...] = x_act

    # ---- chunked selective scan (sub-chunks of t_sub timesteps) ----
    negA = negA_ref[...]                                        # (N, d_inner) f32
    n_sub = Lc // t_sub

    # loop-invariant block-diagonal selection masks
    row_b = jax.lax.broadcasted_iota(jnp.int32, (t_sub * N, t_sub), 0)
    col_b = jax.lax.broadcasted_iota(jnp.int32, (t_sub * N, t_sub), 1)
    mask_b = (row_b >= col_b * N) & (row_b < (col_b + 1) * N)
    row_c = jax.lax.broadcasted_iota(jnp.int32, (t_sub, t_sub * N), 0)
    col_c = jax.lax.broadcasted_iota(jnp.int32, (t_sub, t_sub * N), 1)
    mask_c = (col_c >= row_c * N) & (col_c < (row_c + 1) * N)

    def sub_body(s, state):                                     # state: (N, d_inner) f32
        off = pl.multiple_of(s * t_sub, t_sub)
        d_c = delta_s[pl.ds(off, t_sub), :]                     # (T, d_inner)
        u_c = u_s[pl.ds(off, t_sub), :]
        bc = bc_s[pl.ds(off, t_sub), :]                         # (T, 2N)
        b_c = bc[:, :N]
        c_c = bc[:, N:]
        w_c = (d_c * u_c).astype(jnp.bfloat16)                  # delta * u

        # bulk decay factors: ONE EUP push per sub-chunk, off the serial path
        dA3 = jnp.exp(d_c[:, None, :] * negA[None, :, :])       # (T, N, d_inner) f32

        # all T input outer-products as ONE block-structured bf16 MXU matmul:
        # sel_b[t*N + n, t] = B[t, n]  =>  (sel_b @ w_c)[t*N + n, :] = B[t, n]*(delta*u)[t, :]
        sel_b = jnp.where(mask_b, jnp.tile(b_c.T, (t_sub, 1)), 0.0).astype(jnp.bfloat16)
        dBu = jnp.dot(sel_b, w_c, preferred_element_type=jnp.float32)  # (T*N, d_inner)

        # serial critical path: one VPU multiply-add on (N, d_inner) per timestep,
        # state carried in vregs (f32), single bf16 store per step.
        for t in range(t_sub):
            state = dA3[t] * state + dBu[t * N:(t + 1) * N, :]
            st_s[t * N:(t + 1) * N, :] = state.astype(st_s.dtype)

        # y for the whole sub-chunk: ONE dense bf16 MXU matmul (T, T*N) @ (T*N, d_inner)
        c_blk = jnp.where(mask_c, jnp.tile(c_c, (1, t_sub)), 0.0).astype(jnp.bfloat16)
        y_c = jnp.dot(c_blk, st_s[...], preferred_element_type=jnp.float32)
        y_s[pl.ds(off, t_sub), :] = y_c.astype(y_s.dtype)
        return state

    last_state = jax.lax.fori_loop(0, n_sub, sub_body, state_ref[0])
    state_ref[0] = last_state                                   # carried across chunks

    # ---- D skip, SiLU(z) gating, out_proj ----
    y = y_s[...].astype(jnp.float32) + u_s[...] * dD_ref[...]
    y = y * _silu(z_s[...].astype(jnp.float32))
    out_ref[0] = jnp.dot(y.astype(jnp.bfloat16), wo_ref[...],
                         preferred_element_type=jnp.float32).astype(out_ref.dtype)


def mamba_block(hidden, residual, lp, *, eps):
    """Fused (hidden + residual) -> LayerNorm -> Mamba mixer for one layer."""
    B, L, D = hidden.shape
    d_inner = lp["wo"].shape[0]
    N = lp["negA"].shape[0]
    R = lp["w_dt"].shape[0]
    d_conv = lp["conv_w"].shape[0]

    Lc = _pick_tile(L, 256, 8)                 # sequence chunk resident in VMEM
    n_chunks = L // Lc
    if Lc % 16 == 0:
        t_sub = 16                             # K = t_sub*N = 256 fills the v6e/v7x MXU
    elif Lc % 8 == 0:
        t_sub = 8
    else:
        t_sub = math.gcd(Lc, 8)                # degenerate (only for tiny/odd L)
    pad = (((d_conv - 1) + 7) // 8) * 8 if d_conv > 1 else 0

    def w_spec(shape):
        nd = len(shape)
        return pl.BlockSpec(shape, lambda b, c: (0,) * nd)

    # TODO(synk): constant-index weight blocks could be single-buffered
    # (pipeline_mode=pl.Buffered(1)) to free VMEM on v7x.
    grid_spec = pltpu.PrefetchScalarGridSpec(
        num_scalar_prefetch=0,
        grid=(B, n_chunks),
        in_specs=[
            pl.BlockSpec((1, Lc, D), lambda b, c: (b, c, 0)),    # hidden (bf16)
            pl.BlockSpec((1, Lc, D), lambda b, c: (b, c, 0)),    # residual in (f32)
            w_spec((1, D)), w_spec((1, D)),                      # LN gamma / beta
            w_spec((D, 2 * d_inner)),                            # in_proj (x|z), bf16
            w_spec((d_conv, d_inner)), w_spec((1, d_inner)),     # conv w / b
            w_spec((d_inner, 2 * N + R)),                        # x_proj (B|C|dt), bf16
            w_spec((R, d_inner)), w_spec((1, d_inner)),          # dt_proj w (bf16) / bias
            w_spec((N, d_inner)), w_spec((1, d_inner)),          # -exp(A_log), D skip
            w_spec((d_inner, D)),                                # out_proj, bf16
        ],
        out_specs=[
            pl.BlockSpec((1, Lc, D), lambda b, c: (b, c, 0)),        # mixer output (bf16)
            pl.BlockSpec((1, Lc, D), lambda b, c: (b, c, 0)),        # residual output (f32)
            pl.BlockSpec((1, N, d_inner), lambda b, c: (b, 0, 0)),   # last SSM state (carried)
        ],
        scratch_shapes=[
            pltpu.VMEM((pad + Lc, d_inner), jnp.float32),        # conv buffer (carried tail)
            pltpu.VMEM((Lc, d_inner), jnp.float32),              # delta
            pltpu.VMEM((Lc, d_inner), jnp.float32),              # u = conv+silu
            pltpu.VMEM((Lc, 2 * N), jnp.float32),                # B | C
            pltpu.VMEM((Lc, d_inner), jnp.bfloat16),             # y
            pltpu.VMEM((Lc, d_inner), jnp.bfloat16),             # z gate
            pltpu.VMEM((t_sub * N, d_inner), jnp.bfloat16),      # per-sub-chunk states
        ],
    )
    # NOTE: batch-parallel megacore only engages for B >= 2; a single-sequence
    # prefill leaves one v7x TensorCore idle (channel-split would be needed).
    out, res_out, last_state = pl.pallas_call(
        partial(_mamba_block_kernel, d_conv=d_conv, d_inner=d_inner, d_state=N,
                t_sub=t_sub, pad=pad, eps=eps),
        out_shape=(jax.ShapeDtypeStruct((B, L, D), jnp.bfloat16),
                   jax.ShapeDtypeStruct((B, L, D), jnp.float32),
                   jax.ShapeDtypeStruct((B, N, d_inner), jnp.float32)),
        grid_spec=grid_spec,
        compiler_params=pltpu.CompilerParams(
            dimension_semantics=("parallel", "arbitrary"),
            vmem_limit_bytes=_VMEM_LIMIT),
    )(hidden, residual, lp["ln_g"], lp["ln_b"], lp["wi_xz"],
      lp["conv_w"], lp["conv_b"], lp["wx_all"], lp["w_dt"], lp["dt_bias"],
      lp["negA"], lp["D"], lp["wo"])
    return out, res_out, last_state


# ------------------- fused final-norm + tiled lm_head ----------------------

def _lm_head_kernel(h_ref, r_ref, g_ref, b_ref, w_ref, o_ref, x_scr, *, eps):
    j = pl.program_id(1)

    @pl.when(j == 0)          # LayerNorm once per row-block, reused over vocab tiles
    def _():
        res = h_ref[...].astype(jnp.float32) + r_ref[...]
        mean = jnp.mean(res, axis=-1, keepdims=True)
        cent = res - mean
        var = jnp.mean(cent * cent, axis=-1, keepdims=True)
        x_scr[...] = (cent * jax.lax.rsqrt(var + eps) * g_ref[...]
                      + b_ref[...]).astype(x_scr.dtype)

    # TODO(synk): logits could be emitted in bf16 if the downstream consumer allows it.
    o_ref[...] = jnp.dot(x_scr[...], w_ref[...], preferred_element_type=jnp.float32)


def lm_head_fused(hidden2d, residual2d, gamma, beta, w_t, *, eps):
    M, D = hidden2d.shape
    Vp = w_t.shape[1]                          # vocab already padded to a multiple of 128
    tm = _pick_tile(M, 512, 8)                 # big row blocks: stream the weight fewer times
    tn = _pick_tile(Vp, 512, 128)
    return pl.pallas_call(
        partial(_lm_head_kernel, eps=eps),
        out_shape=jax.ShapeDtypeStruct((M, Vp), jnp.float32),
        grid_spec=pltpu.PrefetchScalarGridSpec(
            num_scalar_prefetch=0,
            grid=(M // tm, Vp // tn),
            in_specs=[
                pl.BlockSpec((tm, D), lambda i, j: (i, 0)),      # hidden (bf16)
                pl.BlockSpec((tm, D), lambda i, j: (i, 0)),      # residual (f32)
                pl.BlockSpec((1, D), lambda i, j: (0, 0)),
                pl.BlockSpec((1, D), lambda i, j: (0, 0)),
                pl.BlockSpec((D, tn), lambda i, j: (0, j)),      # tied lm_head weight (bf16)
            ],
            out_specs=pl.BlockSpec((tm, tn), lambda i, j: (i, j)),
            scratch_shapes=[pltpu.VMEM((tm, D), jnp.bfloat16)],
        ),
        compiler_params=pltpu.CompilerParams(
            dimension_semantics=("parallel", "arbitrary"),
            vmem_limit_bytes=_VMEM_LIMIT),
    )(hidden2d, residual2d, gamma, beta, w_t)


# --------------------------- parameter construction -----------------------

def init_params(key, *, d_model, n_layer, vocab_size, d_state, d_conv, expand,
                dt_rank, dt_min=0.001, dt_max=0.1, dt_init_floor=1e-4):
    d_inner = expand * d_model
    keys = jax.random.split(key, 1 + n_layer)
    embedding = 0.02 * jax.random.normal(keys[0], (vocab_size, d_model), jnp.float32)

    layers = []
    for i in range(n_layer):
        lk = jax.random.split(keys[1 + i], 8)
        in_w = jax.random.normal(lk[0], (2 * d_inner, d_model), jnp.float32) / math.sqrt(d_model)
        conv_w = (jax.random.uniform(lk[1], (d_inner, d_conv)) - 0.5) / math.sqrt(d_conv)
        conv_b = (jax.random.uniform(lk[2], (d_inner,)) - 0.5) / math.sqrt(d_conv)
        x_proj_w = jax.random.normal(lk[3], (dt_rank + 2 * d_state, d_inner),
                                     jnp.float32) / math.sqrt(d_inner)
        dt_std = dt_rank ** -0.5
        dt_w = jax.random.uniform(lk[4], (d_inner, dt_rank), minval=-dt_std, maxval=dt_std)
        dt = jnp.exp(jax.random.uniform(lk[5], (d_inner,)) *
                     (math.log(dt_max) - math.log(dt_min)) + math.log(dt_min))
        dt = jnp.maximum(dt, dt_init_floor)
        inv_dt = dt + jnp.log(-jnp.expm1(-dt))                 # dt_proj.bias init
        A = jnp.tile(jnp.arange(1, d_state + 1, dtype=jnp.float32)[None, :], (d_inner, 1))
        A_log = jnp.log(A)
        out_w = (jax.random.normal(lk[6], (d_model, d_inner), jnp.float32)
                 / math.sqrt(d_inner) / math.sqrt(n_layer))    # out_proj rescaled by 1/sqrt(n_layer)

        # fused x_proj reordered to (B | C | dt) so the hot B/C extract starts at lane 0
        x_proj_reord = jnp.concatenate([x_proj_w[dt_rank:], x_proj_w[:dt_rank]], axis=0)

        layers.append(dict(
            ln_g=jnp.ones((1, d_model), jnp.float32),
            ln_b=jnp.zeros((1, d_model), jnp.float32),
            wi_xz=in_w.T.astype(jnp.bfloat16),                 # (d_model, 2*d_inner)
            conv_w=conv_w.T,                                   # (d_conv, d_inner) f32
            conv_b=conv_b[None, :],                            # (1, d_inner) f32
            wx_all=x_proj_reord.T.astype(jnp.bfloat16),        # (d_inner, 2N + R)
            w_dt=dt_w.T.astype(jnp.bfloat16),                  # (R, d_inner)
            dt_bias=inv_dt[None, :],                           # (1, d_inner) f32
            negA=(-jnp.exp(A_log)).T,                          # (N, d_inner) f32, precomputed
            D=jnp.ones((1, d_inner), jnp.float32),
            wo=out_w.T.astype(jnp.bfloat16),                   # (d_inner, d_model)
        ))

    # tie_weights(): lm_head.weight = embedding.weight.  One-time bf16 inference
    # snapshot; vocab padded to a multiple of 128 for lane-dense lm_head tiles.
    v_pad = ((vocab_size + 127) // 128) * 128
    lm_w = embedding.T.astype(jnp.bfloat16)
    if v_pad != vocab_size:
        lm_w = jnp.pad(lm_w, ((0, 0), (0, v_pad - vocab_size)))

    return dict(
        embedding=embedding,
        layers=layers,
        norm_f_g=jnp.ones((1, d_model), jnp.float32),
        norm_f_b=jnp.zeros((1, d_model), jnp.float32),
        lm_head_wT=lm_w,
    )


# --------------------------------- forward --------------------------------

def mamba_embed_forward(input_ids, params, *, norm_eps=1e-5):
    B, L = input_ids.shape
    V, D = params["embedding"].shape

    # TODO(synk): embedding lookup (nn.Embedding gather) stays in plain JAX glue.
    hidden = params["embedding"][input_ids].astype(jnp.bfloat16)    # bf16 activation stream
    # Residual stream kept in f32 (residual_in_fp32-style).  Layer 0 reads a zero
    # residual from HBM once (cheap relative to per-layer traffic).
    residual = jnp.zeros((B, L, D), jnp.float32)
    ssm_states = []

    for lp in params["layers"]:
        hidden, residual, last_state = mamba_block(hidden, residual, lp, eps=norm_eps)
        # PyTorch returns last_state flattened in (B, d_inner, d_state) order.
        ssm_states.append(jnp.transpose(last_state, (0, 2, 1)).reshape(-1))

    # return_list=False path in the reference hard-codes ssm_state_lst[-5].
    ssm_state_out = ssm_states[-5]

    logits2d = lm_head_fused(hidden.reshape(B * L, D), residual.reshape(B * L, D),
                             params["norm_f_g"], params["norm_f_b"],
                             params["lm_head_wT"], eps=norm_eps)
    return logits2d[:, :V].reshape(B, L, V), ssm_state_out


# ----------------------------------- main ----------------------------------

if __name__ == "__main__":
    d_model, n_layer = 32, 5                    # n_layer >= 5 so ssm_state_lst[-5] exists
    vocab_size_raw, pad_vocab_size_multiple = 100, 8
    d_state, d_conv, expand = 16, 4, 2
    dt_rank = math.ceil(d_model / 16)
    vocab_size = vocab_size_raw + (-vocab_size_raw) % pad_vocab_size_multiple
    B, L = 2, 8

    key = jax.random.PRNGKey(0)
    pkey, ikey = jax.random.split(key)
    params = init_params(pkey, d_model=d_model, n_layer=n_layer,
                         vocab_size=vocab_size, d_state=d_state,
                         d_conv=d_conv, expand=expand, dt_rank=dt_rank)
    input_ids = jax.random.randint(ikey, (B, L), 0, vocab_size_raw, dtype=jnp.int32)

    fwd = jax.jit(mamba_embed_forward)
    logits, ssm_state = fwd(input_ids, params)
    jax.block_until_ready((logits, ssm_state))

    assert logits.shape == (B, L, vocab_size)
    assert ssm_state.shape == (B * expand * d_model * d_state,)
    print("KERNEL_OK")
</pallas_src>

<mosaic_0001>
module attributes {stable_mosaic.version = 11 : i64} {
  func.func @_lm_head_kernel(%arg0: i32, %arg1: i32, %arg2: memref<16x32xbf16, #tpu.memory_space<vmem>>, %arg3: memref<16x32xf32, #tpu.memory_space<vmem>>, %arg4: memref<1x32xf32, #tpu.memory_space<vmem>>, %arg5: memref<1x32xf32, #tpu.memory_space<vmem>>, %arg6: memref<32x128xbf16, #tpu.memory_space<vmem>>, %arg7: memref<16x128xf32, #tpu.memory_space<vmem>>, %arg8: memref<16x32xbf16, #tpu.memory_space<vmem>>) attributes {dimension_semantics = [#tpu.dimension_semantics<parallel>, #tpu.dimension_semantics<arbitrary>], iteration_bounds = array<i64: 1, 1>, scalar_prefetch = 0 : i64, scratch_operands = 1 : i64, tpu.core_type = #tpu.core_type<tc>, window_params = [{transform_indices = @transform_0, window_bounds = array<i64: 16, 32>}, {transform_indices = @transform_1, window_bounds = array<i64: 16, 32>}, {pipeline_mode = #tpu.pipeline_mode<synchronous>, transform_indices = @transform_2, window_bounds = array<i64: 1, 32>}, {pipeline_mode = #tpu.pipeline_mode<synchronous>, transform_indices = @transform_3, window_bounds = array<i64: 1, 32>}, {transform_indices = @transform_4, window_bounds = array<i64: 32, 128>}, {transform_indices = @transform_5, window_bounds = array<i64: 16, 128>}]} {
    %c0_i32 = arith.constant 0 : i32
    %0 = arith.cmpi eq, %arg1, %c0_i32 : i32
    %1 = arith.extui %0 : i1 to i32
    %c0_i32_0 = arith.constant 0 : i32
    %2 = arith.cmpi ne, %1, %c0_i32_0 : i32
    scf.if %2 {
      %c0_6 = arith.constant 0 : index
      %c0_7 = arith.constant 0 : index
      %7 = vector.load %arg2[%c0_6, %c0_7] : memref<16x32xbf16, #tpu.memory_space<vmem>>, vector<16x32xbf16>
      %8 = arith.extf %7 : vector<16x32xbf16> to vector<16x32xf32>
      %c0_8 = arith.constant 0 : index
      %c0_9 = arith.constant 0 : index
      %9 = vector.load %arg3[%c0_8, %c0_9] : memref<16x32xf32, #tpu.memory_space<vmem>>, vector<16x32xf32>
      %10 = arith.addf %8, %9 : vector<16x32xf32>
      %cst_10 = arith.constant dense<0.000000e+00> : vector<16xf32>
      %11 = vector.multi_reduction <add>, %10, %cst_10 [1] : vector<16x32xf32> to vector<16xf32>
      %12 = vector.shape_cast %11 : vector<16xf32> to vector<16x1xf32>
      %cst_11 = arith.constant 3.200000e+01 : f32
      %13 = vector.broadcast %cst_11 : f32 to vector<16x1xf32>
      %14 = arith.divf %12, %13 : vector<16x1xf32>
      %15 = vector.broadcast %14 : vector<16x1xf32> to vector<16x32xf32>
      %16 = arith.subf %10, %15 : vector<16x32xf32>
      %17 = arith.mulf %16, %16 : vector<16x32xf32>
      %cst_12 = arith.constant dense<0.000000e+00> : vector<16xf32>
      %18 = vector.multi_reduction <add>, %17, %cst_12 [1] : vector<16x32xf32> to vector<16xf32>
      %19 = vector.shape_cast %18 : vector<16xf32> to vector<16x1xf32>
      %cst_13 = arith.constant 3.200000e+01 : f32
      %20 = vector.broadcast %cst_13 : f32 to vector<16x1xf32>
      %21 = arith.divf %19, %20 : vector<16x1xf32>
      %cst_14 = arith.constant 9.99999974E-6 : f32
      %22 = vector.broadcast %cst_14 : f32 to vector<16x1xf32>
      %23 = arith.addf %21, %22 : vector<16x1xf32>
      %24 = math.rsqrt %23 : vector<16x1xf32>
      %25 = vector.broadcast %24 : vector<16x1xf32> to vector<16x32xf32>
      %26 = arith.mulf %16, %25 : vector<16x32xf32>
      %c0_15 = arith.constant 0 : index
      %c0_16 = arith.constant 0 : index
      %27 = vector.load %arg4[%c0_15, %c0_16] : memref<1x32xf32, #tpu.memory_space<vmem>>, vector<1x32xf32>
      %28 = vector.broadcast %27 : vector<1x32xf32> to vector<16x32xf32>
      %29 = arith.mulf %26, %28 : vector<16x32xf32>
      %c0_17 = arith.constant 0 : index
      %c0_18 = arith.constant 0 : index
      %30 = vector.load %arg5[%c0_17, %c0_18] : memref<1x32xf32, #tpu.memory_space<vmem>>, vector<1x32xf32>
      %31 = vector.broadcast %30 : vector<1x32xf32> to vector<16x32xf32>
      %32 = arith.addf %29, %31 : vector<16x32xf32>
      %33 = arith.truncf %32 : vector<16x32xf32> to vector<16x32xbf16>
      %c0_19 = arith.constant 0 : index
      %c0_20 = arith.constant 0 : index
      %34 = vector.load %arg8[%c0_19, %c0_20] : memref<16x32xbf16, #tpu.memory_space<vmem>>, vector<16x32xbf16>
      tpu.vector_store %arg8[%c0_19, %c0_20], %33 {strides = array<i32>} : memref<16x32xbf16, #tpu.memory_space<vmem>>, vector<16x32xbf16>,
    } else {
    }
    %c0 = arith.constant 0 : index
    %c0_1 = arith.constant 0 : index
    %3 = vector.load %arg8[%c0, %c0_1] : memref<16x32xbf16, #tpu.memory_space<vmem>>, vector<16x32xbf16>
    %c0_2 = arith.constant 0 : index
    %c0_3 = arith.constant 0 : index
    %4 = vector.load %arg6[%c0_2, %c0_3] : memref<32x128xbf16, #tpu.memory_space<vmem>>, vector<32x128xbf16>
    %cst = arith.constant dense<0.000000e+00> : vector<16x128xf32>
    %5 = tpu.matmul %3, %4, %cst {dimension_numbers = #tpu.dot_dimension_numbers<[1], [0], [0], [1], [0, 0, 1, 1], [], []>} : vector<16x32xbf16>, vector<32x128xbf16>, vector<16x128xf32> -> vector<16x128xf32>
    %c0_4 = arith.constant 0 : index
    %c0_5 = arith.constant 0 : index
    %6 = vector.load %arg7[%c0_4, %c0_5] : memref<16x128xf32, #tpu.memory_space<vmem>>, vector<16x128xf32>
    tpu.vector_store %arg7[%c0_4, %c0_5], %5 {strides = array<i32>} : memref<16x128xf32, #tpu.memory_space<vmem>>, vector<16x128xf32>,
    return
  }
  func.func @transform_0(%arg0: i32, %arg1: i32) -> (i32, i32) {
    %c0_i32 = arith.constant 0 : i32
    %c0_i32_0 = arith.constant 0 : i32
    return %arg0, %c0_i32 : i32, i32
  }
  func.func @transform_1(%arg0: i32, %arg1: i32) -> (i32, i32) {
    %c0_i32 = arith.constant 0 : i32
    %c0_i32_0 = arith.constant 0 : i32
    return %arg0, %c0_i32 : i32, i32
  }
  func.func @transform_2(%arg0: i32, %arg1: i32) -> (i32, i32) {
    %c0_i32 = arith.constant 0 : i32
    %c0_i32_0 = arith.constant 0 : i32
    %c0_i32_1 = arith.constant 0 : i32
    return %c0_i32, %c0_i32_0 : i32, i32
  }
  func.func @transform_3(%arg0: i32, %arg1: i32) -> (i32, i32) {
    %c0_i32 = arith.constant 0 : i32
    %c0_i32_0 = arith.constant 0 : i32
    %c0_i32_1 = arith.constant 0 : i32
    return %c0_i32, %c0_i32_0 : i32, i32
  }
  func.func @transform_4(%arg0: i32, %arg1: i32) -> (i32, i32) {
    %c0_i32 = arith.constant 0 : i32
    %c0_i32_0 = arith.constant 0 : i32
    return %c0_i32, %arg1 : i32, i32
  }
  func.func @transform_5(%arg0: i32, %arg1: i32) -> (i32, i32) {
    %c0_i32 = arith.constant 0 : i32
    return %arg0, %arg1 : i32, i32
  }
}

module attributes {stable_mosaic.version = 11 : i64} {
  func.func @_mamba_block_kernel(%arg0: i32, %arg1: i32, %arg2: memref<1x8x32xbf16, #tpu.memory_space<vmem>>, %arg3: memref<1x8x32xf32, #tpu.memory_space<vmem>>, %arg4: memref<1x32xf32, #tpu.memory_space<vmem>>, %arg5: memref<1x32xf32, #tpu.memory_space<vmem>>, %arg6: memref<32x128xbf16, #tpu.memory_space<vmem>>, %arg7: memref<4x64xf32, #tpu.memory_space<vmem>>, %arg8: memref<1x64xf32, #tpu.memory_space<vmem>>, %arg9: memref<64x34xbf16, #tpu.memory_space<vmem>>, %arg10: memref<2x64xbf16, #tpu.memory_space<vmem>>, %arg11: memref<1x64xf32, #tpu.memory_space<vmem>>, %arg12: memref<16x64xf32, #tpu.memory_space<vmem>>, %arg13: memref<1x64xf32, #tpu.memory_space<vmem>>, %arg14: memref<64x32xbf16, #tpu.memory_space<vmem>>, %arg15: memref<1x8x32xbf16, #tpu.memory_space<vmem>>, %arg16: memref<1x8x32xf32, #tpu.memory_space<vmem>>, %arg17: memref<1x16x64xf32, #tpu.memory_space<vmem>>, %arg18: memref<16x64xf32, #tpu.memory_space<vmem>>, %arg19: memref<8x64xf32, #tpu.memory_space<vmem>>, %arg20: memref<8x64xf32, #tpu.memory_space<vmem>>, %arg21: memref<8x32xf32, #tpu.memory_space<vmem>>, %arg22: memref<8x64xbf16, #tpu.memory_space<vmem>>, %arg23: memref<8x64xbf16, #tpu.memory_space<vmem>>, %arg24: memref<128x64xbf16, #tpu.memory_space<vmem>>) attributes {dimension_semantics = [#tpu.dimension_semantics<parallel>, #tpu.dimension_semantics<arbitrary>], iteration_bounds = array<i64: 2, 1>, scalar_prefetch = 0 : i64, scratch_operands = 7 : i64, tpu.core_type = #tpu.core_type<tc>, window_params = [{transform_indices = @transform_0, window_bounds = array<i64: 1, 8, 32>}, {transform_indices = @transform_1, window_bounds = array<i64: 1, 8, 32>}, {pipeline_mode = #tpu.pipeline_mode<synchronous>, transform_indices = @transform_2, window_bounds = array<i64: 1, 32>}, {pipeline_mode = #tpu.pipeline_mode<synchronous>, transform_indices = @transform_3, window_bounds = array<i64: 1, 32>}, {pipeline_mode = #tpu.pipeline_mode<synchronous>, transform_indices = @transform_4, window_bounds = array<i64: 32, 128>}, {pipeline_mode = #tpu.pipeline_mode<synchronous>, transform_indices = @transform_5, window_bounds = array<i64: 4, 64>}, {pipeline_mode = #tpu.pipeline_mode<synchronous>, transform_indices = @transform_6, window_bounds = array<i64: 1, 64>}, {pipeline_mode = #tpu.pipeline_mode<synchronous>, transform_indices = @transform_7, window_bounds = array<i64: 64, 34>}, {pipeline_mode = #tpu.pipeline_mode<synchronous>, transform_indices = @transform_8, window_bounds = array<i64: 2, 64>}, {pipeline_mode = #tpu.pipeline_mode<synchronous>, transform_indices = @transform_9, window_bounds = array<i64: 1, 64>}, {pipeline_mode = #tpu.pipeline_mode<synchronous>, transform_indices = @transform_10, window_bounds = array<i64: 16, 64>}, {pipeline_mode = #tpu.pipeline_mode<synchronous>, transform_indices = @transform_11, window_bounds = array<i64: 1, 64>}, {pipeline_mode = #tpu.pipeline_mode<synchronous>, transform_indices = @transform_12, window_bounds = array<i64: 64, 32>}, {transform_indices = @transform_13, window_bounds = array<i64: 1, 8, 32>}, {transform_indices = @transform_14, window_bounds = array<i64: 1, 8, 32>}, {transform_indices = @transform_15, window_bounds = array<i64: 1, 16, 64>}]} {
    %c0 = arith.constant 0 : index
    %c0_0 = arith.constant 0 : index
    %c0_1 = arith.constant 0 : index
    %0 = vector.load %arg2[%c0, %c0_0, %c0_1] : memref<1x8x32xbf16, #tpu.memory_space<vmem>>, vector<1x8x32xbf16>
    %1 = vector.shape_cast %0 : vector<1x8x32xbf16> to vector<8x32xbf16>
    %2 = arith.extf %1 : vector<8x32xbf16> to vector<8x32xf32>
    %c0_2 = arith.constant 0 : index
    %c0_3 = arith.constant 0 : index
    %c0_4 = arith.constant 0 : index
    %3 = vector.load %arg3[%c0_2, %c0_3, %c0_4] : memref<1x8x32xf32, #tpu.memory_space<vmem>>, vector<1x8x32xf32>
    %4 = vector.shape_cast %3 : vector<1x8x32xf32> to vector<8x32xf32>
    %5 = arith.addf %2, %4 : vector<8x32xf32>
    %c0_5 = arith.constant 0 : index
    %c0_6 = arith.constant 0 : index
    %c0_7 = arith.constant 0 : index
    %6 = vector.load %arg16[%c0_5, %c0_6, %c0_7] : memref<1x8x32xf32, #tpu.memory_space<vmem>>, vector<1x8x32xf32>
    %7 = vector.shape_cast %6 : vector<1x8x32xf32> to vector<8x32xf32>
    %8 = vector.shape_cast %5 : vector<8x32xf32> to vector<1x8x32xf32>
    tpu.vector_store %arg16[%c0_5, %c0_6, %c0_7], %8 {strides = array<i32>} : memref<1x8x32xf32, #tpu.memory_space<vmem>>, vector<1x8x32xf32>,
    %cst = arith.constant dense<0.000000e+00> : vector<8xf32>
    %9 = vector.multi_reduction <add>, %5, %cst [1] : vector<8x32xf32> to vector<8xf32>
    %10 = vector.shape_cast %9 : vector<8xf32> to vector<8x1xf32>
    %cst_8 = arith.constant 3.200000e+01 : f32
    %11 = vector.broadcast %cst_8 : f32 to vector<8x1xf32>
    %12 = arith.divf %10, %11 : vector<8x1xf32>
    %13 = vector.broadcast %12 : vector<8x1xf32> to vector<8x32xf32>
    %14 = arith.subf %5, %13 : vector<8x32xf32>
    %15 = arith.mulf %14, %14 : vector<8x32xf32>
    %cst_9 = arith.constant dense<0.000000e+00> : vector<8xf32>
    %16 = vector.multi_reduction <add>, %15, %cst_9 [1] : vector<8x32xf32> to vector<8xf32>
    %17 = vector.shape_cast %16 : vector<8xf32> to vector<8x1xf32>
    %cst_10 = arith.constant 3.200000e+01 : f32
    %18 = vector.broadcast %cst_10 : f32 to vector<8x1xf32>
    %19 = arith.divf %17, %18 : vector<8x1xf32>
    %cst_11 = arith.constant 9.99999974E-6 : f32
    %20 = vector.broadcast %cst_11 : f32 to vector<8x1xf32>
    %21 = arith.addf %19, %20 : vector<8x1xf32>
    %22 = math.rsqrt %21 : vector<8x1xf32>
    %23 = vector.broadcast %22 : vector<8x1xf32> to vector<8x32xf32>
    %24 = arith.mulf %14, %23 : vector<8x32xf32>
    %c0_12 = arith.constant 0 : index
    %c0_13 = arith.constant 0 : index
    %25 = vector.load %arg4[%c0_12, %c0_13] : memref<1x32xf32, #tpu.memory_space<vmem>>, vector<1x32xf32>
    %26 = vector.broadcast %25 : vector<1x32xf32> to vector<8x32xf32>
    %27 = arith.mulf %24, %26 : vector<8x32xf32>
    %c0_14 = arith.constant 0 : index
    %c0_15 = arith.constant 0 : index
    %28 = vector.load %arg5[%c0_14, %c0_15] : memref<1x32xf32, #tpu.memory_space<vmem>>, vector<1x32xf32>
    %29 = vector.broadcast %28 : vector<1x32xf32> to vector<8x32xf32>
    %30 = arith.addf %27, %29 : vector<8x32xf32>
    %31 = arith.truncf %30 : vector<8x32xf32> to vector<8x32xbf16>
    %c0_16 = arith.constant 0 : index
    %c0_17 = arith.constant 0 : index
    %32 = vector.load %arg6[%c0_16, %c0_17] : memref<32x128xbf16, #tpu.memory_space<vmem>>, vector<32x128xbf16>
    %cst_18 = arith.constant dense<0.000000e+00> : vector<8x128xf32>
    %33 = tpu.matmul %31, %32, %cst_18 {dimension_numbers = #tpu.dot_dimension_numbers<[1], [0], [0], [1], [0, 0, 1, 1], [], []>} : vector<8x32xbf16>, vector<32x128xbf16>, vector<8x128xf32> -> vector<8x128xf32>
    %34 = vector.extract_strided_slice %33 {offsets = [0, 0], sizes = [8, 64], strides = [1, 1]} : vector<8x128xf32> to vector<8x64xf32>
    %35 = vector.extract_strided_slice %33 {offsets = [0, 64], sizes = [8, 64], strides = [1, 1]} : vector<8x128xf32> to vector<8x64xf32>
    %36 = arith.truncf %35 : vector<8x64xf32> to vector<8x64xbf16>
    %c0_19 = arith.constant 0 : index
    %c0_20 = arith.constant 0 : index
    %37 = vector.load %arg23[%c0_19, %c0_20] : memref<8x64xbf16, #tpu.memory_space<vmem>>, vector<8x64xbf16>
    tpu.vector_store %arg23[%c0_19, %c0_20], %36 {strides = array<i32>} : memref<8x64xbf16, #tpu.memory_space<vmem>>, vector<8x64xbf16>,
    %c0_i32 = arith.constant 0 : i32
    %38 = arith.cmpi eq, %arg1, %c0_i32 : i32
    %39 = arith.extui %38 : i1 to i32
    %c0_i32_21 = arith.constant 0 : i32
    %40 = arith.cmpi ne, %39, %c0_i32_21 : i32
    scf.if %40 {
      %cst_102 = arith.constant 0.000000e+00 : f32
      %236 = vector.broadcast %cst_102 : f32 to vector<1x16x64xf32>
      %c0_103 = arith.constant 0 : index
      %c0_104 = arith.constant 0 : index
      %c0_105 = arith.constant 0 : index
      %237 = vector.load %arg17[%c0_103, %c0_104, %c0_105] : memref<1x16x64xf32, #tpu.memory_space<vmem>>, vector<1x16x64xf32>
      tpu.vector_store %arg17[%c0_103, %c0_104, %c0_105], %236 {strides = array<i32>} : memref<1x16x64xf32, #tpu.memory_space<vmem>>, vector<1x16x64xf32>,
    } else {
    }
    %c0_i32_22 = arith.constant 0 : i32
    %41 = arith.cmpi eq, %arg1, %c0_i32_22 : i32
    %42 = arith.extui %41 : i1 to i32
    %c0_i32_23 = arith.constant 0 : i32
    %43 = arith.cmpi ne, %42, %c0_i32_23 : i32
    scf.if %43 {
      %cst_102 = arith.constant 0.000000e+00 : f32
      %236 = vector.broadcast %cst_102 : f32 to vector<8x64xf32>
      %c0_103 = arith.constant 0 : index
      %c0_104 = arith.constant 0 : index
      %237 = vector.load %arg18[%c0_103, %c0_104] : memref<16x64xf32, #tpu.memory_space<vmem>>, vector<8x64xf32>
      tpu.vector_store %arg18[%c0_103, %c0_104], %236 {strides = array<i32>} : memref<16x64xf32, #tpu.memory_space<vmem>>, vector<8x64xf32>,
    } else {
    }
    %c0_i32_24 = arith.constant 0 : i32
    %44 = arith.cmpi sgt, %arg1, %c0_i32_24 : i32
    %45 = arith.extui %44 : i1 to i32
    %c0_i32_25 = arith.constant 0 : i32
    %46 = arith.cmpi ne, %45, %c0_i32_25 : i32
    scf.if %46 {
      %c8_102 = arith.constant 8 : index
      %c0_103 = arith.constant 0 : index
      %236 = vector.load %arg18[%c8_102, %c0_103] : memref<16x64xf32, #tpu.memory_space<vmem>>, vector<8x64xf32>
      %c0_104 = arith.constant 0 : index
      %c0_105 = arith.constant 0 : index
      %237 = vector.load %arg18[%c0_104, %c0_105] : memref<16x64xf32, #tpu.memory_space<vmem>>, vector<8x64xf32>
      tpu.vector_store %arg18[%c0_104, %c0_105], %236 {strides = array<i32>} : memref<16x64xf32, #tpu.memory_space<vmem>>, vector<8x64xf32>,
    } else {
    }
    %c3 = arith.constant 3 : index
    %c0_26 = arith.constant 0 : index
    %47 = vector.load %arg7[%c3, %c0_26] : memref<4x64xf32, #tpu.memory_space<vmem>>, vector<1x64xf32>
    %48 = vector.broadcast %47 : vector<1x64xf32> to vector<8x64xf32>
    %49 = arith.mulf %48, %34 : vector<8x64xf32>
    %c8 = arith.constant 8 : index
    %c0_27 = arith.constant 0 : index
    %50 = vector.load %arg18[%c8, %c0_27] : memref<16x64xf32, #tpu.memory_space<vmem>>, vector<8x64xf32>
    tpu.vector_store %arg18[%c8, %c0_27], %34 {strides = array<i32>} : memref<16x64xf32, #tpu.memory_space<vmem>>, vector<8x64xf32>,
    %c0_28 = arith.constant 0 : index
    %c0_29 = arith.constant 0 : index
    %51 = vector.load %arg7[%c0_28, %c0_29] : memref<4x64xf32, #tpu.memory_space<vmem>>, vector<1x64xf32>
    %c5 = arith.constant 5 : index
    %c0_30 = arith.constant 0 : index
    %52 = vector.load %arg18[%c5, %c0_30] : memref<16x64xf32, #tpu.memory_space<vmem>>, vector<8x64xf32>
    %53 = vector.broadcast %51 : vector<1x64xf32> to vector<8x64xf32>
    %54 = arith.mulf %53, %52 : vector<8x64xf32>
    %55 = arith.addf %49, %54 : vector<8x64xf32>
    %c1 = arith.constant 1 : index
    %c0_31 = arith.constant 0 : index
    %56 = vector.load %arg7[%c1, %c0_31] : memref<4x64xf32, #tpu.memory_space<vmem>>, vector<1x64xf32>
    %c6 = arith.constant 6 : index
    %c0_32 = arith.constant 0 : index
    %57 = vector.load %arg18[%c6, %c0_32] : memref<16x64xf32, #tpu.memory_space<vmem>>, vector<8x64xf32>
    %58 = vector.broadcast %56 : vector<1x64xf32> to vector<8x64xf32>
    %59 = arith.mulf %58, %57 : vector<8x64xf32>
    %60 = arith.addf %55, %59 : vector<8x64xf32>
    %c2 = arith.constant 2 : index
    %c0_33 = arith.constant 0 : index
    %61 = vector.load %arg7[%c2, %c0_33] : memref<4x64xf32, #tpu.memory_space<vmem>>, vector<1x64xf32>
    %c7 = arith.constant 7 : index
    %c0_34 = arith.constant 0 : index
    %62 = vector.load %arg18[%c7, %c0_34] : memref<16x64xf32, #tpu.memory_space<vmem>>, vector<8x64xf32>
    %63 = vector.broadcast %61 : vector<1x64xf32> to vector<8x64xf32>
    %64 = arith.mulf %63, %62 : vector<8x64xf32>
    %65 = arith.addf %60, %64 : vector<8x64xf32>
    %c0_35 = arith.constant 0 : index
    %c0_36 = arith.constant 0 : index
    %66 = vector.load %arg8[%c0_35, %c0_36] : memref<1x64xf32, #tpu.memory_space<vmem>>, vector<1x64xf32>
    %67 = vector.broadcast %66 : vector<1x64xf32> to vector<8x64xf32>
    %68 = arith.addf %65, %67 : vector<8x64xf32>
    %69 = arith.negf %68 : vector<8x64xf32>
    %70 = math.exp %69 : vector<8x64xf32>
    %cst_37 = arith.constant 1.000000e+00 : f32
    %71 = vector.broadcast %cst_37 : f32 to vector<8x64xf32>
    %72 = arith.addf %71, %70 : vector<8x64xf32>
    %73 = arith.divf %71, %72 : vector<8x64xf32>
    %74 = arith.mulf %68, %73 : vector<8x64xf32>
    %75 = arith.truncf %74 : vector<8x64xf32> to vector<8x64xbf16>
    %c0_38 = arith.constant 0 : index
    %c0_39 = arith.constant 0 : index
    %76 = vector.load %arg9[%c0_38, %c0_39] : memref<64x34xbf16, #tpu.memory_space<vmem>>, vector<64x34xbf16>
    %cst_40 = arith.constant dense<0.000000e+00> : vector<8x34xf32>
    %77 = tpu.matmul %75, %76, %cst_40 {dimension_numbers = #tpu.dot_dimension_numbers<[1], [0], [0], [1], [0, 0, 1, 1], [], []>} : vector<8x64xbf16>, vector<64x34xbf16>, vector<8x34xf32> -> vector<8x34xf32>
    %78 = vector.extract_strided_slice %77 {offsets = [0, 0], sizes = [8, 32], strides = [1, 1]} : vector<8x34xf32> to vector<8x32xf32>
    %c0_41 = arith.constant 0 : index
    %c0_42 = arith.constant 0 : index
    %79 = vector.load %arg21[%c0_41, %c0_42] : memref<8x32xf32, #tpu.memory_space<vmem>>, vector<8x32xf32>
    tpu.vector_store %arg21[%c0_41, %c0_42], %78 {strides = array<i32>} : memref<8x32xf32, #tpu.memory_space<vmem>>, vector<8x32xf32>,
    %80 = vector.extract_strided_slice %77 {offsets = [0, 32], sizes = [8, 2], strides = [1, 1]} : vector<8x34xf32> to vector<8x2xf32>
    %81 = arith.truncf %80 : vector<8x2xf32> to vector<8x2xbf16>
    %c0_43 = arith.constant 0 : index
    %c0_44 = arith.constant 0 : index
    %82 = vector.load %arg10[%c0_43, %c0_44] : memref<2x64xbf16, #tpu.memory_space<vmem>>, vector<2x64xbf16>
    %cst_45 = arith.constant dense<0.000000e+00> : vector<8x64xf32>
    %83 = tpu.matmul %81, %82, %cst_45 {dimension_numbers = #tpu.dot_dimension_numbers<[1], [0], [0], [1], [0, 0, 1, 1], [], []>} : vector<8x2xbf16>, vector<2x64xbf16>, vector<8x64xf32> -> vector<8x64xf32>
    %c0_46 = arith.constant 0 : index
    %c0_47 = arith.constant 0 : index
    %84 = vector.load %arg11[%c0_46, %c0_47] : memref<1x64xf32, #tpu.memory_space<vmem>>, vector<1x64xf32>
    %85 = vector.broadcast %84 : vector<1x64xf32> to vector<8x64xf32>
    %86 = arith.addf %83, %85 : vector<8x64xf32>
    %cst_48 = arith.constant 2.000000e+01 : f32
    %87 = vector.broadcast %cst_48 : f32 to vector<8x64xf32>
    %88 = arith.cmpf ogt, %86, %87 : vector<8x64xf32>
    %cst_49 = arith.constant 2.000000e+01 : f32
    %89 = vector.broadcast %cst_49 : f32 to vector<8x64xf32>
    %90 = arith.minimumf %86, %89 : vector<8x64xf32>
    %91 = math.exp %90 : vector<8x64xf32>
    %92 = math.log1p %91 : vector<8x64xf32>
    %93 = arith.select %88, %86, %92 : vector<8x64xi1>, vector<8x64xf32>
    %c0_50 = arith.constant 0 : index
    %c0_51 = arith.constant 0 : index
    %94 = vector.load %arg19[%c0_50, %c0_51] : memref<8x64xf32, #tpu.memory_space<vmem>>, vector<8x64xf32>
    tpu.vector_store %arg19[%c0_50, %c0_51], %93 {strides = array<i32>} : memref<8x64xf32, #tpu.memory_space<vmem>>, vector<8x64xf32>,
    %c0_52 = arith.constant 0 : index
    %c0_53 = arith.constant 0 : index
    %95 = vector.load %arg20[%c0_52, %c0_53] : memref<8x64xf32, #tpu.memory_space<vmem>>, vector<8x64xf32>
    tpu.vector_store %arg20[%c0_52, %c0_53], %74 {strides = array<i32>} : memref<8x64xf32, #tpu.memory_space<vmem>>, vector<8x64xf32>,
    %c0_54 = arith.constant 0 : index
    %c0_55 = arith.constant 0 : index
    %96 = vector.load %arg12[%c0_54, %c0_55] : memref<16x64xf32, #tpu.memory_space<vmem>>, vector<16x64xf32>
    %97 = tpu.iota {dimensions = array<i32: 0>} : vector<128x8xi32>
    %98 = tpu.iota {dimensions = array<i32: 1>} : vector<128x8xi32>
    %c16_i32 = arith.constant 16 : i32
    %99 = vector.broadcast %c16_i32 : i32 to vector<128x8xi32>
    %100 = arith.muli %98, %99 : vector<128x8xi32>
    %101 = arith.cmpi sge, %97, %100 : vector<128x8xi32>
    %c1_i32 = arith.constant 1 : i32
    %102 = vector.broadcast %c1_i32 : i32 to vector<128x8xi32>
    %103 = arith.addi %98, %102 : vector<128x8xi32>
    %c16_i32_56 = arith.constant 16 : i32
    %104 = vector.broadcast %c16_i32_56 : i32 to vector<128x8xi32>
    %105 = arith.muli %103, %104 : vector<128x8xi32>
    %106 = arith.cmpi slt, %97, %105 : vector<128x8xi32>
    %107 = arith.andi %101, %106 : vector<128x8xi1>
    %108 = tpu.iota {dimensions = array<i32: 0>} : vector<8x128xi32>
    %109 = tpu.iota {dimensions = array<i32: 1>} : vector<8x128xi32>
    %c16_i32_57 = arith.constant 16 : i32
    %110 = vector.broadcast %c16_i32_57 : i32 to vector<8x128xi32>
    %111 = arith.muli %108, %110 : vector<8x128xi32>
    %112 = arith.cmpi sge, %109, %111 : vector<8x128xi32>
    %c1_i32_58 = arith.constant 1 : i32
    %113 = vector.broadcast %c1_i32_58 : i32 to vector<8x128xi32>
    %114 = arith.addi %108, %113 : vector<8x128xi32>
    %c16_i32_59 = arith.constant 16 : i32
    %115 = vector.broadcast %c16_i32_59 : i32 to vector<8x128xi32>
    %116 = arith.muli %114, %115 : vector<8x128xi32>
    %117 = arith.cmpi slt, %109, %116 : vector<8x128xi32>
    %118 = arith.andi %112, %117 : vector<8x128xi1>
    %c0_60 = arith.constant 0 : index
    %c0_61 = arith.constant 0 : index
    %c0_62 = arith.constant 0 : index
    %119 = vector.load %arg17[%c0_60, %c0_61, %c0_62] : memref<1x16x64xf32, #tpu.memory_space<vmem>>, vector<1x16x64xf32>
    %120 = vector.shape_cast %119 : vector<1x16x64xf32> to vector<16x64xf32>
    %c0_i32_63 = arith.constant 0 : i32
    %c8_i32 = arith.constant 8 : i32
    %121 = arith.muli %c0_i32_63, %c8_i32 : i32
    %122 = tpu.assume_multiple %121, 8 : i32
    %123 = arith.index_cast %122 : i32 to index
    %c0_64 = arith.constant 0 : index
    %124 = vector.load %arg19[%123, %c0_64] : memref<8x64xf32, #tpu.memory_space<vmem>>, vector<8x64xf32>
    %125 = arith.index_cast %122 : i32 to index
    %c0_65 = arith.constant 0 : index
    %126 = vector.load %arg20[%125, %c0_65] : memref<8x64xf32, #tpu.memory_space<vmem>>, vector<8x64xf32>
    %127 = arith.index_cast %122 : i32 to index
    %c0_66 = arith.constant 0 : index
    %128 = vector.load %arg21[%127, %c0_66] : memref<8x32xf32, #tpu.memory_space<vmem>>, vector<8x32xf32>
    %129 = vector.extract_strided_slice %128 {offsets = [0, 0], sizes = [8, 16], strides = [1, 1]} : vector<8x32xf32> to vector<8x16xf32>
    %130 = vector.extract_strided_slice %128 {offsets = [0, 16], sizes = [8, 16], strides = [1, 1]} : vector<8x32xf32> to vector<8x16xf32>
    %131 = arith.mulf %124, %126 : vector<8x64xf32>
    %132 = arith.truncf %131 : vector<8x64xf32> to vector<8x64xbf16>
    %133 = vector.shape_cast %124 : vector<8x64xf32> to vector<8x1x64xf32>
    %134 = vector.shape_cast %96 : vector<16x64xf32> to vector<1x16x64xf32>
    %135 = vector.broadcast %133 : vector<8x1x64xf32> to vector<8x16x64xf32>
    %136 = vector.broadcast %134 : vector<1x16x64xf32> to vector<8x16x64xf32>
    %137 = arith.mulf %135, %136 : vector<8x16x64xf32>
    %138 = math.exp %137 : vector<8x16x64xf32>
    %139 = tpu.transpose %129, [1, 0] : vector<8x16xf32> -> vector<16x8xf32>
    %140 = tpu.concatenate %139, %139, %139, %139, %139, %139, %139, %139 in 0 : vector<16x8xf32>, vector<16x8xf32>, vector<16x8xf32>, vector<16x8xf32>, vector<16x8xf32>, vector<16x8xf32>, vector<16x8xf32>, vector<16x8xf32> -> vector<128x8xf32>
    %cst_67 = arith.constant 0.000000e+00 : f32
    %141 = vector.broadcast %cst_67 : f32 to vector<128x8xf32>
    %142 = arith.select %107, %140, %141 : vector<128x8xi1>, vector<128x8xf32>
    %143 = arith.truncf %142 : vector<128x8xf32> to vector<128x8xbf16>
    %cst_68 = arith.constant dense<0.000000e+00> : vector<128x64xf32>
    %144 = tpu.matmul %143, %132, %cst_68 {dimension_numbers = #tpu.dot_dimension_numbers<[1], [0], [0], [1], [0, 0, 1, 1], [], []>} : vector<128x8xbf16>, vector<8x64xbf16>, vector<128x64xf32> -> vector<128x64xf32>
    %145 = vector.extract_strided_slice %138 {offsets = [0, 0, 0], sizes = [1, 16, 64], strides = [1, 1, 1]} : vector<8x16x64xf32> to vector<1x16x64xf32>
    %146 = vector.shape_cast %145 : vector<1x16x64xf32> to vector<16x64xf32>
    %147 = arith.mulf %146, %120 : vector<16x64xf32>
    %148 = vector.extract_strided_slice %144 {offsets = [0, 0], sizes = [16, 64], strides = [1, 1]} : vector<128x64xf32> to vector<16x64xf32>
    %149 = arith.addf %147, %148 : vector<16x64xf32>
    %150 = arith.truncf %149 : vector<16x64xf32> to vector<16x64xbf16>
    %c0_69 = arith.constant 0 : index
    %c0_70 = arith.constant 0 : index
    %151 = vector.load %arg24[%c0_69, %c0_70] : memref<128x64xbf16, #tpu.memory_space<vmem>>, vector<16x64xbf16>
    tpu.vector_store %arg24[%c0_69, %c0_70], %150 {strides = array<i32>} : memref<128x64xbf16, #tpu.memory_space<vmem>>, vector<16x64xbf16>,
    %152 = vector.extract_strided_slice %138 {offsets = [1, 0, 0], sizes = [1, 16, 64], strides = [1, 1, 1]} : vector<8x16x64xf32> to vector<1x16x64xf32>
    %153 = vector.shape_cast %152 : vector<1x16x64xf32> to vector<16x64xf32>
    %154 = arith.mulf %153, %149 : vector<16x64xf32>
    %155 = vector.extract_strided_slice %144 {offsets = [16, 0], sizes = [16, 64], strides = [1, 1]} : vector<128x64xf32> to vector<16x64xf32>
    %156 = arith.addf %154, %155 : vector<16x64xf32>
    %157 = arith.truncf %156 : vector<16x64xf32> to vector<16x64xbf16>
    %c16 = arith.constant 16 : index
    %c0_71 = arith.constant 0 : index
    %158 = vector.load %arg24[%c16, %c0_71] : memref<128x64xbf16, #tpu.memory_space<vmem>>, vector<16x64xbf16>
    tpu.vector_store %arg24[%c16, %c0_71], %157 {strides = array<i32>} : memref<128x64xbf16, #tpu.memory_space<vmem>>, vector<16x64xbf16>,
    %159 = vector.extract_strided_slice %138 {offsets = [2, 0, 0], sizes = [1, 16, 64], strides = [1, 1, 1]} : vector<8x16x64xf32> to vector<1x16x64xf32>
    %160 = vector.shape_cast %159 : vector<1x16x64xf32> to vector<16x64xf32>
    %161 = arith.mulf %160, %156 : vector<16x64xf32>
    %162 = vector.extract_strided_slice %144 {offsets = [32, 0], sizes = [16, 64], strides = [1, 1]} : vector<128x64xf32> to vector<16x64xf32>
    %163 = arith.addf %161, %162 : vector<16x64xf32>
    %164 = arith.truncf %163 : vector<16x64xf32> to vector<16x64xbf16>
    %c32 = arith.constant 32 : index
    %c0_72 = arith.constant 0 : index
    %165 = vector.load %arg24[%c32, %c0_72] : memref<128x64xbf16, #tpu.memory_space<vmem>>, vector<16x64xbf16>
    tpu.vector_store %arg24[%c32, %c0_72], %164 {strides = array<i32>} : memref<128x64xbf16, #tpu.memory_space<vmem>>, vector<16x64xbf16>,
    %166 = vector.extract_strided_slice %138 {offsets = [3, 0, 0], sizes = [1, 16, 64], strides = [1, 1, 1]} : vector<8x16x64xf32> to vector<1x16x64xf32>
    %167 = vector.shape_cast %166 : vector<1x16x64xf32> to vector<16x64xf32>
    %168 = arith.mulf %167, %163 : vector<16x64xf32>
    %169 = vector.extract_strided_slice %144 {offsets = [48, 0], sizes = [16, 64], strides = [1, 1]} : vector<128x64xf32> to vector<16x64xf32>
    %170 = arith.addf %168, %169 : vector<16x64xf32>
    %171 = arith.truncf %170 : vector<16x64xf32> to vector<16x64xbf16>
    %c48 = arith.constant 48 : index
    %c0_73 = arith.constant 0 : index
    %172 = vector.load %arg24[%c48, %c0_73] : memref<128x64xbf16, #tpu.memory_space<vmem>>, vector<16x64xbf16>
    tpu.vector_store %arg24[%c48, %c0_73], %171 {strides = array<i32>} : memref<128x64xbf16, #tpu.memory_space<vmem>>, vector<16x64xbf16>,
    %173 = vector.extract_strided_slice %138 {offsets = [4, 0, 0], sizes = [1, 16, 64], strides = [1, 1, 1]} : vector<8x16x64xf32> to vector<1x16x64xf32>
    %174 = vector.shape_cast %173 : vector<1x16x64xf32> to vector<16x64xf32>
    %175 = arith.mulf %174, %170 : vector<16x64xf32>
    %176 = vector.extract_strided_slice %144 {offsets = [64, 0], sizes = [16, 64], strides = [1, 1]} : vector<128x64xf32> to vector<16x64xf32>
    %177 = arith.addf %175, %176 : vector<16x64xf32>
    %178 = arith.truncf %177 : vector<16x64xf32> to vector<16x64xbf16>
    %c64 = arith.constant 64 : index
    %c0_74 = arith.constant 0 : index
    %179 = vector.load %arg24[%c64, %c0_74] : memref<128x64xbf16, #tpu.memory_space<vmem>>, vector<16x64xbf16>
    tpu.vector_store %arg24[%c64, %c0_74], %178 {strides = array<i32>} : memref<128x64xbf16, #tpu.memory_space<vmem>>, vector<16x64xbf16>,
    %180 = vector.extract_strided_slice %138 {offsets = [5, 0, 0], sizes = [1, 16, 64], strides = [1, 1, 1]} : vector<8x16x64xf32> to vector<1x16x64xf32>
    %181 = vector.shape_cast %180 : vector<1x16x64xf32> to vector<16x64xf32>
    %182 = arith.mulf %181, %177 : vector<16x64xf32>
    %183 = vector.extract_strided_slice %144 {offsets = [80, 0], sizes = [16, 64], strides = [1, 1]} : vector<128x64xf32> to vector<16x64xf32>
    %184 = arith.addf %182, %183 : vector<16x64xf32>
    %185 = arith.truncf %184 : vector<16x64xf32> to vector<16x64xbf16>
    %c80 = arith.constant 80 : index
    %c0_75 = arith.constant 0 : index
    %186 = vector.load %arg24[%c80, %c0_75] : memref<128x64xbf16, #tpu.memory_space<vmem>>, vector<16x64xbf16>
    tpu.vector_store %arg24[%c80, %c0_75], %185 {strides = array<i32>} : memref<128x64xbf16, #tpu.memory_space<vmem>>, vector<16x64xbf16>,
    %187 = vector.extract_strided_slice %138 {offsets = [6, 0, 0], sizes = [1, 16, 64], strides = [1, 1, 1]} : vector<8x16x64xf32> to vector<1x16x64xf32>
    %188 = vector.shape_cast %187 : vector<1x16x64xf32> to vector<16x64xf32>
    %189 = arith.mulf %188, %184 : vector<16x64xf32>
    %190 = vector.extract_strided_slice %144 {offsets = [96, 0], sizes = [16, 64], strides = [1, 1]} : vector<128x64xf32> to vector<16x64xf32>
    %191 = arith.addf %189, %190 : vector<16x64xf32>
    %192 = arith.truncf %191 : vector<16x64xf32> to vector<16x64xbf16>
    %c96 = arith.constant 96 : index
    %c0_76 = arith.constant 0 : index
    %193 = vector.load %arg24[%c96, %c0_76] : memref<128x64xbf16, #tpu.memory_space<vmem>>, vector<16x64xbf16>
    tpu.vector_store %arg24[%c96, %c0_76], %192 {strides = array<i32>} : memref<128x64xbf16, #tpu.memory_space<vmem>>, vector<16x64xbf16>,
    %194 = vector.extract_strided_slice %138 {offsets = [7, 0, 0], sizes = [1, 16, 64], strides = [1, 1, 1]} : vector<8x16x64xf32> to vector<1x16x64xf32>
    %195 = vector.shape_cast %194 : vector<1x16x64xf32> to vector<16x64xf32>
    %196 = arith.mulf %195, %191 : vector<16x64xf32>
    %197 = vector.extract_strided_slice %144 {offsets = [112, 0], sizes = [16, 64], strides = [1, 1]} : vector<128x64xf32> to vector<16x64xf32>
    %198 = arith.addf %196, %197 : vector<16x64xf32>
    %199 = arith.truncf %198 : vector<16x64xf32> to vector<16x64xbf16>
    %c112 = arith.constant 112 : index
    %c0_77 = arith.constant 0 : index
    %200 = vector.load %arg24[%c112, %c0_77] : memref<128x64xbf16, #tpu.memory_space<vmem>>, vector<16x64xbf16>
    tpu.vector_store %arg24[%c112, %c0_77], %199 {strides = array<i32>} : memref<128x64xbf16, #tpu.memory_space<vmem>>, vector<16x64xbf16>,
    %201 = tpu.concatenate %130, %130, %130, %130, %130, %130, %130, %130 in 1 : vector<8x16xf32>, vector<8x16xf32>, vector<8x16xf32>, vector<8x16xf32>, vector<8x16xf32>, vector<8x16xf32>, vector<8x16xf32>, vector<8x16xf32> -> vector<8x128xf32>
    %cst_78 = arith.constant 0.000000e+00 : f32
    %202 = vector.broadcast %cst_78 : f32 to vector<8x128xf32>
    %203 = arith.select %118, %201, %202 : vector<8x128xi1>, vector<8x128xf32>
    %204 = arith.truncf %203 : vector<8x128xf32> to vector<8x128xbf16>
    %c0_79 = arith.constant 0 : index
    %c0_80 = arith.constant 0 : index
    %205 = vector.load %arg24[%c0_79, %c0_80] : memref<128x64xbf16, #tpu.memory_space<vmem>>, vector<128x64xbf16>
    %cst_81 = arith.constant dense<0.000000e+00> : vector<8x64xf32>
    %206 = tpu.matmul %204, %205, %cst_81 {dimension_numbers = #tpu.dot_dimension_numbers<[1], [0], [0], [1], [0, 0, 1, 1], [], []>} : vector<8x128xbf16>, vector<128x64xbf16>, vector<8x64xf32> -> vector<8x64xf32>
    %207 = arith.truncf %206 : vector<8x64xf32> to vector<8x64xbf16>
    %208 = arith.index_cast %122 : i32 to index
    %c0_82 = arith.constant 0 : index
    %209 = vector.load %arg22[%208, %c0_82] : memref<8x64xbf16, #tpu.memory_space<vmem>>, vector<8x64xbf16>
    tpu.vector_store %arg22[%208, %c0_82], %207 {strides = array<i32>} : memref<8x64xbf16, #tpu.memory_space<vmem>>, vector<8x64xbf16>,
    %c1_i32_83 = arith.constant 1 : i32
    %c0_84 = arith.constant 0 : index
    %c0_85 = arith.constant 0 : index
    %c0_86 = arith.constant 0 : index
    %210 = vector.load %arg17[%c0_84, %c0_85, %c0_86] : memref<1x16x64xf32, #tpu.memory_space<vmem>>, vector<1x16x64xf32>
    %211 = vector.shape_cast %210 : vector<1x16x64xf32> to vector<16x64xf32>
    %212 = vector.shape_cast %198 : vector<16x64xf32> to vector<1x16x64xf32>
    tpu.vector_store %arg17[%c0_84, %c0_85, %c0_86], %212 {strides = array<i32>} : memref<1x16x64xf32, #tpu.memory_space<vmem>>, vector<1x16x64xf32>,
    %c0_87 = arith.constant 0 : index
    %c0_88 = arith.constant 0 : index
    %213 = vector.load %arg22[%c0_87, %c0_88] : memref<8x64xbf16, #tpu.memory_space<vmem>>, vector<8x64xbf16>
    %214 = arith.extf %213 : vector<8x64xbf16> to vector<8x64xf32>
    %c0_89 = arith.constant 0 : index
    %c0_90 = arith.constant 0 : index
    %215 = vector.load %arg20[%c0_89, %c0_90] : memref<8x64xf32, #tpu.memory_space<vmem>>, vector<8x64xf32>
    %c0_91 = arith.constant 0 : index
    %c0_92 = arith.constant 0 : index
    %216 = vector.load %arg13[%c0_91, %c0_92] : memref<1x64xf32, #tpu.memory_space<vmem>>, vector<1x64xf32>
    %217 = vector.broadcast %216 : vector<1x64xf32> to vector<8x64xf32>
    %218 = arith.mulf %215, %217 : vector<8x64xf32>
    %219 = arith.addf %214, %218 : vector<8x64xf32>
    %c0_93 = arith.constant 0 : index
    %c0_94 = arith.constant 0 : index
    %220 = vector.load %arg23[%c0_93, %c0_94] : memref<8x64xbf16, #tpu.memory_space<vmem>>, vector<8x64xbf16>
    %221 = arith.extf %220 : vector<8x64xbf16> to vector<8x64xf32>
    %222 = arith.negf %221 : vector<8x64xf32>
    %223 = math.exp %222 : vector<8x64xf32>
    %cst_95 = arith.constant 1.000000e+00 : f32
    %224 = vector.broadcast %cst_95 : f32 to vector<8x64xf32>
    %225 = arith.addf %224, %223 : vector<8x64xf32>
    %226 = arith.divf %224, %225 : vector<8x64xf32>
    %227 = arith.mulf %221, %226 : vector<8x64xf32>
    %228 = arith.mulf %219, %227 : vector<8x64xf32>
    %229 = arith.truncf %228 : vector<8x64xf32> to vector<8x64xbf16>
    %c0_96 = arith.constant 0 : index
    %c0_97 = arith.constant 0 : index
    %230 = vector.load %arg14[%c0_96, %c0_97] : memref<64x32xbf16, #tpu.memory_space<vmem>>, vector<64x32xbf16>
    %cst_98 = arith.constant dense<0.000000e+00> : vector<8x32xf32>
    %231 = tpu.matmul %229, %230, %cst_98 {dimension_numbers = #tpu.dot_dimension_numbers<[1], [0], [0], [1], [0, 0, 1, 1], [], []>} : vector<8x64xbf16>, vector<64x32xbf16>, vector<8x32xf32> -> vector<8x32xf32>
    %232 = arith.truncf %231 : vector<8x32xf32> to vector<8x32xbf16>
    %c0_99 = arith.constant 0 : index
    %c0_100 = arith.constant 0 : index
    %c0_101 = arith.constant 0 : index
    %233 = vector.load %arg15[%c0_99, %c0_100, %c0_101] : memref<1x8x32xbf16, #tpu.memory_space<vmem>>, vector<1x8x32xbf16>
    %234 = vector.shape_cast %233 : vector<1x8x32xbf16> to vector<8x32xbf16>
    %235 = vector.shape_cast %232 : vector<8x32xbf16> to vector<1x8x32xbf16>
    tpu.vector_store %arg15[%c0_99, %c0_100, %c0_101], %235 {strides = array<i32>} : memref<1x8x32xbf16, #tpu.memory_space<vmem>>, vector<1x8x32xbf16>,
    return
  }
  func.func @transform_0(%arg0: i32, %arg1: i32) -> (i32, i32, i32) {
    %c0_i32 = arith.constant 0 : i32
    %c0_i32_0 = arith.constant 0 : i32
    return %arg0, %arg1, %c0_i32 : i32, i32, i32
  }
  func.func @transform_1(%arg0: i32, %arg1: i32) -> (i32, i32, i32) {
    %c0_i32 = arith.constant 0 : i32
    %c0_i32_0 = arith.constant 0 : i32
    return %arg0, %arg1, %c0_i32 : i32, i32, i32
  }
  func.func @transform_2(%arg0: i32, %arg1: i32) -> (i32, i32) {
    %c0_i32 = arith.constant 0 : i32
    %c0_i32_0 = arith.constant 0 : i32
    %c0_i32_1 = arith.constant 0 : i32
    return %c0_i32, %c0_i32_0 : i32, i32
  }
  func.func @transform_3(%arg0: i32, %arg1: i32) -> (i32, i32) {
    %c0_i32 = arith.constant 0 : i32
    %c0_i32_0 = arith.constant 0 : i32
    %c0_i32_1 = arith.constant 0 : i32
    return %c0_i32, %c0_i32_0 : i32, i32
  }
  func.func @transform_4(%arg0: i32, %arg1: i32) -> (i32, i32) {
    %c0_i32 = arith.constant 0 : i32
    %c0_i32_0 = arith.constant 0 : i32
    %c0_i32_1 = arith.constant 0 : i32
    return %c0_i32, %c0_i32_0 : i32, i32
  }
  func.func @transform_5(%arg0: i32, %arg1: i32) -> (i32, i32) {
    %c0_i32 = arith.constant 0 : i32
    %c0_i32_0 = arith.constant 0 : i32
    %c0_i32_1 = arith.constant 0 : i32
    return %c0_i32, %c0_i32_0 : i32, i32
  }
  func.func @transform_6(%arg0: i32, %arg1: i32) -> (i32, i32) {
    %c0_i32 = arith.constant 0 : i32
    %c0_i32_0 = arith.constant 0 : i32
    %c0_i32_1 = arith.constant 0 : i32
    return %c0_i32, %c0_i32_0 : i32, i32
  }
  func.func @transform_7(%arg0: i32, %arg1: i32) -> (i32, i32) {
    %c0_i32 = arith.constant 0 : i32
    %c0_i32_0 = arith.constant 0 : i32
    %c0_i32_1 = arith.constant 0 : i32
    return %c0_i32, %c0_i32_0 : i32, i32
  }
  func.func @transform_8(%arg0: i32, %arg1: i32) -> (i32, i32) {
    %c0_i32 = arith.constant 0 : i32
    %c0_i32_0 = arith.constant 0 : i32
    %c0_i32_1 = arith.constant 0 : i32
    return %c0_i32, %c0_i32_0 : i32, i32
  }
  func.func @transform_9(%arg0: i32, %arg1: i32) -> (i32, i32) {
    %c0_i32 = arith.constant 0 : i32
    %c0_i32_0 = arith.constant 0 : i32
    %c0_i32_1 = arith.constant 0 : i32
    return %c0_i32, %c0_i32_0 : i32, i32
  }
  func.func @transform_10(%arg0: i32, %arg1: i32) -> (i32, i32) {
    %c0_i32 = arith.constant 0 : i32
    %c0_i32_0 = arith.constant 0 : i32
    %c0_i32_1 = arith.constant 0 : i32
    return %c0_i32, %c0_i32_0 : i32, i32
  }
  func.func @transform_11(%arg0: i32, %arg1: i32) -> (i32, i32) {
    %c0_i32 = arith.constant 0 : i32
    %c0_i32_0 = arith.constant 0 : i32
    %c0_i32_1 = arith.constant 0 : i32
    return %c0_i32, %c0_i32_0 : i32, i32
  }
  func.func @transform_12(%arg0: i32, %arg1: i32) -> (i32, i32) {
    %c0_i32 = arith.constant 0 : i32
    %c0_i32_0 = arith.constant 0 : i32
    %c0_i32_1 = arith.constant 0 : i32
    return %c0_i32, %c0_i32_0 : i32, i32
  }
  func.func @transform_13(%arg0: i32, %arg1: i32) -> (i32, i32, i32) {
    %c0_i32 = arith.constant 0 : i32
    %c0_i32_0 = arith.constant 0 : i32
    return %arg0, %arg1, %c0_i32 : i32, i32, i32
  }
  func.func @transform_14(%arg0: i32, %arg1: i32) -> (i32, i32, i32) {
    %c0_i32 = arith.constant 0 : i32
    %c0_i32_0 = arith.constant 0 : i32
    return %arg0, %arg1, %c0_i32 : i32, i32, i32
  }
  func.func @transform_15(%arg0: i32, %arg1: i32) -> (i32, i32, i32) {
    %c0_i32 = arith.constant 0 : i32
    %c0_i32_0 = arith.constant 0 : i32
    %c0_i32_1 = arith.constant 0 : i32
    return %arg0, %c0_i32, %c0_i32_0 : i32, i32, i32
  }
}

module attributes {stable_mosaic.version = 11 : i64} {
  func.func @_mamba_block_kernel(%arg0: i32, %arg1: i32, %arg2: memref<1x8x32xbf16, #tpu.memory_space<vmem>>, %arg3: memref<1x8x32xf32, #tpu.memory_space<vmem>>, %arg4: memref<1x32xf32, #tpu.memory_space<vmem>>, %arg5: memref<1x32xf32, #tpu.memory_space<vmem>>, %arg6: memref<32x128xbf16, #tpu.memory_space<vmem>>, %arg7: memref<4x64xf32, #tpu.memory_space<vmem>>, %arg8: memref<1x64xf32, #tpu.memory_space<vmem>>, %arg9: memref<64x34xbf16, #tpu.memory_space<vmem>>, %arg10: memref<2x64xbf16, #tpu.memory_space<vmem>>, %arg11: memref<1x64xf32, #tpu.memory_space<vmem>>, %arg12: memref<16x64xf32, #tpu.memory_space<vmem>>, %arg13: memref<1x64xf32, #tpu.memory_space<vmem>>, %arg14: memref<64x32xbf16, #tpu.memory_space<vmem>>, %arg15: memref<1x8x32xbf16, #tpu.memory_space<vmem>>, %arg16: memref<1x8x32xf32, #tpu.memory_space<vmem>>, %arg17: memref<1x16x64xf32, #tpu.memory_space<vmem>>, %arg18: memref<16x64xf32, #tpu.memory_space<vmem>>, %arg19: memref<8x64xf32, #tpu.memory_space<vmem>>, %arg20: memref<8x64xf32, #tpu.memory_space<vmem>>, %arg21: memref<8x32xf32, #tpu.memory_space<vmem>>, %arg22: memref<8x64xbf16, #tpu.memory_space<vmem>>, %arg23: memref<8x64xbf16, #tpu.memory_space<vmem>>, %arg24: memref<128x64xbf16, #tpu.memory_space<vmem>>) attributes {dimension_semantics = [#tpu.dimension_semantics<parallel>, #tpu.dimension_semantics<arbitrary>], iteration_bounds = array<i64: 2, 1>, scalar_prefetch = 0 : i64, scratch_operands = 7 : i64, tpu.core_type = #tpu.core_type<tc>, window_params = [{transform_indices = @transform_0, window_bounds = array<i64: 1, 8, 32>}, {transform_indices = @transform_1, window_bounds = array<i64: 1, 8, 32>}, {pipeline_mode = #tpu.pipeline_mode<synchronous>, transform_indices = @transform_2, window_bounds = array<i64: 1, 32>}, {pipeline_mode = #tpu.pipeline_mode<synchronous>, transform_indices = @transform_3, window_bounds = array<i64: 1, 32>}, {pipeline_mode = #tpu.pipeline_mode<synchronous>, transform_indices = @transform_4, window_bounds = array<i64: 32, 128>}, {pipeline_mode = #tpu.pipeline_mode<synchronous>, transform_indices = @transform_5, window_bounds = array<i64: 4, 64>}, {pipeline_mode = #tpu.pipeline_mode<synchronous>, transform_indices = @transform_6, window_bounds = array<i64: 1, 64>}, {pipeline_mode = #tpu.pipeline_mode<synchronous>, transform_indices = @transform_7, window_bounds = array<i64: 64, 34>}, {pipeline_mode = #tpu.pipeline_mode<synchronous>, transform_indices = @transform_8, window_bounds = array<i64: 2, 64>}, {pipeline_mode = #tpu.pipeline_mode<synchronous>, transform_indices = @transform_9, window_bounds = array<i64: 1, 64>}, {pipeline_mode = #tpu.pipeline_mode<synchronous>, transform_indices = @transform_10, window_bounds = array<i64: 16, 64>}, {pipeline_mode = #tpu.pipeline_mode<synchronous>, transform_indices = @transform_11, window_bounds = array<i64: 1, 64>}, {pipeline_mode = #tpu.pipeline_mode<synchronous>, transform_indices = @transform_12, window_bounds = array<i64: 64, 32>}, {transform_indices = @transform_13, window_bounds = array<i64: 1, 8, 32>}, {transform_indices = @transform_14, window_bounds = array<i64: 1, 8, 32>}, {transform_indices = @transform_15, window_bounds = array<i64: 1, 16, 64>}]} {
    %c0 = arith.constant 0 : index
    %c0_0 = arith.constant 0 : index
    %c0_1 = arith.constant 0 : index
    %0 = vector.load %arg2[%c0, %c0_0, %c0_1] : memref<1x8x32xbf16, #tpu.memory_space<vmem>>, vector<1x8x32xbf16>
    %1 = vector.shape_cast %0 : vector<1x8x32xbf16> to vector<8x32xbf16>
    %2 = arith.extf %1 : vector<8x32xbf16> to vector<8x32xf32>
    %c0_2 = arith.constant 0 : index
    %c0_3 = arith.constant 0 : index
    %c0_4 = arith.constant 0 : index
    %3 = vector.load %arg3[%c0_2, %c0_3, %c0_4] : memref<1x8x32xf32, #tpu.memory_space<vmem>>, vector<1x8x32xf32>
    %4 = vector.shape_cast %3 : vector<1x8x32xf32> to vector<8x32xf32>
    %5 = arith.addf %2, %4 : vector<8x32xf32>
    %c0_5 = arith.constant 0 : index
    %c0_6 = arith.constant 0 : index
    %c0_7 = arith.constant 0 : index
    %6 = vector.load %arg16[%c0_5, %c0_6, %c0_7] : memref<1x8x32xf32, #tpu.memory_space<vmem>>, vector<1x8x32xf32>
    %7 = vector.shape_cast %6 : vector<1x8x32xf32> to vector<8x32xf32>
    %8 = vector.shape_cast %5 : vector<8x32xf32> to vector<1x8x32xf32>
    tpu.vector_store %arg16[%c0_5, %c0_6, %c0_7], %8 {strides = array<i32>} : memref<1x8x32xf32, #tpu.memory_space<vmem>>, vector<1x8x32xf32>,
    %cst = arith.constant dense<0.000000e+00> : vector<8xf32>
    %9 = vector.multi_reduction <add>, %5, %cst [1] : vector<8x32xf32> to vector<8xf32>
    %10 = vector.shape_cast %9 : vector<8xf32> to vector<8x1xf32>
    %cst_8 = arith.constant 3.200000e+01 : f32
    %11 = vector.broadcast %cst_8 : f32 to vector<8x1xf32>
    %12 = arith.divf %10, %11 : vector<8x1xf32>
    %13 = vector.broadcast %12 : vector<8x1xf32> to vector<8x32xf32>
    %14 = arith.subf %5, %13 : vector<8x32xf32>
    %15 = arith.mulf %14, %14 : vector<8x32xf32>
    %cst_9 = arith.constant dense<0.000000e+00> : vector<8xf32>
    %16 = vector.multi_reduction <add>, %15, %cst_9 [1] : vector<8x32xf32> to vector<8xf32>
    %17 = vector.shape_cast %16 : vector<8xf32> to vector<8x1xf32>
    %cst_10 = arith.constant 3.200000e+01 : f32
    %18 = vector.broadcast %cst_10 : f32 to vector<8x1xf32>
    %19 = arith.divf %17, %18 : vector<8x1xf32>
    %cst_11 = arith.constant 9.99999974E-6 : f32
    %20 = vector.broadcast %cst_11 : f32 to vector<8x1xf32>
    %21 = arith.addf %19, %20 : vector<8x1xf32>
    %22 = math.rsqrt %21 : vector<8x1xf32>
    %23 = vector.broadcast %22 : vector<8x1xf32> to vector<8x32xf32>
    %24 = arith.mulf %14, %23 : vector<8x32xf32>
    %c0_12 = arith.constant 0 : index
    %c0_13 = arith.constant 0 : index
    %25 = vector.load %arg4[%c0_12, %c0_13] : memref<1x32xf32, #tpu.memory_space<vmem>>, vector<1x32xf32>
    %26 = vector.broadcast %25 : vector<1x32xf32> to vector<8x32xf32>
    %27 = arith.mulf %24, %26 : vector<8x32xf32>
    %c0_14 = arith.constant 0 : index
    %c0_15 = arith.constant 0 : index
    %28 = vector.load %arg5[%c0_14, %c0_15] : memref<1x32xf32, #tpu.memory_space<vmem>>, vector<1x32xf32>
    %29 = vector.broadcast %28 : vector<1x32xf32> to vector<8x32xf32>
    %30 = arith.addf %27, %29 : vector<8x32xf32>
    %31 = arith.truncf %30 : vector<8x32xf32> to vector<8x32xbf16>
    %c0_16 = arith.constant 0 : index
    %c0_17 = arith.constant 0 : index
    %32 = vector.load %arg6[%c0_16, %c0_17] : memref<32x128xbf16, #tpu.memory_space<vmem>>, vector<32x128xbf16>
    %cst_18 = arith.constant dense<0.000000e+00> : vector<8x128xf32>
    %33 = tpu.matmul %31, %32, %cst_18 {dimension_numbers = #tpu.dot_dimension_numbers<[1], [0], [0], [1], [0, 0, 1, 1], [], []>} : vector<8x32xbf16>, vector<32x128xbf16>, vector<8x128xf32> -> vector<8x128xf32>
    %34 = vector.extract_strided_slice %33 {offsets = [0, 0], sizes = [8, 64], strides = [1, 1]} : vector<8x128xf32> to vector<8x64xf32>
    %35 = vector.extract_strided_slice %33 {offsets = [0, 64], sizes = [8, 64], strides = [1, 1]} : vector<8x128xf32> to vector<8x64xf32>
    %36 = arith.truncf %35 : vector<8x64xf32> to vector<8x64xbf16>
    %c0_19 = arith.constant 0 : index
    %c0_20 = arith.constant 0 : index
    %37 = vector.load %arg23[%c0_19, %c0_20] : memref<8x64xbf16, #tpu.memory_space<vmem>>, vector<8x64xbf16>
    tpu.vector_store %arg23[%c0_19, %c0_20], %36 {strides = array<i32>} : memref<8x64xbf16, #tpu.memory_space<vmem>>, vector<8x64xbf16>,
    %c0_i32 = arith.constant 0 : i32
    %38 = arith.cmpi eq, %arg1, %c0_i32 : i32
    %39 = arith.extui %38 : i1 to i32
    %c0_i32_21 = arith.constant 0 : i32
    %40 = arith.cmpi ne, %39, %c0_i32_21 : i32
    scf.if %40 {
      %cst_102 = arith.constant 0.000000e+00 : f32
      %236 = vector.broadcast %cst_102 : f32 to vector<1x16x64xf32>
      %c0_103 = arith.constant 0 : index
      %c0_104 = arith.constant 0 : index
      %c0_105 = arith.constant 0 : index
      %237 = vector.load %arg17[%c0_103, %c0_104, %c0_105] : memref<1x16x64xf32, #tpu.memory_space<vmem>>, vector<1x16x64xf32>
      tpu.vector_store %arg17[%c0_103, %c0_104, %c0_105], %236 {strides = array<i32>} : memref<1x16x64xf32, #tpu.memory_space<vmem>>, vector<1x16x64xf32>,
    } else {
    }
    %c0_i32_22 = arith.constant 0 : i32
    %41 = arith.cmpi eq, %arg1, %c0_i32_22 : i32
    %42 = arith.extui %41 : i1 to i32
    %c0_i32_23 = arith.constant 0 : i32
    %43 = arith.cmpi ne, %42, %c0_i32_23 : i32
    scf.if %43 {
      %cst_102 = arith.constant 0.000000e+00 : f32
      %236 = vector.broadcast %cst_102 : f32 to vector<8x64xf32>
      %c0_103 = arith.constant 0 : index
      %c0_104 = arith.constant 0 : index
      %237 = vector.load %arg18[%c0_103, %c0_104] : memref<16x64xf32, #tpu.memory_space<vmem>>, vector<8x64xf32>
      tpu.vector_store %arg18[%c0_103, %c0_104], %236 {strides = array<i32>} : memref<16x64xf32, #tpu.memory_space<vmem>>, vector<8x64xf32>,
    } else {
    }
    %c0_i32_24 = arith.constant 0 : i32
    %44 = arith.cmpi sgt, %arg1, %c0_i32_24 : i32
    %45 = arith.extui %44 : i1 to i32
    %c0_i32_25 = arith.constant 0 : i32
    %46 = arith.cmpi ne, %45, %c0_i32_25 : i32
    scf.if %46 {
      %c8_102 = arith.constant 8 : index
      %c0_103 = arith.constant 0 : index
      %236 = vector.load %arg18[%c8_102, %c0_103] : memref<16x64xf32, #tpu.memory_space<vmem>>, vector<8x64xf32>
      %c0_104 = arith.constant 0 : index
      %c0_105 = arith.constant 0 : index
      %237 = vector.load %arg18[%c0_104, %c0_105] : memref<16x64xf32, #tpu.memory_space<vmem>>, vector<8x64xf32>
      tpu.vector_store %arg18[%c0_104, %c0_105], %236 {strides = array<i32>} : memref<16x64xf32, #tpu.memory_space<vmem>>, vector<8x64xf32>,
    } else {
    }
    %c3 = arith.constant 3 : index
    %c0_26 = arith.constant 0 : index
    %47 = vector.load %arg7[%c3, %c0_26] : memref<4x64xf32, #tpu.memory_space<vmem>>, vector<1x64xf32>
    %48 = vector.broadcast %47 : vector<1x64xf32> to vector<8x64xf32>
    %49 = arith.mulf %48, %34 : vector<8x64xf32>
    %c8 = arith.constant 8 : index
    %c0_27 = arith.constant 0 : index
    %50 = vector.load %arg18[%c8, %c0_27] : memref<16x64xf32, #tpu.memory_space<vmem>>, vector<8x64xf32>
    tpu.vector_store %arg18[%c8, %c0_27], %34 {strides = array<i32>} : memref<16x64xf32, #tpu.memory_space<vmem>>, vector<8x64xf32>,
    %c0_28 = arith.constant 0 : index
    %c0_29 = arith.constant 0 : index
    %51 = vector.load %arg7[%c0_28, %c0_29] : memref<4x64xf32, #tpu.memory_space<vmem>>, vector<1x64xf32>
    %c5 = arith.constant 5 : index
    %c0_30 = arith.constant 0 : index
    %52 = vector.load %arg18[%c5, %c0_30] : memref<16x64xf32, #tpu.memory_space<vmem>>, vector<8x64xf32>
    %53 = vector.broadcast %51 : vector<1x64xf32> to vector<8x64xf32>
    %54 = arith.mulf %53, %52 : vector<8x64xf32>
    %55 = arith.addf %49, %54 : vector<8x64xf32>
    %c1 = arith.constant 1 : index
    %c0_31 = arith.constant 0 : index
    %56 = vector.load %arg7[%c1, %c0_31] : memref<4x64xf32, #tpu.memory_space<vmem>>, vector<1x64xf32>
    %c6 = arith.constant 6 : index
    %c0_32 = arith.constant 0 : index
    %57 = vector.load %arg18[%c6, %c0_32] : memref<16x64xf32, #tpu.memory_space<vmem>>, vector<8x64xf32>
    %58 = vector.broadcast %56 : vector<1x64xf32> to vector<8x64xf32>
    %59 = arith.mulf %58, %57 : vector<8x64xf32>
    %60 = arith.addf %55, %59 : vector<8x64xf32>
    %c2 = arith.constant 2 : index
    %c0_33 = arith.constant 0 : index
    %61 = vector.load %arg7[%c2, %c0_33] : memref<4x64xf32, #tpu.memory_space<vmem>>, vector<1x64xf32>
    %c7 = arith.constant 7 : index
    %c0_34 = arith.constant 0 : index
    %62 = vector.load %arg18[%c7, %c0_34] : memref<16x64xf32, #tpu.memory_space<vmem>>, vector<8x64xf32>
    %63 = vector.broadcast %61 : vector<1x64xf32> to vector<8x64xf32>
    %64 = arith.mulf %63, %62 : vector<8x64xf32>
    %65 = arith.addf %60, %64 : vector<8x64xf32>
    %c0_35 = arith.constant 0 : index
    %c0_36 = arith.constant 0 : index
    %66 = vector.load %arg8[%c0_35, %c0_36] : memref<1x64xf32, #tpu.memory_space<vmem>>, vector<1x64xf32>
    %67 = vector.broadcast %66 : vector<1x64xf32> to vector<8x64xf32>
    %68 = arith.addf %65, %67 : vector<8x64xf32>
    %69 = arith.negf %68 : vector<8x64xf32>
    %70 = math.exp %69 : vector<8x64xf32>
    %cst_37 = arith.constant 1.000000e+00 : f32
    %71 = vector.broadcast %cst_37 : f32 to vector<8x64xf32>
    %72 = arith.addf %71, %70 : vector<8x64xf32>
    %73 = arith.divf %71, %72 : vector<8x64xf32>
    %74 = arith.mulf %68, %73 : vector<8x64xf32>
    %75 = arith.truncf %74 : vector<8x64xf32> to vector<8x64xbf16>
    %c0_38 = arith.constant 0 : index
    %c0_39 = arith.constant 0 : index
    %76 = vector.load %arg9[%c0_38, %c0_39] : memref<64x34xbf16, #tpu.memory_space<vmem>>, vector<64x34xbf16>
    %cst_40 = arith.constant dense<0.000000e+00> : vector<8x34xf32>
    %77 = tpu.matmul %75, %76, %cst_40 {dimension_numbers = #tpu.dot_dimension_numbers<[1], [0], [0], [1], [0, 0, 1, 1], [], []>} : vector<8x64xbf16>, vector<64x34xbf16>, vector<8x34xf32> -> vector<8x34xf32>
    %78 = vector.extract_strided_slice %77 {offsets = [0, 0], sizes = [8, 32], strides = [1, 1]} : vector<8x34xf32> to vector<8x32xf32>
    %c0_41 = arith.constant 0 : index
    %c0_42 = arith.constant 0 : index
    %79 = vector.load %arg21[%c0_41, %c0_42] : memref<8x32xf32, #tpu.memory_space<vmem>>, vector<8x32xf32>
    tpu.vector_store %arg21[%c0_41, %c0_42], %78 {strides = array<i32>} : memref<8x32xf32, #tpu.memory_space<vmem>>, vector<8x32xf32>,
    %80 = vector.extract_strided_slice %77 {offsets = [0, 32], sizes = [8, 2], strides = [1, 1]} : vector<8x34xf32> to vector<8x2xf32>
    %81 = arith.truncf %80 : vector<8x2xf32> to vector<8x2xbf16>
    %c0_43 = arith.constant 0 : index
    %c0_44 = arith.constant 0 : index
    %82 = vector.load %arg10[%c0_43, %c0_44] : memref<2x64xbf16, #tpu.memory_space<vmem>>, vector<2x64xbf16>
    %cst_45 = arith.constant dense<0.000000e+00> : vector<8x64xf32>
    %83 = tpu.matmul %81, %82, %cst_45 {dimension_numbers = #tpu.dot_dimension_numbers<[1], [0], [0], [1], [0, 0, 1, 1], [], []>} : vector<8x2xbf16>, vector<2x64xbf16>, vector<8x64xf32> -> vector<8x64xf32>
    %c0_46 = arith.constant 0 : index
    %c0_47 = arith.constant 0 : index
    %84 = vector.load %arg11[%c0_46, %c0_47] : memref<1x64xf32, #tpu.memory_space<vmem>>, vector<1x64xf32>
    %85 = vector.broadcast %84 : vector<1x64xf32> to vector<8x64xf32>
    %86 = arith.addf %83, %85 : vector<8x64xf32>
    %cst_48 = arith.constant 2.000000e+01 : f32
    %87 = vector.broadcast %cst_48 : f32 to vector<8x64xf32>
    %88 = arith.cmpf ogt, %86, %87 : vector<8x64xf32>
    %cst_49 = arith.constant 2.000000e+01 : f32
    %89 = vector.broadcast %cst_49 : f32 to vector<8x64xf32>
    %90 = arith.minimumf %86, %89 : vector<8x64xf32>
    %91 = math.exp %90 : vector<8x64xf32>
    %92 = math.log1p %91 : vector<8x64xf32>
    %93 = arith.select %88, %86, %92 : vector<8x64xi1>, vector<8x64xf32>
    %c0_50 = arith.constant 0 : index
    %c0_51 = arith.constant 0 : index
    %94 = vector.load %arg19[%c0_50, %c0_51] : memref<8x64xf32, #tpu.memory_space<vmem>>, vector<8x64xf32>
    tpu.vector_store %arg19[%c0_50, %c0_51], %93 {strides = array<i32>} : memref<8x64xf32, #tpu.memory_space<vmem>>, vector<8x64xf32>,
    %c0_52 = arith.constant 0 : index
    %c0_53 = arith.constant 0 : index
    %95 = vector.load %arg20[%c0_52, %c0_53] : memref<8x64xf32, #tpu.memory_space<vmem>>, vector<8x64xf32>
    tpu.vector_store %arg20[%c0_52, %c0_53], %74 {strides = array<i32>} : memref<8x64xf32, #tpu.memory_space<vmem>>, vector<8x64xf32>,
    %c0_54 = arith.constant 0 : index
    %c0_55 = arith.constant 0 : index
    %96 = vector.load %arg12[%c0_54, %c0_55] : memref<16x64xf32, #tpu.memory_space<vmem>>, vector<16x64xf32>
    %97 = tpu.iota {dimensions = array<i32: 0>} : vector<128x8xi32>
    %98 = tpu.iota {dimensions = array<i32: 1>} : vector<128x8xi32>
    %c16_i32 = arith.constant 16 : i32
    %99 = vector.broadcast %c16_i32 : i32 to vector<128x8xi32>
    %100 = arith.muli %98, %99 : vector<128x8xi32>
    %101 = arith.cmpi sge, %97, %100 : vector<128x8xi32>
    %c1_i32 = arith.constant 1 : i32
    %102 = vector.broadcast %c1_i32 : i32 to vector<128x8xi32>
    %103 = arith.addi %98, %102 : vector<128x8xi32>
    %c16_i32_56 = arith.constant 16 : i32
    %104 = vector.broadcast %c16_i32_56 : i32 to vector<128x8xi32>
    %105 = arith.muli %103, %104 : vector<128x8xi32>
    %106 = arith.cmpi slt, %97, %105 : vector<128x8xi32>
    %107 = arith.andi %101, %106 : vector<128x8xi1>
    %108 = tpu.iota {dimensions = array<i32: 0>} : vector<8x128xi32>
    %109 = tpu.iota {dimensions = array<i32: 1>} : vector<8x128xi32>
    %c16_i32_57 = arith.constant 16 : i32
    %110 = vector.broadcast %c16_i32_57 : i32 to vector<8x128xi32>
    %111 = arith.muli %108, %110 : vector<8x128xi32>
    %112 = arith.cmpi sge, %109, %111 : vector<8x128xi32>
    %c1_i32_58 = arith.constant 1 : i32
    %113 = vector.broadcast %c1_i32_58 : i32 to vector<8x128xi32>
    %114 = arith.addi %108, %113 : vector<8x128xi32>
    %c16_i32_59 = arith.constant 16 : i32
    %115 = vector.broadcast %c16_i32_59 : i32 to vector<8x128xi32>
    %116 = arith.muli %114, %115 : vector<8x128xi32>
    %117 = arith.cmpi slt, %109, %116 : vector<8x128xi32>
    %118 = arith.andi %112, %117 : vector<8x128xi1>
    %c0_60 = arith.constant 0 : index
    %c0_61 = arith.constant 0 : index
    %c0_62 = arith.constant 0 : index
    %119 = vector.load %arg17[%c0_60, %c0_61, %c0_62] : memref<1x16x64xf32, #tpu.memory_space<vmem>>, vector<1x16x64xf32>
    %120 = vector.shape_cast %119 : vector<1x16x64xf32> to vector<16x64xf32>
    %c0_i32_63 = arith.constant 0 : i32
    %c8_i32 = arith.constant 8 : i32
    %121 = arith.muli %c0_i32_63, %c8_i32 : i32
    %122 = tpu.assume_multiple %121, 8 : i32
    %123 = arith.index_cast %122 : i32 to index
    %c0_64 = arith.constant 0 : index
    %124 = vector.load %arg19[%123, %c0_64] : memref<8x64xf32, #tpu.memory_space<vmem>>, vector<8x64xf32>
    %125 = arith.index_cast %122 : i32 to index
    %c0_65 = arith.constant 0 : index
    %126 = vector.load %arg20[%125, %c0_65] : memref<8x64xf32, #tpu.memory_space<vmem>>, vector<8x64xf32>
    %127 = arith.index_cast %122 : i32 to index
    %c0_66 = arith.constant 0 : index
    %128 = vector.load %arg21[%127, %c0_66] : memref<8x32xf32, #tpu.memory_space<vmem>>, vector<8x32xf32>
    %129 = vector.extract_strided_slice %128 {offsets = [0, 0], sizes = [8, 16], strides = [1, 1]} : vector<8x32xf32> to vector<8x16xf32>
    %130 = vector.extract_strided_slice %128 {offsets = [0, 16], sizes = [8, 16], strides = [1, 1]} : vector<8x32xf32> to vector<8x16xf32>
    %131 = arith.mulf %124, %126 : vector<8x64xf32>
    %132 = arith.truncf %131 : vector<8x64xf32> to vector<8x64xbf16>
    %133 = vector.shape_cast %124 : vector<8x64xf32> to vector<8x1x64xf32>
    %134 = vector.shape_cast %96 : vector<16x64xf32> to vector<1x16x64xf32>
    %135 = vector.broadcast %133 : vector<8x1x64xf32> to vector<8x16x64xf32>
    %136 = vector.broadcast %134 : vector<1x16x64xf32> to vector<8x16x64xf32>
    %137 = arith.mulf %135, %136 : vector<8x16x64xf32>
    %138 = math.exp %137 : vector<8x16x64xf32>
    %139 = tpu.transpose %129, [1, 0] : vector<8x16xf32> -> vector<16x8xf32>
    %140 = tpu.concatenate %139, %139, %139, %139, %139, %139, %139, %139 in 0 : vector<16x8xf32>, vector<16x8xf32>, vector<16x8xf32>, vector<16x8xf32>, vector<16x8xf32>, vector<16x8xf32>, vector<16x8xf32>, vector<16x8xf32> -> vector<128x8xf32>
    %cst_67 = arith.constant 0.000000e+00 : f32
    %141 = vector.broadcast %cst_67 : f32 to vector<128x8xf32>
    %142 = arith.select %107, %140, %141 : vector<128x8xi1>, vector<128x8xf32>
    %143 = arith.truncf %142 : vector<128x8xf32> to vector<128x8xbf16>
    %cst_68 = arith.constant dense<0.000000e+00> : vector<128x64xf32>
    %144 = tpu.matmul %143, %132, %cst_68 {dimension_numbers = #tpu.dot_dimension_numbers<[1], [0], [0], [1], [0, 0, 1, 1], [], []>} : vector<128x8xbf16>, vector<8x64xbf16>, vector<128x64xf32> -> vector<128x64xf32>
    %145 = vector.extract_strided_slice %138 {offsets = [0, 0, 0], sizes = [1, 16, 64], strides = [1, 1, 1]} : vector<8x16x64xf32> to vector<1x16x64xf32>
    %146 = vector.shape_cast %145 : vector<1x16x64xf32> to vector<16x64xf32>
    %147 = arith.mulf %146, %120 : vector<16x64xf32>
    %148 = vector.extract_strided_slice %144 {offsets = [0, 0], sizes = [16, 64], strides = [1, 1]} : vector<128x64xf32> to vector<16x64xf32>
    %149 = arith.addf %147, %148 : vector<16x64xf32>
    %150 = arith.truncf %149 : vector<16x64xf32> to vector<16x64xbf16>
    %c0_69 = arith.constant 0 : index
    %c0_70 = arith.constant 0 : index
    %151 = vector.load %arg24[%c0_69, %c0_70] : memref<128x64xbf16, #tpu.memory_space<vmem>>, vector<16x64xbf16>
    tpu.vector_store %arg24[%c0_69, %c0_70], %150 {strides = array<i32>} : memref<128x64xbf16, #tpu.memory_space<vmem>>, vector<16x64xbf16>,
    %152 = vector.extract_strided_slice %138 {offsets = [1, 0, 0], sizes = [1, 16, 64], strides = [1, 1, 1]} : vector<8x16x64xf32> to vector<1x16x64xf32>
    %153 = vector.shape_cast %152 : vector<1x16x64xf32> to vector<16x64xf32>
    %154 = arith.mulf %153, %149 : vector<16x64xf32>
    %155 = vector.extract_strided_slice %144 {offsets = [16, 0], sizes = [16, 64], strides = [1, 1]} : vector<128x64xf32> to vector<16x64xf32>
    %156 = arith.addf %154, %155 : vector<16x64xf32>
    %157 = arith.truncf %156 : vector<16x64xf32> to vector<16x64xbf16>
    %c16 = arith.constant 16 : index
    %c0_71 = arith.constant 0 : index
    %158 = vector.load %arg24[%c16, %c0_71] : memref<128x64xbf16, #tpu.memory_space<vmem>>, vector<16x64xbf16>
    tpu.vector_store %arg24[%c16, %c0_71], %157 {strides = array<i32>} : memref<128x64xbf16, #tpu.memory_space<vmem>>, vector<16x64xbf16>,
    %159 = vector.extract_strided_slice %138 {offsets = [2, 0, 0], sizes = [1, 16, 64], strides = [1, 1, 1]} : vector<8x16x64xf32> to vector<1x16x64xf32>
    %160 = vector.shape_cast %159 : vector<1x16x64xf32> to vector<16x64xf32>
    %161 = arith.mulf %160, %156 : vector<16x64xf32>
    %162 = vector.extract_strided_slice %144 {offsets = [32, 0], sizes = [16, 64], strides = [1, 1]} : vector<128x64xf32> to vector<16x64xf32>
    %163 = arith.addf %161, %162 : vector<16x64xf32>
    %164 = arith.truncf %163 : vector<16x64xf32> to vector<16x64xbf16>
    %c32 = arith.constant 32 : index
    %c0_72 = arith.constant 0 : index
    %165 = vector.load %arg24[%c32, %c0_72] : memref<128x64xbf16, #tpu.memory_space<vmem>>, vector<16x64xbf16>
    tpu.vector_store %arg24[%c32, %c0_72], %164 {strides = array<i32>} : memref<128x64xbf16, #tpu.memory_space<vmem>>, vector<16x64xbf16>,
    %166 = vector.extract_strided_slice %138 {offsets = [3, 0, 0], sizes = [1, 16, 64], strides = [1, 1, 1]} : vector<8x16x64xf32> to vector<1x16x64xf32>
    %167 = vector.shape_cast %166 : vector<1x16x64xf32> to vector<16x64xf32>
    %168 = arith.mulf %167, %163 : vector<16x64xf32>
    %169 = vector.extract_strided_slice %144 {offsets = [48, 0], sizes = [16, 64], strides = [1, 1]} : vector<128x64xf32> to vector<16x64xf32>
    %170 = arith.addf %168, %169 : vector<16x64xf32>
    %171 = arith.truncf %170 : vector<16x64xf32> to vector<16x64xbf16>
    %c48 = arith.constant 48 : index
    %c0_73 = arith.constant 0 : index
    %172 = vector.load %arg24[%c48, %c0_73] : memref<128x64xbf16, #tpu.memory_space<vmem>>, vector<16x64xbf16>
    tpu.vector_store %arg24[%c48, %c0_73], %171 {strides = array<i32>} : memref<128x64xbf16, #tpu.memory_space<vmem>>, vector<16x64xbf16>,
    %173 = vector.extract_strided_slice %138 {offsets = [4, 0, 0], sizes = [1, 16, 64], strides = [1, 1, 1]} : vector<8x16x64xf32> to vector<1x16x64xf32>
    %174 = vector.shape_cast %173 : vector<1x16x64xf32> to vector<16x64xf32>
    %175 = arith.mulf %174, %170 : vector<16x64xf32>
    %176 = vector.extract_strided_slice %144 {offsets = [64, 0], sizes = [16, 64], strides = [1, 1]} : vector<128x64xf32> to vector<16x64xf32>
    %177 = arith.addf %175, %176 : vector<16x64xf32>
    %178 = arith.truncf %177 : vector<16x64xf32> to vector<16x64xbf16>
    %c64 = arith.constant 64 : index
    %c0_74 = arith.constant 0 : index
    %179 = vector.load %arg24[%c64, %c0_74] : memref<128x64xbf16, #tpu.memory_space<vmem>>, vector<16x64xbf16>
    tpu.vector_store %arg24[%c64, %c0_74], %178 {strides = array<i32>} : memref<128x64xbf16, #tpu.memory_space<vmem>>, vector<16x64xbf16>,
    %180 = vector.extract_strided_slice %138 {offsets = [5, 0, 0], sizes = [1, 16, 64], strides = [1, 1, 1]} : vector<8x16x64xf32> to vector<1x16x64xf32>
    %181 = vector.shape_cast %180 : vector<1x16x64xf32> to vector<16x64xf32>
    %182 = arith.mulf %181, %177 : vector<16x64xf32>
    %183 = vector.extract_strided_slice %144 {offsets = [80, 0], sizes = [16, 64], strides = [1, 1]} : vector<128x64xf32> to vector<16x64xf32>
    %184 = arith.addf %182, %183 : vector<16x64xf32>
    %185 = arith.truncf %184 : vector<16x64xf32> to vector<16x64xbf16>
    %c80 = arith.constant 80 : index
    %c0_75 = arith.constant 0 : index
    %186 = vector.load %arg24[%c80, %c0_75] : memref<128x64xbf16, #tpu.memory_space<vmem>>, vector<16x64xbf16>
    tpu.vector_store %arg24[%c80, %c0_75], %185 {strides = array<i32>} : memref<128x64xbf16, #tpu.memory_space<vmem>>, vector<16x64xbf16>,
    %187 = vector.extract_strided_slice %138 {offsets = [6, 0, 0], sizes = [1, 16, 64], strides = [1, 1, 1]} : vector<8x16x64xf32> to vector<1x16x64xf32>
    %188 = vector.shape_cast %187 : vector<1x16x64xf32> to vector<16x64xf32>
    %189 = arith.mulf %188, %184 : vector<16x64xf32>
    %190 = vector.extract_strided_slice %144 {offsets = [96, 0], sizes = [16, 64], strides = [1, 1]} : vector<128x64xf32> to vector<16x64xf32>
    %191 = arith.addf %189, %190 : vector<16x64xf32>
    %192 = arith.truncf %191 : vector<16x64xf32> to vector<16x64xbf16>
    %c96 = arith.constant 96 : index
    %c0_76 = arith.constant 0 : index
    %193 = vector.load %arg24[%c96, %c0_76] : memref<128x64xbf16, #tpu.memory_space<vmem>>, vector<16x64xbf16>
    tpu.vector_store %arg24[%c96, %c0_76], %192 {strides = array<i32>} : memref<128x64xbf16, #tpu.memory_space<vmem>>, vector<16x64xbf16>,
    %194 = vector.extract_strided_slice %138 {offsets = [7, 0, 0], sizes = [1, 16, 64], strides = [1, 1, 1]} : vector<8x16x64xf32> to vector<1x16x64xf32>
    %195 = vector.shape_cast %194 : vector<1x16x64xf32> to vector<16x64xf32>
    %196 = arith.mulf %195, %191 : vector<16x64xf32>
    %197 = vector.extract_strided_slice %144 {offsets = [112, 0], sizes = [16, 64], strides = [1, 1]} : vector<128x64xf32> to vector<16x64xf32>
    %198 = arith.addf %196, %197 : vector<16x64xf32>
    %199 = arith.truncf %198 : vector<16x64xf32> to vector<16x64xbf16>
    %c112 = arith.constant 112 : index
    %c0_77 = arith.constant 0 : index
    %200 = vector.load %arg24[%c112, %c0_77] : memref<128x64xbf16, #tpu.memory_space<vmem>>, vector<16x64xbf16>
    tpu.vector_store %arg24[%c112, %c0_77], %199 {strides = array<i32>} : memref<128x64xbf16, #tpu.memory_space<vmem>>, vector<16x64xbf16>,
    %201 = tpu.concatenate %130, %130, %130, %130, %130, %130, %130, %130 in 1 : vector<8x16xf32>, vector<8x16xf32>, vector<8x16xf32>, vector<8x16xf32>, vector<8x16xf32>, vector<8x16xf32>, vector<8x16xf32>, vector<8x16xf32> -> vector<8x128xf32>
    %cst_78 = arith.constant 0.000000e+00 : f32
    %202 = vector.broadcast %cst_78 : f32 to vector<8x128xf32>
    %203 = arith.select %118, %201, %202 : vector<8x128xi1>, vector<8x128xf32>
    %204 = arith.truncf %203 : vector<8x128xf32> to vector<8x128xbf16>
    %c0_79 = arith.constant 0 : index
    %c0_80 = arith.constant 0 : index
    %205 = vector.load %arg24[%c0_79, %c0_80] : memref<128x64xbf16, #tpu.memory_space<vmem>>, vector<128x64xbf16>
    %cst_81 = arith.constant dense<0.000000e+00> : vector<8x64xf32>
    %206 = tpu.matmul %204, %205, %cst_81 {dimension_numbers = #tpu.dot_dimension_numbers<[1], [0], [0], [1], [0, 0, 1, 1], [], []>} : vector<8x128xbf16>, vector<128x64xbf16>, vector<8x64xf32> -> vector<8x64xf32>
    %207 = arith.truncf %206 : vector<8x64xf32> to vector<8x64xbf16>
    %208 = arith.index_cast %122 : i32 to index
    %c0_82 = arith.constant 0 : index
    %209 = vector.load %arg22[%208, %c0_82] : memref<8x64xbf16, #tpu.memory_space<vmem>>, vector<8x64xbf16>
    tpu.vector_store %arg22[%208, %c0_82], %207 {strides = array<i32>} : memref<8x64xbf16, #tpu.memory_space<vmem>>, vector<8x64xbf16>,
    %c1_i32_83 = arith.constant 1 : i32
    %c0_84 = arith.constant 0 : index
    %c0_85 = arith.constant 0 : index
    %c0_86 = arith.constant 0 : index
    %210 = vector.load %arg17[%c0_84, %c0_85, %c0_86] : memref<1x16x64xf32, #tpu.memory_space<vmem>>, vector<1x16x64xf32>
    %211 = vector.shape_cast %210 : vector<1x16x64xf32> to vector<16x64xf32>
    %212 = vector.shape_cast %198 : vector<16x64xf32> to vector<1x16x64xf32>
    tpu.vector_store %arg17[%c0_84, %c0_85, %c0_86], %212 {strides = array<i32>} : memref<1x16x64xf32, #tpu.memory_space<vmem>>, vector<1x16x64xf32>,
    %c0_87 = arith.constant 0 : index
    %c0_88 = arith.constant 0 : index
    %213 = vector.load %arg22[%c0_87, %c0_88] : memref<8x64xbf16, #tpu.memory_space<vmem>>, vector<8x64xbf16>
    %214 = arith.extf %213 : vector<8x64xbf16> to vector<8x64xf32>
    %c0_89 = arith.constant 0 : index
    %c0_90 = arith.constant 0 : index
    %215 = vector.load %arg20[%c0_89, %c0_90] : memref<8x64xf32, #tpu.memory_space<vmem>>, vector<8x64xf32>
    %c0_91 = arith.constant 0 : index
    %c0_92 = arith.constant 0 : index
    %216 = vector.load %arg13[%c0_91, %c0_92] : memref<1x64xf32, #tpu.memory_space<vmem>>, vector<1x64xf32>
    %217 = vector.broadcast %216 : vector<1x64xf32> to vector<8x64xf32>
    %218 = arith.mulf %215, %217 : vector<8x64xf32>
    %219 = arith.addf %214, %218 : vector<8x64xf32>
    %c0_93 = arith.constant 0 : index
    %c0_94 = arith.constant 0 : index
    %220 = vector.load %arg23[%c0_93, %c0_94] : memref<8x64xbf16, #tpu.memory_space<vmem>>, vector<8x64xbf16>
    %221 = arith.extf %220 : vector<8x64xbf16> to vector<8x64xf32>
    %222 = arith.negf %221 : vector<8x64xf32>
    %223 = math.exp %222 : vector<8x64xf32>
    %cst_95 = arith.constant 1.000000e+00 : f32
    %224 = vector.broadcast %cst_95 : f32 to vector<8x64xf32>
    %225 = arith.addf %224, %223 : vector<8x64xf32>
    %226 = arith.divf %224, %225 : vector<8x64xf32>
    %227 = arith.mulf %221, %226 : vector<8x64xf32>
    %228 = arith.mulf %219, %227 : vector<8x64xf32>
    %229 = arith.truncf %228 : vector<8x64xf32> to vector<8x64xbf16>
    %c0_96 = arith.constant 0 : index
    %c0_97 = arith.constant 0 : index
    %230 = vector.load %arg14[%c0_96, %c0_97] : memref<64x32xbf16, #tpu.memory_space<vmem>>, vector<64x32xbf16>
    %cst_98 = arith.constant dense<0.000000e+00> : vector<8x32xf32>
    %231 = tpu.matmul %229, %230, %cst_98 {dimension_numbers = #tpu.dot_dimension_numbers<[1], [0], [0], [1], [0, 0, 1, 1], [], []>} : vector<8x64xbf16>, vector<64x32xbf16>, vector<8x32xf32> -> vector<8x32xf32>
    %232 = arith.truncf %231 : vector<8x32xf32> to vector<8x32xbf16>
    %c0_99 = arith.constant 0 : index
    %c0_100 = arith.constant 0 : index
    %c0_101 = arith.constant 0 : index
    %233 = vector.load %arg15[%c0_99, %c0_100, %c0_101] : memref<1x8x32xbf16, #tpu.memory_space<vmem>>, vector<1x8x32xbf16>
    %234 = vector.shape_cast %233 : vector<1x8x32xbf16> to vector<8x32xbf16>
    %235 = vector.shape_cast %232 : vector<8x32xbf16> to vector<1x8x32xbf16>
    tpu.vector_store %arg15[%c0_99, %c0_100, %c0_101], %235 {strides = array<i32>} : memref<1x8x32xbf16, #tpu.memory_space<vmem>>, vector<1x8x32xbf16>,
    return
  }
  func.func @transform_0(%arg0: i32, %arg1: i32) -> (i32, i32, i32) {
    %c0_i32 = arith.constant 0 : i32
    %c0_i32_0 = arith.constant 0 : i32
    return %arg0, %arg1, %c0_i32 : i32, i32, i32
  }
  func.func @transform_1(%arg0: i32, %arg1: i32) -> (i32, i32, i32) {
    %c0_i32 = arith.constant 0 : i32
    %c0_i32_0 = arith.constant 0 : i32
    return %arg0, %arg1, %c0_i32 : i32, i32, i32
  }
  func.func @transform_2(%arg0: i32, %arg1: i32) -> (i32, i32) {
    %c0_i32 = arith.constant 0 : i32
    %c0_i32_0 = arith.constant 0 : i32
    %c0_i32_1 = arith.constant 0 : i32
    return %c0_i32, %c0_i32_0 : i32, i32
  }
  func.func @transform_3(%arg0: i32, %arg1: i32) -> (i32, i32) {
    %c0_i32 = arith.constant 0 : i32
    %c0_i32_0 = arith.constant 0 : i32
    %c0_i32_1 = arith.constant 0 : i32
    return %c0_i32, %c0_i32_0 : i32, i32
  }
  func.func @transform_4(%arg0: i32, %arg1: i32) -> (i32, i32) {
    %c0_i32 = arith.constant 0 : i32
    %c0_i32_0 = arith.constant 0 : i32
    %c0_i32_1 = arith.constant 0 : i32
    return %c0_i32, %c0_i32_0 : i32, i32
  }
  func.func @transform_5(%arg0: i32, %arg1: i32) -> (i32, i32) {
    %c0_i32 = arith.constant 0 : i32
    %c0_i32_0 = arith.constant 0 : i32
    %c0_i32_1 = arith.constant 0 : i32
    return %c0_i32, %c0_i32_0 : i32, i32
  }
  func.func @transform_6(%arg0: i32, %arg1: i32) -> (i32, i32) {
    %c0_i32 = arith.constant 0 : i32
    %c0_i32_0 = arith.constant 0 : i32
    %c0_i32_1 = arith.constant 0 : i32
    return %c0_i32, %c0_i32_0 : i32, i32
  }
  func.func @transform_7(%arg0: i32, %arg1: i32) -> (i32, i32) {
    %c0_i32 = arith.constant 0 : i32
    %c0_i32_0 = arith.constant 0 : i32
    %c0_i32_1 = arith.constant 0 : i32
    return %c0_i32, %c0_i32_0 : i32, i32
  }
  func.func @transform_8(%arg0: i32, %arg1: i32) -> (i32, i32) {
    %c0_i32 = arith.constant 0 : i32
    %c0_i32_0 = arith.constant 0 : i32
    %c0_i32_1 = arith.constant 0 : i32
    return %c0_i32, %c0_i32_0 : i32, i32
  }
  func.func @transform_9(%arg0: i32, %arg1: i32) -> (i32, i32) {
    %c0_i32 = arith.constant 0 : i32
    %c0_i32_0 = arith.constant 0 : i32
    %c0_i32_1 = arith.constant 0 : i32
    return %c0_i32, %c0_i32_0 : i32, i32
  }
  func.func @transform_10(%arg0: i32, %arg1: i32) -> (i32, i32) {
    %c0_i32 = arith.constant 0 : i32
    %c0_i32_0 = arith.constant 0 : i32
    %c0_i32_1 = arith.constant 0 : i32
    return %c0_i32, %c0_i32_0 : i32, i32
  }
  func.func @transform_11(%arg0: i32, %arg1: i32) -> (i32, i32) {
    %c0_i32 = arith.constant 0 : i32
    %c0_i32_0 = arith.constant 0 : i32
    %c0_i32_1 = arith.constant 0 : i32
    return %c0_i32, %c0_i32_0 : i32, i32
  }
  func.func @transform_12(%arg0: i32, %arg1: i32) -> (i32, i32) {
    %c0_i32 = arith.constant 0 : i32
    %c0_i32_0 = arith.constant 0 : i32
    %c0_i32_1 = arith.constant 0 : i32
    return %c0_i32, %c0_i32_0 : i32, i32
  }
  func.func @transform_13(%arg0: i32, %arg1: i32) -> (i32, i32, i32) {
    %c0_i32 = arith.constant 0 : i32
    %c0_i32_0 = arith.constant 0 : i32
    return %arg0, %arg1, %c0_i32 : i32, i32, i32
  }
  func.func @transform_14(%arg0: i32, %arg1: i32) -> (i32, i32, i32) {
    %c0_i32 = arith.constant 0 : i32
    %c0_i32_0 = arith.constant 0 : i32
    return %arg0, %arg1, %c0_i32 : i32, i32, i32
  }
  func.func @transform_15(%arg0: i32, %arg1: i32) -> (i32, i32, i32) {
    %c0_i32 = arith.constant 0 : i32
    %c0_i32_0 = arith.constant 0 : i32
    %c0_i32_1 = arith.constant 0 : i32
    return %arg0, %c0_i32, %c0_i32_0 : i32, i32, i32
  }
}

</mosaic_0001>

<bundles_post_ra>
// kernel: mamba_embed_forward.11
= control target key start
LH: loop header
LB: loop body
LE: loop exit
PB: predicated region body
PF: predicated region fallthrough
CT: control target
= control target key end

     0   :  { %vm33_vm0 = vcmask 261120   ;;  %v198_v20 = vmov 0.0   ;;  %vm199_vm1 = vmmov 0   ;;  %vm87_vm2 = vcmask 257024   ;;  %s262_s0 = inlined_call_operand.vmem [shape: bf16[16,32], index: 0, kind: input, shape index: {}]   ;;  %s263_s1 = inlined_call_operand.vmem [shape: f32[16,32], index: 1, kind: input, shape index: {}]   ;;  %s264_s4 = inlined_call_operand.vmem [shape: bf16[32,128], index: 4, kind: input, shape index: {}]   ;;  %s265_s2 = inlined_call_operand.vmem [shape: f32[1,32], index: 2, kind: input, shape index: {}]   ;;  %s266_s3 = inlined_call_operand.vmem [shape: f32[1,32], index: 3, kind: input, shape index: {}]   ;;  %s267_s5 = inlined_call_operand.vmem [shape: f32[16,128], index: 5, kind: output, shape index: {}]  }
   0x1   :  { %v175_v0 = vld [vmem:[%s262_s0] sm:$0xff]   ;;  %v30_v2 = vld [vmem:[%s263_s1 + $0x8] sm:$0xff]  ;;  %181 = vmatprep.subr.bf16.mxu0 %v198_v20  ;;  %185 = vmatprep.mubr.msk.bf16.mxu0 %vm199_vm1, %v198_v20 }
   0x2   :  { %v29_v1 = vld [vmem:[%s263_s1] sm:$0xff]  ;;  %v176_v3 = vunpack.c.l.bf16 %v175_v0  ;;  %v177_v4 = vunpack.c.h.bf16 %v175_v0  ;;  %v191_v19 = vld [vmem:[%s264_s4 + $0x8] sm:$0xff]  }
   0x3   :  { %182 = vmatpush3.bf16.msra.mxu0 %v191_v19  ;;  %v192_v21 = vld [vmem:[%s264_s4] sm:$0xff]  }
   0x4   :  { %v31_v5 = vadd.f32 %v176_v3, %v29_v1  ;;  %v32_v6 = vadd.f32 %v177_v4, %v30_v2  ;;  %183 = vmatprep.subr.bf16.mxu0 %v198_v20  ;;  %v164_v29 = vld [vmem:[%s265_s2] ss:$0 sm:$0xff] }
   0x5   :  { %v165_v31 = vld [vmem:[%s266_s3] ss:$0 sm:$0xff] }
   0x6   :  { %v34_v7 = vsel %vm33_vm0, %v31_v5, 0.0  ;;  %v37_v8 = vsel %vm33_vm0, %v32_v6, 0.0 }
   0x7   :  { %35 = vadd.xlane.f32.xlu0 %v34_v7  ;;  %184 = vmatpush3.bf16.msra.mxu0 %v192_v21 }
   0xb   :  { %38 = vadd.xlane.f32.xlu0 %v37_v8 }
  0x90   :  { %v36_v9 = vpop.xlane.xlu0 %35 }
  0x91   :  { %v41_v10 = vmul.f32 0.03125, %v36_v9 }
  0x93   :  { %v43_v11 = vsub.f32 %v31_v5, %v41_v10 }
  0x94   :  { %v39_v12 = vpop.xlane.xlu0 %38 }
  0x95   :  { %v42_v13 = vmul.f32 0.03125, %v39_v12  ;;  %v45_v14 = vmul.f32 %v43_v11, %v43_v11 }
  0x97   :  { %v44_v15 = vsub.f32 %v32_v6, %v42_v13  ;;  %v47_v16 = vsel %vm33_vm0, %v45_v14, 0.0 }
  0x98   :  { %48 = vadd.xlane.f32.xlu1 %v47_v16 }
  0x99   :  { %v46_v17 = vmul.f32 %v44_v15, %v44_v15 }
  0x9b   :  { %v50_v18 = vsel %vm33_vm0, %v46_v17, 0.0 }
  0x9c   :  { %51 = vadd.xlane.f32.xlu1 %v50_v18 }
 0x121   :  { %v49_v22 = vpop.xlane.xlu1 %48 }
 0x122   :  { %v53_v23 = vmul.f32 0.03125, %v49_v22 }
 0x124   :  { %v55_v24 = vadd.f32 1e-05, %v53_v23 }
 0x125   :  { %v52_v25 = vpop.xlane.xlu1 %51 }
 0x126   :  { %194 = vrsqrt.f32 %v55_v24  ;;  %v54_v26 = vmul.f32 0.03125, %v52_v25 }
 0x128   :  { %v56_v27 = vadd.f32 1e-05, %v54_v26 }
 0x12a   :  { %196 = vrsqrt.f32 %v56_v27 }
 0x133   :  { %v195_v28 = vpop.eup %194 }
 0x134   :  { %v59_v30 = vmul.f32 %v195_v28, %v43_v11 }
 0x136   :  { %v68_v32 = vmul.f32 %v164_v29, %v59_v30 }
 0x137   :  { %v197_v33 = vpop.eup %196 }
 0x138   :  { %v77_v34 = vadd.f32 %v165_v31, %v68_v32  ;;  %v60_v35 = vmul.f32 %v197_v33, %v44_v15 }
 0x13a   :  { %v172_v36 = vpack.c.bf16 %v77_v34, %v77_v34  ;;  %v69_v37 = vmul.f32 %v164_v29, %v60_v35 }
 0x13c   :  { %88 = vst.msk [vmem:[#allocation2] sm:$0xf] %vm87_vm2, %v172_v36  ;;  %v78_v38 = vadd.f32 %v165_v31, %v69_v37 }
 0x13e   :  { %v173_v39 = vpack.c.bf16 %v78_v38, %v78_v38 }
 0x140   :  { %89 = vst.msk [vmem:[#allocation2 + $0x4] sm:$0xf] %vm87_vm2, %v173_v39 }
 0x147   :  { %v193_v40 = vld [vmem:[#allocation2] sm:$0xff]  }
 0x148   :  { %186 = vmatmul.mubr.msk.bf16.vlgmr.msra.gmra.mxu0 %vm33_vm0, %v193_v40 }
 0x208   :  { %v151_v41 = vpop.f32.mrf.mxu0 }
 0x209   :  { %158 = vst [vmem:[%s267_s5] sm:$0xff] %v151_v41 }
 0x20a   :  { %v187_v42 = vpop.f32.mrf.mxu0 }
 0x20c   :  { %v154_v43 = vpop.f32.mrf.mxu0 }
 0x20d   :  { %159 = vst [vmem:[%s267_s5 + $0x8] sm:$0xff] %v154_v43 }
 0x20e   :  { %v188_v44 = vpop.f32.mrf.mxu0 }

// kernel: mamba_embed_forward.7
= control target key start
LH: loop header
LB: loop body
LE: loop exit
PB: predicated region body
PF: predicated region fallthrough
CT: control target
= control target key end

     0   :  { %s2759_s0 = inlined_call_operand.vmem [shape: bf16[2,8,32], index: 0, kind: input, shape index: {}]   ;;  %s2760_s1 = inlined_call_operand.vmem [shape: f32[2,8,32], index: 1, kind: input, shape index: {}]   ;;  %s2761_s2 = inlined_call_operand.vmem [shape: f32[1,32], index: 2, kind: input, shape index: {}]   ;;  %s2762_s3 = inlined_call_operand.vmem [shape: f32[1,32], index: 3, kind: input, shape index: {}]   ;;  %s2763_s4 = inlined_call_operand.vmem [shape: bf16[32,128], index: 4, kind: input, shape index: {}]   ;;  %s2764_s5 = inlined_call_operand.vmem [shape: f32[4,64], index: 5, kind: input, shape index: {}]   ;;  %s2765_s6 = inlined_call_operand.vmem [shape: f32[1,64], index: 6, kind: input, shape index: {}]   ;;  %s2766_s7 = inlined_call_operand.vmem [shape: bf16[64,34], index: 7, kind: input, shape index: {}]   ;;  %s2767_s8 = inlined_call_operand.vmem [shape: bf16[2,64], index: 8, kind: input, shape index: {}]   ;;  %s2768_s9 = inlined_call_operand.vmem [shape: f32[1,64], index: 9, kind: input, shape index: {}]   ;;  %s2769_s10 = inlined_call_operand.vmem [shape: f32[16,64], index: 10, kind: input, shape index: {}]   ;;  %s2770_s11 = inlined_call_operand.vmem [shape: f32[1,64], index: 11, kind: input, shape index: {}]   ;;  %s2771_s12 = inlined_call_operand.vmem [shape: bf16[64,32], index: 12, kind: input, shape index: {}]   ;;  %s2772_s13 = inlined_call_operand.vmem [shape: bf16[2,8,32], index: 13, kind: output, shape index: {0}]   ;;  %s2773_s14 = inlined_call_operand.vmem [shape: f32[2,8,32], index: 14, kind: output, shape index: {1}]   ;;  %s2774_s15 = inlined_call_operand.hbm [shape: f32[2,16,64], index: 15, kind: output, shape index: {2}]  }
   0x1   :  { %2785 = sst [smem:[#allocation19_spill]] %s2759_s0 }
   0x2   :  { %21 = vsyncpa [#allocation10], 0 }
   0x3   :  { %23 = vsyncpa [#allocation10 + $0x1], 0  ;;  %s2352_s18 = smov 0   ;;  %s2354_s19 = smov 0  }
   0x4   :  { %s2356_s20 = smov 0   ;;  %s2358_s21 = smov 0  }
   0x5   :  { %s2360_s22 = smov 0   ;;  %s2362_s23 = smov 0  }
   0x6 LB: > { %2786 = sst [smem:[#allocation12_spill]] %s2237_s18  ;;  %s1845_s24 = sadd.s32 4294967295, %s2257_s23   ;;  %s2257_s23 = sphi %s2362_s23, %s29_s23   ;;  %s2253_s22 = sphi %s2360_s22, %s2821_s22   ;;  %s2249_s21 = sphi %s2358_s21, %s2820_s21   ;;  %s2245_s20 = sphi %s2356_s20, %s2819_s20   ;;  %s2241_s19 = sphi %s2354_s19, %s2823_s19   ;;  %s2237_s18 = sphi %s2352_s18, %s2822_s18  }
   0x7   : > { %2787 = sst [smem:[#allocation13_spill]] %s2245_s20  ;;  %s1846_s25 = sadd.s32 4294967294, %s2257_s23  }
   0x8   : > { %2788 = sst [smem:[#allocation14_spill]] %s2253_s22  ;;  %s41_s26 = sadd.s32 1, %s2253_s22 }
   0x9   : > { %2789 = sst [smem:[#allocation15_spill]] %s2257_s23  ;;  %s391_s27 = sadd.s32 1, %s2245_s20 }
   0xa   : > { %p43_p0 = scmp.ge.s32.totalorder %s41_s26, 2  ;;  %p401_p1 = scmp.ne.s32.totalorder %s2245_s20, %s2241_s19 }
   0xb   : > { %p402_p2 = scmp.eq.s32.totalorder %s1845_s24, 1  ;;  %p407_p3 = scmp.ne.s32.totalorder %s2241_s19, %s2237_s18 }
   0xc   : > { %s2825_s26 = smov (%p43_p0, %s41_s26), 0  ;;  %p408_p5 = scmp.eq.s32.totalorder %s1846_s25, 1 }
   0xd   : > { %2790 = sst [smem:[#allocation16_spill]] %s2825_s26  ;;  %p2392_p4 = por %p402_p2, %p401_p1 }
   0xe   : > { %s388_s29 = ssub.s32 %s2253_s22, %s2825_s26  ;;  %p1849_p6 = scmp.ge.s32.totalorder %s2257_s23, 1 }
   0xf   : > { %p389_p7 = scmp.eq.s32.totalorder %s388_s29, 0  ;;  %p2399_p8 = por %p408_p5, %p407_p3 }
  0x10   : > { %p479_p9 = scmp.lt.s32.totalorder %s2257_s23, 3 }
  0x11   : > { %s2792_s30 = scalar_select %p2399_p8, 1, 0 }
  0x12   : > { %s2405_s16 = scalar_select %p389_p7, %s2245_s20, %s391_s27  }
  0x13   : > { %2793 = sst [smem:[#allocation17_spill]] %s2792_s30  ;;  %p480_p10 = pnand %p1849_p6, %p479_p9 }
  0x14   : > { %2794 = sst [smem:[#allocation18_spill]] %s2405_s16  ;;  %p550_p11 = scmp.lt.s32.totalorder (!%p480_p10), %s2249_s21, 1 }
  0x15   : > { %483 = sbr.rel (%p480_p10) target bundleno = 1831 (0x727), region = 72  ;;  %s2795_s0 = sld [smem:[#allocation19_spill]] (!%p480_p10) }
  0x16   : > { %s2261_s29 = smov (!%p480_p10), 96   ;;  %s2262_s27 = smov (!%p480_p10), 112  }
  0x17   : > { %s2264_s26 = smov (!%p480_p10), 32   ;;  %s2265_s18 = smov (!%p480_p10), 48  }
  0x18   : > { %s2266_s20 = smov (!%p480_p10), 64   ;;  %s547_s30 = sand.u32 (!%p480_p10), 1, %s2241_s19  }
  0x1a   : > { %s2409_s17 = scalar_select %p550_p11, %s2249_s21, 1  ;;  %vm583_vm0 = vcmask 261120   ;;  %v2116_v10 = vld [vmem:[%s2763_s4 + $0x8] sm:$0xff]   ;;  %v2259_v11 = vmov 0.0   ;;  %vm2783_vm1 = vmmov 0   ;;  %v2117_v12 = vld [vmem:[%s2763_s4] sm:$0xff]  }
  0x1b   : > { %1972 = vmatprep.subr.bf16.mxu0 %v2259_v11  ;;  %1976 = vmatprep.mubr.msk.bf16.mxu0 %vm2783_vm1, %v2259_v11  ;;  %v1855_v17 = vld [vmem:[%s2761_s2] ss:$0 sm:$0xff]  ;;  %vm688_vm2 = vcmask 523264   ;;  %v2118_v23 = vld [vmem:[%s2766_s7 + $0x18] sm:$0xff]   ;;  %v2119_v24 = vld [vmem:[%s2766_s7 + $0x10] sm:$0xff]   ;;  %vm839_vm3 = vcmask 1040384  }
  0x1c   : > { %s2784_s24 = sshll.u32 %s2409_s17, 2  ;;  %s1852_s25 = sshll.u32 %s2409_s17, 3  ;;  %1973 = vmatpush3.bf16.msra.mxu0 %v2116_v10  ;;  %1980 = vmatprep.subr.bf16.mxu1 %v2259_v11  ;;  %v1856_v19 = vld [vmem:[%s2762_s3] ss:$0 sm:$0xff]  ;;  %691 = vst.msk [vmem:[#allocation2] sm:$0xff] %vm688_vm2, %v2259_v11  ;;  %v2120_v25 = vld [vmem:[%s2766_s7 + $0x8] sm:$0xff]  }
  0x1d   : > { %s556_s22 = scalar_lea.vmem %s2795_s0, %s2784_s24  ;;  %s563_s16 = scalar_lea.vmem %s2760_s1, %s1852_s25  ;;  %1974 = vmatprep.subr.bf16.mxu0 %v2259_v11  ;;  %1988 = vmatprep.mubr.msk.bf16.mxu1 %vm2783_vm1, %v2259_v11  ;;  %v2121_v26 = vld [vmem:[%s2766_s7] sm:$0xff]   ;;  %vm835_vm4 = vcmask 15360   ;;  %vm1438_vm5 = vcmask 130048   ;;  %vm1441_vm6 = vcmask 392192   ;;  %vm1444_vm7 = vcmask 654336  }
  0x1e   : > { %v579_v0 = vld [vmem:[%s556_s22] sm:$0xf]  ;;  %s577_s23 = scalar_lea.vmem %s2773_s14, %s1852_s25  ;;  %1981 = vmatpush3.bf16.msra.mxu1 %v2118_v23  ;;  %s2263_s22 = smov 16   ;;  %vm2782_vm8 = vcmask 519168   ;;  %vm1446_vm9 = vcmask 785408   ;;  %vm1448_vm10 = vcmask 916480  }
  0x1f   : > { %v581_v1 = vld [vmem:[%s563_s16] sm:$0xff]  ;;  %v580_v2 = vunpack.c.l.bf16 %v579_v0  ;;  %1982 = vmatprep.subr.bf16.mxu1 %v2259_v11  ;;  %s1850_s16 = sshll.u32 %s547_s30, 4 }
  0x20   : > { %1975 = vmatpush3.bf16.msra.mxu0 %v2117_v12  ;;  %v1861_v30 = vld [vmem:[%s2764_s5 + $0x3] ss:$0 sm:$0xff]  ;;  %v1862_v31 = vld [vmem:[%s2764_s5] ss:$0 sm:$0xff]  ;;  %v1863_v34 = vld [vmem:[%s2764_s5 + $0x1] ss:$0 sm:$0xff] }
  0x21   : > { %v582_v3 = vadd.f32 %v581_v1, %v580_v2  ;;  %1992 = vmatprep.subr.bf16.mxu0 %v2259_v11  ;;  %v1864_v38 = vld [vmem:[%s2764_s5 + $0x2] ss:$0 sm:$0xff]  ;;  %v1865_v44 = vld [vmem:[%s2765_s6] ss:$0 sm:$0xff]  ;;  %s2586_s25 = scalar_lea.vmem [#allocation9], %s1850_s16 }
  0x22   : > { %1983 = vmatpush3.bf16.msra.mxu1 %v2119_v24  ;;  %v824_v53 = vld [vmem:[%s2767_s8] sm:$0x1]  ;;  %689 = vst.msk [vmem:[%s2586_s25] sm:$0xff] %vm688_vm2, %v2259_v11  ;;  %690 = vst.msk [vmem:[%s2586_s25 + $0x8] sm:$0xff] %vm688_vm2, %v2259_v11 }
  0x23   : > { %v585_v4 = vsel %vm583_vm0, %v582_v3, 0.0  ;;  %584 = vst.msk [vmem:[%s577_s23] sm:$0xff] %vm583_vm0, %v582_v3  ;;  %1984 = vmatprep.subr.bf16.mxu1 %v2259_v11  ;;  %v841_v54 = vsel %vm839_vm3, %v824_v53, 0  ;;  %s2267_s23 = smov 80  }
  0x24   : > { %586 = vadd.xlane.f32.xlu0 %v585_v4 }
  0x26   : > { %1985 = vmatpush3.bf16.msra.mxu1 %v2120_v25 }
  0x27   : > { %1986 = vmatprep.subr.bf16.mxu1 %v2259_v11 }
  0x2a   : > { %1987 = vmatpush3.bf16.msra.mxu1 %v2121_v26 }
  0x2b   : > { %2016 = vmatprep.subr.bf16.mxu1 %v2259_v11 }
  0xad   : > { %v587_v5 = vpop.xlane.xlu0 %586 }
  0xae   : > { %v589_v6 = vmul.f32 0.03125, %v587_v5 }
  0xb0   : > { %v590_v7 = vsub.f32 %v582_v3, %v589_v6 }
  0xb2   : > { %v591_v8 = vmul.f32 %v590_v7, %v590_v7 }
  0xb4   : > { %v592_v9 = vsel %vm583_vm0, %v591_v8, 0.0 }
  0xb5   : > { %593 = vadd.xlane.f32.xlu0 %v592_v9 }
 0x13e   : > { %v594_v13 = vpop.xlane.xlu0 %593 }
 0x13f   : > { %v595_v14 = vmul.f32 0.03125, %v594_v13 }
 0x141   : > { %v596_v15 = vadd.f32 1e-05, %v595_v14 }
 0x143   : > { %2135 = vrsqrt.f32 %v596_v15 }
 0x150   : > { %v2136_v16 = vpop.eup %2135 }
 0x151   : > { %v598_v18 = vmul.f32 %v2136_v16, %v590_v7 }
 0x153   : > { %v606_v20 = vmul.f32 %v1855_v17, %v598_v18  ;;  %v901_v17 = vlaneseq }
 0x155   : > { %v614_v21 = vadd.f32 %v1856_v19, %v606_v20  ;;  %v2501_v18 = vshrl.u32 %v901_v17, 7  ;;  %v2503_v19 = vand.u32 127, %v901_v17 }
 0x157   : > { %v615_v22 = vpack.c.bf16 %v614_v21, %v614_v21  ;;  %v937_v20 = vadd.s32 1, %v2503_v19  ;;  %v903_v21 = vadd.s32 8, %v2501_v18  ;;  %v904_v24 = vadd.s32 16, %v2501_v18 }
 0x158   : > { %v905_v25 = vadd.s32 24, %v2501_v18  ;;  %v906_v26 = vadd.s32 32, %v2501_v18 }
 0x159   : > { %1977 = vmatmul.mubr.msk.bf16.vlgmr.msra.gmra.mxu0 %vm583_vm0, %v615_v22  ;;  %v2508_v22 = vmul.u32 16, %v2503_v19  ;;  %v2510_v23 = vmul.u32 16, %v937_v20 }
 0x15a   : > { %1994 = vmatprep.mubr.msk.bf16.mxu0 %vm2783_vm1, %v2259_v11  ;;  %1993 = vmatpush3.bf16.msra.mxu0 %v841_v54  ;;  %v917_v54 = vadd.s32 120, %v2501_v18 }
 0x15b   : > { %vm921_vm11 = vcmp.ge.s32.totalorder %v2501_v18, %v2508_v22  ;;  %vm922_vm12 = vcmp.ge.s32.totalorder %v903_v21, %v2508_v22  ;;  %vm939_vm13 = vcmp.lt.s32.totalorder %v2501_v18, %v2510_v23  ;;  %vm940_vm14 = vcmp.lt.s32.totalorder %v903_v21, %v2510_v23 }
 0x15c   : > { %vm955_vm15 = vmand %vm921_vm11, %vm939_vm13  ;;  %vm924_vm3 = vcmp.ge.s32.totalorder %v905_v25, %v2508_v22 }
 0x219   : > { %v669_v27 = vpop.f32.mrf.mxu0 }
 0x21a   : > { %706 = vst.msk [vmem:[#allocation2 + $0x8] sm:$0xff] %vm688_vm2, %v669_v27  ;;  %v704_v36 = vmul.f32 %v1861_v30, %v669_v27  ;;  %v1921_v61 = vpack.c.bf16 %v669_v27, %v669_v27  ;;  %v907_v27 = vadd.s32 40, %v2501_v18  ;;  %v908_v30 = vadd.s32 48, %v2501_v18 }
 0x21b   : > { %v1978_v28 = vpop.f32.mrf.mxu0 }
 0x21c   : > { %vm926_vm11 = vcmp.ge.s32.totalorder %v907_v27, %v2508_v22  ;;  %vm944_vm13 = vcmp.lt.s32.totalorder %v907_v27, %v2510_v23 }
 0x21d   : > { %v672_v29 = vpop.f32.mrf.mxu0 }
 0x21f   : > { %v1979_v32 = vpop.f32.mrf.mxu0 }
 0x221   : > { %v708_v33 = vld [vmem:[#allocation2 + $0x5] sm:$0xff] }
 0x222   : > { %v716_v35 = vld [vmem:[#allocation2 + $0x6] sm:$0xff]  ;;  %v713_v37 = vmul.f32 %v1862_v31, %v708_v33  ;;  %v909_v33 = vadd.s32 56, %v2501_v18 }
 0x223   : > { %v724_v39 = vld [vmem:[#allocation2 + $0x7] sm:$0xff]  ;;  %v721_v41 = vmul.f32 %v1863_v34, %v716_v35 }
 0x224   : > { %v714_v40 = vadd.f32 %v713_v37, %v704_v36  ;;  %v729_v43 = vmul.f32 %v1864_v38, %v724_v39  ;;  %v910_v38 = vadd.s32 64, %v2501_v18  ;;  %v911_v39 = vadd.s32 72, %v2501_v18 }
 0x226   : > { %v722_v42 = vadd.f32 %v721_v41, %v714_v40  ;;  %v912_v40 = vadd.s32 80, %v2501_v18 }
 0x228   : > { %v730_v45 = vadd.f32 %v729_v43, %v722_v42  ;;  %v913_v43 = vadd.s32 88, %v2501_v18 }
 0x22a   : > { %v738_v46 = vadd.f32 %v1865_v44, %v730_v45  ;;  %v914_v44 = vadd.s32 96, %v2501_v18 }
 0x22c   : > { %v1866_v47 = vmul.f32 -1.442695, %v738_v46 }
 0x22e   : > { %2137 = vpow2.f32 %v1866_v47 }
 0x23b   : > { %v2138_v48 = vpop.eup %2137 }
 0x23c   : > { %v742_v49 = vadd.f32 1.0, %v2138_v48  ;;  %v915_v48 = vadd.s32 104, %v2501_v18 }
 0x23e   : > { %2139 = vrcp.f32 %v742_v49 }
 0x24b   : > { %v2140_v50 = vpop.eup %2139 }
 0x24c   : > { %v745_v51 = vmul.f32 %v2140_v50, %v738_v46  ;;  %v916_v50 = vadd.s32 112, %v2501_v18 }
 0x24e   : > { %v746_v52 = vpack.c.bf16 %v745_v51, %v745_v51  ;;  %898 = vst.msk [vmem:[#allocation4] sm:$0xff] %vm688_vm2, %v745_v51 }
 0x250   : > { %1989 = vmatmul.mubr.msk.bf16.vlgmr.msra.gmra.mxu1 %vm688_vm2, %v746_v52 }
 0x251   : > { %2032 = vmatprep.mubr.msk.bf16.mxu1 %vm2783_vm1, %v2259_v11 }
 0x255   : > { %v2598_v21 = vld [vmem:[#allocation4] sm:$0xff] }
 0x310   : > { %v816_v55 = vpop.f32.mrf.mxu1 }
 0x311   : > { %822 = vst.msk [vmem:[#allocation5] sm:$0xff] %vm583_vm0, %v816_v55  ;;  %v823_v56 = vpack.c.bf16 %v816_v55, %v816_v55 }
 0x312   : > { %v1990_v57 = vpop.f32.mrf.mxu1 }
 0x313   : > { %833 = vrot.lane.b32.xlu1 %v823_v56, %s2261_s29 }
 0x314   : > { %v819_v58 = vpop.f32.mrf.mxu1 }
 0x316   : > { %v1991_v59 = vpop.f32.mrf.mxu1 }
 0x318   : > { %v981_v60 = vld [vmem:[#allocation5] sm:$0xff] }
 0x319   : > { %1417 = vrot.lane.b32.xlu0 %v981_v60, %s2262_s27 }
 0x31d   : > { %1420 = vrot.lane.b32.xlu0 %v981_v60, %s2263_s22 }
 0x321   : > { %1423 = vrot.lane.b32.xlu0 %v981_v60, %s2264_s26 }
 0x325   : > { %1426 = vrot.lane.b32.xlu0 %v981_v60, %s2265_s18  ;;  %s1695_s18 = sshll.u32 %s2586_s25, 4  ;;  %s2705_s18 = int_to_ptr.vmem [resolvable:$true] %s1695_s18 }
 0x329   : > { %1429 = vrot.lane.b32.xlu0 %v981_v60, %s2266_s20 }
 0x32d   : > { %1435 = vrot.lane.b32.xlu0 %v981_v60, %s2261_s29  ;;  %s1938_s29 = sshll.u32 %s2249_s21, 8  ;;  %s2269_s21 = smov [#allocation9]  }
 0x32e   : > { %s2702_s26 = scalar_lea.hbm %s2774_s15, %s1938_s29  ;;  %s2185_s16 = sshll.u32 %s2269_s21, 4  ;;  %s2186_s16 = int_to_ptr.vmem [resolvable:$false] %s2185_s16 }
 0x32f   : > { %s2187_s27 = scalar_lea.vmem %s2186_s16, 512  ;;  %p2188_p1 = scmp.lt.s32.totalorder %s2705_s18, %s2186_s16 }
 0x331   : > { %679 = vrot.lane.b32.xlu0 %v1921_v61, %s2266_s20  ;;  %s2709_s20 = scalar_lea.sflag [#allocation10], %s547_s30 }
 0x33c   : > { %1122 = vxpose.xlu1.b32.start.end [1/1] (short) (narrow) %v981_v60, 16 }
 0x35e   : > { %1432 = vrot.lane.b32.xlu1 %v981_v60, %s2267_s23  ;;  %s2181_s23 = scalar_lea.vmem %s2705_s18, 256 }
 0x35f   : > { %p2182_p12 = scmp.ne.s32.totalorder %s2705_s18, %s2181_s23  ;;  %p2189_p2 = scmp.lt.s32.totalorder %s2187_s27, %s2181_s23 }
 0x361   : > { %p2183_p13 = pnand %p2182_p12, %p2392_p4  ;;  %p2190_p3 = por %p2189_p2, %p2188_p1 }
 0x363   : > { %p2184_p0 = pneg %p2183_p13 }
 0x365   : > { %p2191_p5 = pnand %p2190_p3, %p2184_p0 }
 0x385   : > { %v834_v62 = vpop.permute.xlu1 %833 }
 0x386   : > { %1995 = vmatmul.mubr.msk.bf16.vlgmr.msra.gmra.mxu0 %vm835_vm4, %v834_v62  ;;  %vm941_vm4 = vcmp.lt.s32.totalorder %v904_v24, %v2510_v23  ;;  %v1872_v62 = vld [vmem:[%s2768_s9] ss:$0 sm:$0xff] }
 0x38b   : > { %v1418_v63 = vpop.permute.xlu0 %1417 }
 0x38c   : > { %v1439_v0 = vsel %vm1438_vm5, %v1418_v63, %v981_v60  ;;  %vm942_vm5 = vcmp.lt.s32.totalorder %v905_v25, %v2510_v23  ;;  %v2131_v25 = vld [vmem:[%s2771_s12 + $0x18] sm:$0xff]  }
 0x38d   : > { %vm958_vm1 = vmand %vm924_vm3, %vm942_vm5  ;;  %vm928_vm3 = vcmp.ge.s32.totalorder %v909_v33, %v2508_v22 }
 0x38f   : > { %v1421_v1 = vpop.permute.xlu0 %1420 }
 0x390   : > { %v1440_v2 = vsel %vm583_vm0, %v1439_v0, %v1421_v1  ;;  %vm923_vm0 = vcmp.ge.s32.totalorder %v904_v24, %v2508_v22 }
 0x393   : > { %v1424_v3 = vpop.permute.xlu0 %1423 }
 0x394   : > { %v1442_v4 = vsel %vm1441_vm6, %v1440_v2, %v1424_v3  ;;  %vm956_vm6 = vmand %vm922_vm12, %vm940_vm14  ;;  %vm927_vm14 = vcmp.ge.s32.totalorder %v908_v30, %v2508_v22 }
 0x397   : > { %v1427_v5 = vpop.permute.xlu0 %1426 }
 0x398   : > { %v1443_v6 = vsel %vm688_vm2, %v1442_v4, %v1427_v5 }
 0x39b   : > { %v1430_v7 = vpop.permute.xlu0 %1429 }
 0x39c   : > { %v1445_v8 = vsel %vm1444_vm7, %v1443_v6, %v1430_v7  ;;  %vm925_vm7 = vcmp.ge.s32.totalorder %v906_v26, %v2508_v22 }
 0x39f   : > { %v1436_v9 = vpop.permute.xlu0 %1435 }
 0x3a3   : > { %v680_v10 = vpop.permute.xlu0 %679 }
 0x3a4   : > { %683 = vst.msk [vmem:[#allocation7] sm:$0xf] %vm2782_vm8, %v680_v10  ;;  %vm1178_vm8 = vcmask 64512  }
 0x3b8   : > { %v2495_v12 = vpop.trf.xlu1 }
 0x3b9   : > { %v1154_v28 = vsel %vm955_vm15, %v2495_v12, 0.0  ;;  %vm945_vm15 = vcmp.lt.s32.totalorder %v908_v30, %v2510_v23 }
 0x3ba   : > { %vm961_vm5 = vmand %vm927_vm14, %vm945_vm15  ;;  %vm949_vm15 = vcmp.lt.s32.totalorder %v912_v40, %v2510_v23 }
 0x3bb   : > { %v1160_v42 = vsel %vm961_vm5, %v2495_v12, 0.0  ;;  %vm951_vm5 = vcmp.lt.s32.totalorder %v914_v44, %v2510_v23 }
 0x3bc   : > { %v2497_v13 = vpop.trf.xlu1 }
 0x3bd   : > { %v1155_v29 = vsel %vm956_vm6, %v2497_v13, 0.0  ;;  %v1157_v34 = vsel %vm958_vm1, %v2497_v13, 0.0  ;;  %vm929_vm6 = vcmp.ge.s32.totalorder %v910_v38, %v2508_v22 }
 0x3be   : > { %v1170_v31 = vpack.c.bf16 %v1155_v29, %v1154_v28 }
 0x3c0   : > { %2000 = vmatprep.mubr.msk.bf16.mxu0 %vm1178_vm8, %v1170_v31 }
 0x3d0   : > { %v1433_v14 = vpop.permute.xlu1 %1432 }
 0x3d1   : > { %v1447_v15 = vsel %vm1446_vm9, %v1445_v8, %v1433_v14  ;;  %vm943_vm9 = vcmp.lt.s32.totalorder %v906_v26, %v2510_v23  ;;  %v2268_v26 = vmov 1966171168  }
 0x3d2   : > { %v2499_v16 = vsel %vm1448_vm10, %v1447_v15, %v1436_v9  ;;  %vm957_vm10 = vmand %vm923_vm0, %vm941_vm4  ;;  %vm946_vm4 = vcmp.lt.s32.totalorder %v909_v33, %v2510_v23  ;;  %v987_v27 = vunpack.c.l.s4 %v2268_v26 }
 0x3d3   : > { %v1156_v32 = vsel %vm957_vm10, %v2495_v12, 0.0  ;;  %vm959_vm12 = vmand %vm925_vm7, %vm943_vm9  ;;  %vm930_vm7 = vcmp.ge.s32.totalorder %v911_v39, %v2508_v22  ;;  %vm947_vm9 = vcmp.lt.s32.totalorder %v910_v38, %v2510_v23  ;;  %vm948_vm10 = vcmp.lt.s32.totalorder %v911_v39, %v2510_v23  ;;  %v2629_v39 = vld [vmem:[%s2769_s10 + $0x8] sm:$0xff] }
 0x3d4   : > { %v2539_v35 = vpack.c.bf16 %v1157_v34, %v1156_v32  ;;  %vm960_vm0 = vmand %vm926_vm11, %vm944_vm13  ;;  %v1158_v36 = vsel %vm959_vm12, %v2495_v12, 0.0  ;;  %vm931_vm13 = vcmp.ge.s32.totalorder %v912_v40, %v2508_v22  ;;  %vm932_vm12 = vcmp.ge.s32.totalorder %v913_v43, %v2508_v22 }
 0x3d5   : > { %v1159_v37 = vsel %vm960_vm0, %v2497_v13, 0.0  ;;  %vm962_vm1 = vmand %vm928_vm3, %vm946_vm4  ;;  %vm950_vm0 = vcmp.lt.s32.totalorder %v913_v43, %v2510_v23  ;;  %vm933_vm4 = vcmp.ge.s32.totalorder %v914_v44, %v2508_v22  ;;  %v988_v28 = vunpack.c.0.s8 %v987_v27 }
 0x3d6   : > { %v2548_v41 = vpack.c.bf16 %v1159_v37, %v1158_v36  ;;  %v1161_v45 = vsel %vm962_vm1, %v2497_v13, 0.0  ;;  %vm963_vm11 = vmand %vm929_vm6, %vm947_vm9  ;;  %vm934_vm6 = vcmp.ge.s32.totalorder %v915_v48, %v2508_v22  ;;  %v1036_v32 = vsub.s32 0, %v2501_v18 }
 0x3d7   : > { %v2557_v46 = vpack.c.bf16 %v1161_v45, %v1160_v42  ;;  %vm964_vm14 = vmand %vm930_vm7, %vm948_vm10  ;;  %v1162_v47 = vsel %vm963_vm11, %v2495_v12, 0.0  ;;  %vm952_vm7 = vcmp.lt.s32.totalorder %v915_v48, %v2510_v23  ;;  %vm935_vm10 = vcmp.ge.s32.totalorder %v916_v50, %v2508_v22 }
 0x3d8   : > { %v1163_v49 = vsel %vm964_vm14, %v2497_v13, 0.0  ;;  %vm965_vm3 = vmand %vm931_vm13, %vm949_vm15  ;;  %vm953_vm11 = vcmp.lt.s32.totalorder %v916_v50, %v2510_v23  ;;  %vm954_vm14 = vcmp.lt.s32.totalorder %v917_v54, %v2510_v23  ;;  %v991_v29 = vsub.s32 %v988_v28, %v2501_v18 }
 0x3d9   : > { %v1174_v51 = vpack.c.bf16 %v1163_v49, %v1162_v47  ;;  %vm966_vm1 = vmand %vm932_vm12, %vm950_vm0  ;;  %v1164_v52 = vsel %vm965_vm3, %v2495_v12, 0.0  ;;  %vm936_vm12 = vcmp.ge.s32.totalorder %v917_v54, %v2508_v22 }
 0x3da   : > { %v1165_v53 = vsel %vm966_vm1, %v2497_v13, 0.0  ;;  %vm967_vm9 = vmand %vm933_vm4, %vm951_vm5  ;;  %vm1203_vm5 = vcmask 1043456   ;;  %vm2796_vm1 = vmmov 0  }
 0x3db   : > { %v1175_v55 = vpack.c.bf16 %v1165_v53, %v1164_v52  ;;  %vm968_vm13 = vmand %vm934_vm6, %vm952_vm7  ;;  %v1166_v56 = vsel %vm967_vm9, %v2495_v12, 0.0 }
 0x3dc   : > { %v1167_v57 = vsel %vm968_vm13, %v2497_v13, 0.0  ;;  %vm969_vm15 = vmand %vm935_vm10, %vm953_vm11 }
 0x3dd   : > { %v1176_v58 = vpack.c.bf16 %v1167_v57, %v1166_v56  ;;  %vm970_vm0 = vmand %vm936_vm12, %vm954_vm14  ;;  %v1168_v59 = vsel %vm969_vm15, %v2495_v12, 0.0 }
 0x3de   : > { %v1169_v60 = vsel %vm970_vm0, %v2497_v13, 0.0 }
 0x3df   : > { %v1177_v61 = vpack.c.bf16 %v1169_v60, %v1168_v59 }
 0x446   : > { %v877_v63 = vpop.f32.mrf.mxu0 }
 0x447   : > { %v878_v0 = vadd.f32 %v1872_v62, %v877_v63 }
 0x448   : > { %v1996_v1 = vpop.f32.mrf.mxu0 }
 0x449   : > { %v884_v2 = vmin.f32 %v878_v0, 20.0  ;;  %vm883_vm4 = vcmp.gt.f32.partialorder %v878_v0, 20.0 }
 0x44a   : > { %v880_v3 = vpop.f32.mrf.mxu0 }
 0x44b   : > { %v885_v4 = vmul.f32 1.442695, %v884_v2 }
 0x44c   : > { %v1997_v5 = vpop.f32.mrf.mxu0 }
 0x44d   : > { %2141 = vpow2.f32 %v885_v4  ;;  %v977_v5 = vld [vmem:[%s2586_s25] sm:$0xff] }
 0x45a   : > { %v2142_v6 = vpop.eup %2141 }
 0x45b   : > { %v887_v7 = vadd.f32 1.0, %v2142_v6  ;;  %v890_v8 = vmul.f32 -0.5, %v2142_v6  ;;  %v893_v10 = vand.u32 2147483647, %v2142_v6 }
 0x45d   : > { %2143 = vlog2.f32 %v887_v7  ;;  %v891_v9 = vadd.f32 1.0, %v890_v8  ;;  %vm894_vm3 = vcmp.lt.f32.partialorder %v893_v10, 0.0004427343 }
 0x45f   : > { %v892_v14 = vmul.f32 %v2142_v6, %v891_v9 }
 0x46a   : > { %v2144_v12 = vpop.eup %2143 }
 0x46b   : > { %v889_v13 = vmul.f32 0.6931472, %v2144_v12 }
 0x46d   : > { %v895_v15 = vsel %vm894_vm3, %v892_v14, %v889_v13 }
 0x46e   : > { %v896_v17 = vsel %vm883_vm4, %v878_v0, %v895_v15 }
 0x46f   : > { %897 = vst.msk [vmem:[#allocation3] sm:$0xff] %vm688_vm2, %v896_v17  ;;  %v978_v17 = vld [vmem:[%s2586_s25 + $0x8] sm:$0xff] }
 0x476   : > { %v979_v20 = vld [vmem:[#allocation3] sm:$0xff] }
 0x477   : > { %v982_v22 = vmul.f32 %v2598_v21, %v979_v20  ;;  %v992_v30 = vrot.slane %v979_v20, %v991_v29  ;;  %v985_v38 = vcombine.high %v979_v20, %v979_v20 }
 0x479   : > { %v983_v23 = vpack.c.bf16 %v982_v22, %v982_v22  ;;  %v1008_v31 = vrot.slane %v992_v30, %v991_v29  ;;  %v1000_v33 = vcombine.high %v992_v30, %v992_v30  ;;  %v999_v44 = vrot.slane %v985_v38, %v991_v29 }
 0x47b   : > { %2048 = vmatprep.subr.msk.bf16.mxu0 %vm1203_vm5, %v983_v23  ;;  %v1205_v24 = vsel %vm1203_vm5, %v983_v23, 0  ;;  %v1037_v34 = vrot.slane %v1008_v31, %v1036_v32  ;;  %v1022_v36 = vrot.slane %v1000_v33, %v991_v29  ;;  %v1030_v40 = vcombine.high %v1008_v31, %v1008_v31 }
 0x47c   : > { %1999 = vmatpush3.bf16.msra.mxu0 %v1205_v24  ;;  %v1001_v49 = vcombine.high %v999_v44, %v999_v44  ;;  %v1015_v52 = vrot.slane %v999_v44, %v991_v29 }
 0x47d   : > { %2036 = vmatprep.subr.bf16.mxu0 %v2259_v11  ;;  %v1075_v43 = vmul.f32 %v1037_v34, %v2629_v39  ;;  %v1032_v45 = vcombine.high %v1022_v36, %v1022_v36 }
 0x47e   : > { %v1031_v0 = vcombine.high %v1015_v52, %v1015_v52 }
 0x47f   : > { %2001 = vmatmul.mubr.msk.bf16.vlgmr.msra.gmra.mxu0 %vm1178_vm8, %v2539_v35  ;;  %v2623_v35 = vld [vmem:[%s2769_s10] sm:$0xff]  ;;  %v1092_v48 = vmul.f32 1.442695, %v1075_v43 }
 0x480   : > { %2004 = vmatprep.mubr.msk.bf16.mxu0 %vm1178_vm8, %v2548_v41  ;;  %2037 = vmatpush3.bf16.msra.mxu0 %v2131_v25  ;;  %v1074_v37 = vmul.f32 %v1037_v34, %v2623_v35  ;;  %v1041_v41 = vrot.slane %v1022_v36, %v1036_v32  ;;  %v1061_v10 = vrot.slane %v1031_v0, %v1036_v32 }
 0x481   : > { %2038 = vmatprep.subr.bf16.mxu0 %v2259_v11 }
 0x482   : > { %v1090_v42 = vmul.f32 1.442695, %v1074_v37  ;;  %v1076_v47 = vmul.f32 %v1041_v41, %v2623_v35  ;;  %v1077_v50 = vmul.f32 %v1041_v41, %v2629_v39  ;;  %v1086_v26 = vmul.f32 %v1061_v10, %v2623_v35 }
 0x483   : > { %v1087_v37 = vmul.f32 %v1061_v10, %v2629_v39 }
 0x484   : > { %2145 = vpow2.f32 %v1090_v42  ;;  %v1094_v53 = vmul.f32 1.442695, %v1076_v47  ;;  %v1096_v56 = vmul.f32 1.442695, %v1077_v50  ;;  %v1114_v41 = vmul.f32 1.442695, %v1086_v26 }
 0x485   : > { %2147 = vpow2.f32 %v1092_v48 }
 0x486   : > { %2149 = vpow2.f32 %v1094_v53  ;;  %v1116_v53 = vmul.f32 1.442695, %v1087_v37 }
 0x487   : > { %2005 = vmatmul.mubr.msk.bf16.gmra.mxu0 %vm1178_vm8, %v2557_v46  ;;  %v1045_v46 = vrot.slane %v1030_v40, %v1036_v32  ;;  %2151 = vpow2.f32 %v1096_v56 }
 0x488   : > { %2008 = vmatprep.mubr.msk.bf16.mxu0 %vm1178_vm8, %v1174_v51  ;;  %v1049_v51 = vrot.slane %v1032_v45, %v1036_v32 }
 0x489   : > { %v1078_v54 = vmul.f32 %v1045_v46, %v2623_v35  ;;  %v1079_v60 = vmul.f32 %v1045_v46, %v2629_v39 }
 0x48a   : > { %v1080_v57 = vmul.f32 %v1049_v51, %v2623_v35  ;;  %v1081_v62 = vmul.f32 %v1049_v51, %v2629_v39 }
 0x48b   : > { %v1098_v59 = vmul.f32 1.442695, %v1078_v54  ;;  %v1100_v1 = vmul.f32 1.442695, %v1079_v60 }
 0x48c   : > { %v1104_v6 = vmul.f32 1.442695, %v1081_v62 }
 0x48d   : > { %2153 = vpow2.f32 %v1098_v59 }
 0x48f   : > { %2009 = vmatmul.mubr.msk.bf16.gmra.mxu0 %vm1178_vm8, %v1175_v55  ;;  %v1029_v55 = vrot.slane %v1001_v49, %v991_v29 }
 0x490   : > { %2012 = vmatprep.mubr.msk.bf16.mxu0 %vm1178_vm8, %v1176_v58  ;;  %v1053_v58 = vrot.slane %v1015_v52, %v1036_v32 }
 0x491   : > { %v1057_v63 = vrot.slane %v1029_v55, %v1036_v32  ;;  %v2146_v3 = vpop.eup %2145  ;;  %v1033_v4 = vcombine.high %v1029_v55, %v1029_v55 }
 0x492   : > { %v1082_v2 = vmul.f32 %v1053_v58, %v2623_v35  ;;  %v1083_v9 = vmul.f32 %v1053_v58, %v2629_v39  ;;  %v1304_v13 = vmul.f32 %v2146_v3, %v977_v5  ;;  %v2148_v14 = vpop.eup %2147 }
 0x493   : > { %v1084_v7 = vmul.f32 %v1057_v63, %v2623_v35  ;;  %v1085_v22 = vmul.f32 %v1057_v63, %v2629_v39  ;;  %v1065_v23 = vrot.slane %v1033_v4, %v1036_v32  ;;  %v2150_v27 = vpop.eup %2149  ;;  %v1305_v31 = vmul.f32 %v2148_v14, %v978_v17 }
 0x494   : > { %v1106_v8 = vmul.f32 1.442695, %v1082_v2  ;;  %v1108_v25 = vmul.f32 1.442695, %v1083_v9  ;;  %v2152_v38 = vpop.eup %2151 }
 0x495   : > { %v1110_v20 = vmul.f32 1.442695, %v1084_v7  ;;  %v1112_v34 = vmul.f32 1.442695, %v1085_v22  ;;  %v1088_v36 = vmul.f32 %v1065_v23, %v2623_v35  ;;  %v1089_v35 = vmul.f32 %v1065_v23, %v2629_v39 }
 0x497   : > { %2013 = vmatmul.mubr.msk.bf16.gmra.mxu0 %vm1178_vm8, %v1177_v61  ;;  %v1102_v61 = vmul.f32 1.442695, %v1080_v57  ;;  %vm2797_vm8 = vcmask 519168   ;;  %v1118_v49 = vmul.f32 1.442695, %v1088_v36 }
 0x498   : > { %2044 = vmatprep.mubr.msk.bf16.mxu0 %vm2796_vm1, %v2259_v11  ;;  %vm2798_vm6 = vmmov %vm2797_vm8  ;;  %v1120_v63 = vmul.f32 1.442695, %v1089_v35 }
 0x499   : > { %2155 = vpow2.f32 %v1102_v61  ;;  %vm2799_vm7 = vmmov %vm2798_vm6 }
 0x49a   : > { %2157 = vpow2.f32 %v1100_v1  ;;  %v2154_v42 = vpop.eup %2153  ;;  %vm2800_vm9 = vmmov %vm2798_vm6 }
 0x49b   : > { %2159 = vpow2.f32 %v1104_v6  ;;  %vm2801_vm10 = vmmov %vm2798_vm6 }
 0x49c   : > { %2161 = vpow2.f32 %v1106_v8  ;;  %vm2802_vm11 = vmmov %vm2798_vm6 }
 0x49d   : > { %2163 = vpow2.f32 %v1110_v20  ;;  %vm2803_vm13 = vmmov %vm2798_vm6 }
 0x49e   : > { %2165 = vpow2.f32 %v1108_v25  ;;  %vm2804_vm12 = vmmov %vm2798_vm6 }
 0x49f   : > { %2167 = vpow2.f32 %v1112_v34  ;;  %vm2805_vm14 = vmmov %vm2798_vm6 }
 0x4a0   : > { %2169 = vpow2.f32 %v1114_v41  ;;  %vm2806_vm15 = vmmov %vm2798_vm6 }
 0x4a1   : > { %2171 = vpow2.f32 %v1118_v49  ;;  %vm2807_vm0 = vmmov %vm2798_vm6 }
 0x4a2   : > { %2173 = vpow2.f32 %v1116_v53  ;;  %vm2808_vm3 = vmmov %vm2807_vm0 }
 0x4a3   : > { %2175 = vpow2.f32 %v1120_v63  ;;  %vm2809_vm4 = vmmov %vm2807_vm0 }
 0x4a4   : > { %vm2810_vm5 = vmmov %vm2807_vm0 }
 0x4a5   : > { %vm2811_vm1 = vmmov %vm2807_vm0 }
 0x4a6   : > { %v2156_v50 = vpop.eup %2155 }
 0x4a7   : > { %v2158_v54 = vpop.eup %2157 }
 0x4a8   : > { %v2160_v61 = vpop.eup %2159 }
 0x4a9   : > { %v2162_v0 = vpop.eup %2161 }
 0x4aa   : > { %v2164_v7 = vpop.eup %2163 }
 0x4ab   : > { %v2166_v10 = vpop.eup %2165 }
 0x4ac   : > { %v2168_v22 = vpop.eup %2167 }
 0x4ad   : > { %v2170_v25 = vpop.eup %2169 }
 0x53f   : > { %v2002_v12 = vpop.f32.mrf.mxu0 }
 0x541   : > { %v1241_v15 = vpop.f32.mrf.mxu0 }
 0x542   : > { %v1306_v24 = vadd.f32 %v1304_v13, %v1241_v15 }
 0x543   : > { %v2003_v28 = vpop.f32.mrf.mxu0 }
 0x544   : > { %v1922_v29 = vpack.c.bf16 %v1306_v24, %v1306_v24  ;;  %v1318_v30 = vmul.f32 %v2150_v27, %v1306_v24 }
 0x545   : > { %v1244_v33 = vpop.f32.mrf.mxu0 }
 0x546   : > { %1316 = vst.msk [vmem:[#allocation8] sm:$0xf] %vm2797_vm8, %v1922_v29  ;;  %v1307_v32 = vadd.f32 %v1305_v31, %v1244_v33  ;;  %v1320_v40 = vadd.f32 %v2002_v12, %v1318_v30  ;;  %v2172_v33 = vpop.eup %2171  ;;  %vm2812_vm8 = vmmov %vm2807_vm0 }
 0x547   : > { %v2006_v43 = vpop.f32.mrf.mxu0  ;;  %v2174_v37 = vpop.eup %2173 }
 0x548   : > { %v1923_v44 = vpack.c.bf16 %v1307_v32, %v1307_v32  ;;  %v1319_v45 = vmul.f32 %v2152_v38, %v1307_v32  ;;  %v1924_v46 = vpack.c.bf16 %v1320_v40, %v1320_v40  ;;  %v1332_v47 = vmul.f32 %v2154_v42, %v1320_v40 }
 0x549   : > { %v1257_v48 = vpop.f32.mrf.mxu0 }
 0x54a   : > { %1317 = vst.msk [vmem:[#allocation8 + $0x4] sm:$0xf] %vm2798_vm6, %v1923_v44  ;;  %v1334_v51 = vadd.f32 %v1332_v47, %v1257_v48  ;;  %v1321_v52 = vadd.f32 %v2003_v28, %v1319_v45 }
 0x54b   : > { %1330 = vst.msk [vmem:[#allocation8 + $0x8] sm:$0xf] %vm2799_vm7, %v1924_v46  ;;  %v2007_v55 = vpop.f32.mrf.mxu0  ;;  %v2176_v46 = vpop.eup %2175 }
 0x54c   : > { %v1926_v56 = vpack.c.bf16 %v1334_v51, %v1334_v51  ;;  %v1346_v57 = vmul.f32 %v2156_v50, %v1334_v51  ;;  %v1925_v58 = vpack.c.bf16 %v1321_v52, %v1321_v52  ;;  %v1333_v59 = vmul.f32 %v2158_v54, %v1321_v52 }
 0x54d   : > { %v1260_v60 = vpop.f32.mrf.mxu0 }
 0x54e   : > { %1344 = vst.msk [vmem:[#allocation8 + $0x10] sm:$0xf] %vm2800_vm9, %v1926_v56  ;;  %v1335_v39 = vadd.f32 %v1333_v59, %v1260_v60  ;;  %v1348_v62 = vadd.f32 %v2006_v43, %v1346_v57  ;;  %v973_v56 = vadd.s32 1, %v2501_v18 }
 0x54f   : > { %1331 = vst.msk [vmem:[#allocation8 + $0xc] sm:$0xf] %vm2801_vm10, %v1925_v58  ;;  %v2010_v1 = vpop.f32.mrf.mxu0  ;;  %v971_v58 = vmul.u32 16, %v2501_v18  ;;  %v2132_v18 = vld [vmem:[%s2771_s12 + $0x10] sm:$0xff]  }
 0x550   : > { %v1927_v2 = vpack.c.bf16 %v1335_v39, %v1335_v39  ;;  %v1347_v3 = vmul.f32 %v2160_v61, %v1335_v39  ;;  %v1928_v4 = vpack.c.bf16 %v1348_v62, %v1348_v62  ;;  %v1360_v5 = vmul.f32 %v2162_v0, %v1348_v62  ;;  %2039 = vmatpush3.bf16.msra.mxu0 %v2132_v18  ;;  %v2134_v62 = vld [vmem:[%s2771_s12] sm:$0xff]  }
 0x551   : > { %v1273_v6 = vpop.f32.mrf.mxu0  ;;  %v974_v59 = vmul.u32 16, %v973_v56  ;;  %vm972_vm6 = vcmp.ge.s32.totalorder %v2503_v19, %v971_v58  ;;  %v2130_v61 = vld [vmem:[#allocation8] sm:$0xff]   ;;  %v1907_v39 = vpack.c.bf16 %v2499_v16, %v2499_v16  ;;  %2040 = vmatprep.subr.bf16.mxu0 %v2259_v11  ;;  %v1572_v16 = vld [vmem:[#allocation7] sm:$0xf] }
 0x552   : > { %1345 = vst.msk [vmem:[#allocation8 + $0x14] sm:$0xf] %vm2802_vm11, %v1927_v2  ;;  %v1362_v8 = vadd.f32 %v1360_v5, %v1273_v6  ;;  %v1349_v9 = vadd.f32 %v2007_v55, %v1347_v3  ;;  %v1573_v63 = vunpack.c.l.bf16 %v1572_v16  ;;  %vm2813_vm11 = vmmov %vm2807_vm0 }
 0x553   : > { %1358 = vst.msk [vmem:[#allocation8 + $0x18] sm:$0xf] %vm2803_vm13, %v1928_v4  ;;  %v2011_v12 = vpop.f32.mrf.mxu0  ;;  %vm975_vm7 = vcmp.lt.s32.totalorder %v2503_v19, %v974_v59  ;;  %v2133_v19 = vld [vmem:[%s2771_s12 + $0x8] sm:$0xff]  }
 0x554   : > { %v1930_v13 = vpack.c.bf16 %v1362_v8, %v1362_v8  ;;  %v1374_v14 = vmul.f32 %v2164_v7, %v1362_v8  ;;  %v1929_v15 = vpack.c.bf16 %v1349_v9, %v1349_v9  ;;  %v1361_v17 = vmul.f32 %v2166_v10, %v1349_v9  ;;  %vm976_vm9 = vmand %vm972_vm6, %vm975_vm7  ;;  %2041 = vmatpush3.bf16.msra.mxu0 %v2133_v19 }
 0x555   : > { %v1276_v20 = vpop.f32.mrf.mxu0  ;;  %vm1906_vm10 = vmpackc.low %vm976_vm9, %vm976_vm9  ;;  %2042 = vmatprep.subr.bf16.mxu0 %v2259_v11  ;;  %v1910_v0 = vmul.f32 -1.442695, %v1573_v63 }
 0x556   : > { %1372 = vst.msk [vmem:[#allocation8 + $0x20] sm:$0xf] %vm2804_vm12, %v1930_v13  ;;  %v1363_v23 = vadd.f32 %v1361_v17, %v1276_v20  ;;  %v1376_v24 = vadd.f32 %v2010_v1, %v1374_v14  ;;  %v2129_v60 = vld [vmem:[#allocation8 + $0x8] sm:$0xff]  }
 0x557   : > { %1359 = vst.msk [vmem:[#allocation8 + $0x1c] sm:$0xf] %vm2805_vm14, %v1929_v15  ;;  %v2014_v26 = vpop.f32.mrf.mxu0  ;;  %2177 = vpow2.f32 %v1910_v0 }
 0x558   : > { %v1931_v27 = vpack.c.bf16 %v1363_v23, %v1363_v23  ;;  %v1375_v28 = vmul.f32 %v2168_v22, %v1363_v23  ;;  %v1932_v29 = vpack.c.bf16 %v1376_v24, %v1376_v24  ;;  %v1388_v30 = vmul.f32 %v2170_v25, %v1376_v24  ;;  %2043 = vmatpush3.bf16.msra.mxu0 %v2134_v62 }
 0x559   : > { %v1289_v31 = vpop.f32.mrf.mxu0  ;;  %v2128_v57 = vld [vmem:[#allocation8 + $0x10] sm:$0xff]  }
 0x55a   : > { %1373 = vst.msk [vmem:[#allocation8 + $0x24] sm:$0xf] %vm2806_vm15, %v1931_v27  ;;  %v1390_v34 = vadd.f32 %v1388_v30, %v1289_v31  ;;  %v1377_v36 = vadd.f32 %v2011_v12, %v1375_v28 }
 0x55b   : > { %1386 = vst.msk [vmem:[#allocation8 + $0x28] sm:$0xf] %vm2807_vm0, %v1932_v29  ;;  %v2015_v38 = vpop.f32.mrf.mxu0 }
 0x55c   : > { %v1934_v32 = vpack.c.bf16 %v1390_v34, %v1390_v34  ;;  %v1402_v40 = vmul.f32 %v2172_v33, %v1390_v34  ;;  %v1933_v41 = vpack.c.bf16 %v1377_v36, %v1377_v36  ;;  %v1389_v42 = vmul.f32 %v2174_v37, %v1377_v36 }
 0x55d   : > { %v1292_v43 = vpop.f32.mrf.mxu0 }
 0x55e   : > { %1400 = vst.msk [vmem:[#allocation8 + $0x30] sm:$0xf] %vm2808_vm3, %v1934_v32  ;;  %v1404_v44 = vadd.f32 %v2014_v26, %v1402_v40  ;;  %v1391_v45 = vadd.f32 %v1389_v42, %v1292_v43  ;;  %v2127_v55 = vld [vmem:[#allocation8 + $0x18] sm:$0xff]  }
 0x55f   : > { %1387 = vst.msk [vmem:[#allocation8 + $0x2c] sm:$0xf] %vm2809_vm4, %v1933_v41 }
 0x560   : > { %v1936_v47 = vpack.c.bf16 %v1404_v44, %v1404_v44  ;;  %1558 = vst.msk [vmem:[%s2586_s25] sm:$0xff] %vm688_vm2, %v1404_v44  ;;  %v1935_v48 = vpack.c.bf16 %v1391_v45, %v1391_v45  ;;  %v1403_v49 = vmul.f32 %v2176_v46, %v1391_v45 }
 0x561   : > { %v2126_v54 = vld [vmem:[#allocation8 + $0x20] sm:$0xff]  }
 0x562   : > { %1414 = vst.msk [vmem:[#allocation8 + $0x38] sm:$0xf] %vm2810_vm5, %v1936_v47  ;;  %v1405_v35 = vadd.f32 %v2015_v38, %v1403_v49 }
 0x563   : > { %1401 = vst.msk [vmem:[#allocation8 + $0x34] sm:$0xf] %vm2811_vm1, %v1935_v48 }
 0x564   : > { %v1937_v50 = vpack.c.bf16 %v1405_v35, %v1405_v35  ;;  %1559 = vst.msk [vmem:[%s2586_s25 + $0x8] sm:$0xff] %vm688_vm2, %v1405_v35  ;;  %v2178_v1 = vpop.eup %2177 }
 0x565   : > { %v1577_v2 = vadd.f32 1.0, %v2178_v1 }
 0x566   : > { %1415 = vst.msk [vmem:[#allocation8 + $0x3c] sm:$0xf] %vm2812_vm8, %v1937_v50  ;;  %v2125_v53 = vld [vmem:[#allocation8 + $0x28] sm:$0xff]  }
 0x567   : > { %2179 = vrcp.f32 %v1577_v2 }
 0x56a   : > { %v2124_v52 = vld [vmem:[#allocation8 + $0x30] sm:$0xff]  }
 0x56d   : > { %v2123_v51 = vld [vmem:[#allocation8 + $0x38] sm:$0xff]  }
 0x56e   : > { %2017 = vmatpush3.bf16.msra.mxu1 %v2123_v51 }
 0x56f   : > { %2018 = vmatprep.subr.bf16.mxu1 %v2259_v11 }
 0x572   : > { %2019 = vmatpush3.bf16.msra.mxu1 %v2124_v52 }
 0x573   : > { %2020 = vmatprep.subr.bf16.mxu1 %v2259_v11 }
 0x574   : > { %v2180_v8 = vpop.eup %2179 }
 0x575   : > { %v1580_v14 = vmul.f32 %v2180_v8, %v1573_v63 }
 0x576   : > { %2021 = vmatpush3.bf16.msra.mxu1 %v2125_v53 }
 0x577   : > { %2022 = vmatprep.subr.bf16.mxu1 %v2259_v11 }
 0x57a   : > { %2023 = vmatpush3.bf16.msra.mxu1 %v2126_v54 }
 0x57b   : > { %2024 = vmatprep.subr.bf16.mxu1 %v2259_v11 }
 0x57e   : > { %2025 = vmatpush3.bf16.msra.mxu1 %v2127_v55 }
 0x57f   : > { %2026 = vmatprep.subr.bf16.mxu1 %v2259_v11 }
 0x582   : > { %2027 = vmatpush3.bf16.msra.mxu1 %v2128_v57 }
 0x583   : > { %2028 = vmatprep.subr.bf16.mxu1 %v2259_v11 }
 0x586   : > { %2029 = vmatpush3.bf16.msra.mxu1 %v2129_v60 }
 0x587   : > { %2030 = vmatprep.subr.bf16.mxu1 %v2259_v11  ;;  %v1909_v11 = vld [vmem:[%s2770_s11] ss:$0 sm:$0xff] }
 0x588   : > { %v1570_v12 = vmul.f32 %v1909_v11, %v2598_v21 }
 0x58a   : > { %2031 = vmatpush3.bf16.msra.mxu1 %v2130_v61 }
 0x58d   : > { %2033 = vmatmul.mubr.msk.bf16.vlgmr.msra.gmra.mxu1 %vm1906_vm10, %v1907_v39 }
 0x64d   : > { %v1550_v3 = vpop.f32.mrf.mxu1 }
 0x64e   : > { %v1556_v4 = vpack.c.bf16 %v1550_v3, %v1550_v3 }
 0x64f   : > { %v2034_v5 = vpop.f32.mrf.mxu1 }
 0x650   : > { %1557 = vst.msk [vmem:[#allocation6] sm:$0xf] %vm2813_vm11, %v1556_v4 }
 0x651   : > { %v1553_v6 = vpop.f32.mrf.mxu1 }
 0x653   : > { %v2035_v7 = vpop.f32.mrf.mxu1 }
 0x657   : > { %v1560_v9 = vld [vmem:[#allocation6] sm:$0xf] }
 0x658   : > { %v1561_v10 = vunpack.c.l.bf16 %v1560_v9 }
 0x65a   : > { %v1571_v13 = vadd.f32 %v1570_v12, %v1561_v10 }
 0x65c   : > { %v1581_v15 = vmul.f32 %v1580_v14, %v1571_v13 }
 0x65e   : > { %v1582_v17 = vpack.c.bf16 %v1581_v15, %v1581_v15 }
 0x660   : > { %2045 = vmatmul.mubr.msk.bf16.vlgmr.msra.gmra.mxu0 %vm688_vm2, %v1582_v17 }
 0x661   : > { %2194 = shalt.err (!%p2191_p5)
}
 0x662   : > { %s2195_s30 = scalar_lea.hbm %s2702_s26, 256  ;;  %s2199_s22 = scalar_lea.hbm %s2774_s15, 512 }
 0x663   : > { %p2196_p6 = scmp.ne.s32.totalorder %s2702_s26, %s2195_s30  ;;  %p2200_p10 = scmp.lt.s32.totalorder %s2702_s26, %s2774_s15 }
 0x664   : > { %p2201_p11 = scmp.lt.s32.totalorder %s2199_s22, %s2195_s30 }
 0x665   : > { %p2197_p7 = pnand %p2196_p6, %p2392_p4 }
 0x666   : > { %p2202_p12 = por %p2201_p11, %p2200_p10 }
 0x667   : > { %p2198_p9 = pneg %p2197_p7 }
 0x669   : > { %p2203_p13 = pnand %p2202_p12, %p2198_p9 }
 0x66b   : > { %2206 = shalt.err (!%p2203_p13)
}
 0x66c   : > { %s2270_s23 = smov 128   ;;  %s2271_s16 = smov 8   ;;  %vm1659_vm2 = vcmask 257024  }
 0x66d   : > { %2049 = dma.vmem_to_hbm [thread:$0]  (%p2392_p4), %s2705_s18, 256, %s2702_s26, %s2709_s20, %s2270_s23, %s2270_s23, %s2271_s16  }
 0x66e   : > { %s2814_s27 = sshll.u32 %s2409_s17, 2 }
 0x66f   : > { %s570_s0 = scalar_lea.vmem %s2772_s13, %s2814_s27 }
 0x720   : > { %v1652_v21 = vpop.f32.mrf.mxu0 }
 0x721   : > { %v1658_v20 = vpack.c.bf16 %v1652_v21, %v1652_v21 }
 0x722   : > { %v2046_v22 = vpop.f32.mrf.mxu0 }
 0x723   : > { %1660 = vst.msk [vmem:[%s570_s0] sm:$0xf] %vm1659_vm2, %v1658_v20 }
 0x724   : > { %v1655_v23 = vpop.f32.mrf.mxu0 }
 0x726   : > { %v2047_v24 = vpop.f32.mrf.mxu0 }
 0x727 PF: > { %s2815_s24 = sld [smem:[#allocation15_spill]] }
 0x728   : > { %s2816_s30 = sld [smem:[#allocation12_spill]] }
 0x72d   : > { %p2055_p0 = scmp.ge.s32.totalorder %s2815_s24, 2 }
 0x72e   : > { %s1730_s21 = sand.u32 1, %s2816_s30  }
 0x72f   : > { %p2052_p4 = pnand %p2055_p0, %p2399_p8  ;;  %s1731_s28 = scalar_lea.sflag [#allocation10], %s1730_s21 }
 0x731   : > { %p2053_p1 = pneg %p2052_p4 }
 0x733   : > { %2232 = dma.done.wait (%p2053_p1), %s1731_s28, 256  }
 0x734   : > { %2234 = vsyncadd (%p2053_p1), %s1731_s28, 4294967040  ;;  %s29_s23 = sadd.s32 1, %s2815_s24   ;;  %s2818_s17 = sld [smem:[#allocation13_spill]] }
 0x735   : > { %p26_p2 = scmp.ge.s32.totalorder %s29_s23, 4   ;;  %s2819_s20 = sld [smem:[#allocation18_spill]] }
 0x736   : > { %s2820_s21 = sld [smem:[#allocation14_spill]]  ;;  %s2822_s18 = smov %s2241_s19 }
 0x737   : > { %s2821_s22 = sld [smem:[#allocation16_spill]]  ;;  %28 = sbr.rel (!%p26_p2) target bundleno = 6 (0x6), region = 142 }
 0x73a   : > { %s2823_s19 = smov %s2818_s17 }
 0x73c   :  { %1736 = vsyncpa [#allocation10], 1 }
 0x73d   :  { %1738 = vsyncpa [#allocation10 + $0x1], 1 }

// kernel: mamba_embed_forward.6
= control target key start
LH: loop header
LB: loop body
LE: loop exit
PB: predicated region body
PF: predicated region fallthrough
CT: control target
= control target key end

     0   :  { %s2241_s18 = smov 0   ;;  %s2243_s19 = smov 0   ;;  %s2563_s0 = inlined_call_operand.vmem [shape: bf16[2,8,32], index: 0, kind: input, shape index: {}]   ;;  %s2564_s1 = inlined_call_operand.vmem [shape: f32[2,8,32], index: 1, kind: input, shape index: {}]   ;;  %s2565_s2 = inlined_call_operand.vmem [shape: f32[1,32], index: 2, kind: input, shape index: {}]   ;;  %s2566_s3 = inlined_call_operand.vmem [shape: f32[1,32], index: 3, kind: input, shape index: {}]   ;;  %s2567_s4 = inlined_call_operand.vmem [shape: bf16[32,128], index: 4, kind: input, shape index: {}]   ;;  %s2568_s5 = inlined_call_operand.vmem [shape: f32[4,64], index: 5, kind: input, shape index: {}]   ;;  %s2569_s6 = inlined_call_operand.vmem [shape: f32[1,64], index: 6, kind: input, shape index: {}]   ;;  %s2570_s7 = inlined_call_operand.vmem [shape: bf16[64,34], index: 7, kind: input, shape index: {}]   ;;  %s2571_s8 = inlined_call_operand.vmem [shape: bf16[2,64], index: 8, kind: input, shape index: {}]   ;;  %s2572_s9 = inlined_call_operand.vmem [shape: f32[1,64], index: 9, kind: input, shape index: {}]   ;;  %s2573_s10 = inlined_call_operand.vmem [shape: f32[16,64], index: 10, kind: input, shape index: {}]   ;;  %s2574_s11 = inlined_call_operand.vmem [shape: f32[1,64], index: 11, kind: input, shape index: {}]   ;;  %s2575_s12 = inlined_call_operand.vmem [shape: bf16[64,32], index: 12, kind: input, shape index: {}]   ;;  %s2576_s13 = inlined_call_operand.vmem [shape: bf16[2,8,32], index: 13, kind: output, shape index: {0}]   ;;  %s2577_s14 = inlined_call_operand.vmem [shape: f32[2,8,32], index: 14, kind: output, shape index: {1}]   ;;  %s2578_s15 = inlined_call_operand.vmem [shape: f32[2,16,64], index: 15, kind: output, shape index: {2}]  }
   0x1   :  { %s2245_s20 = smov 0  }
   0x2 LB: > { %s38_s21 = sadd.s32 1, %s2145_s19  ;;  %p1830_p0 = scmp.ge.s32.totalorder %s2149_s20, 1  ;;  %s2149_s20 = sphi %s2245_s20, %s26_s20   ;;  %s2145_s19 = sphi %s2243_s19, %s2600_s19   ;;  %s2141_s18 = sphi %s2241_s18, %s2599_s18  }
   0x3   : > { %p40_p1 = scmp.ge.s32.totalorder %s38_s21, 2  ;;  %p476_p2 = scmp.lt.s32.totalorder %s2149_s20, 3 }
   0x5   : > { %s2602_s21 = smov (%p40_p1, %s38_s21), 0  ;;  %p477_p3 = pnand %p1830_p0, %p476_p2 }
   0x6   : > { %p547_p4 = scmp.lt.s32.totalorder (!%p477_p3), %s2141_s18, 1  ;;  %s2153_s16 = smov (!%p477_p3), 96  }
   0x7   : > { %480 = sbr.rel (%p477_p3) target bundleno = 1816 (0x718), region = 72  ;;  %s2155_s24 = smov (!%p477_p3), 16  }
   0x8   : > { %s2156_s25 = smov (!%p477_p3), 32   ;;  %s2159_s27 = smov (!%p477_p3), 80  }
   0xc   : > { %s2604_s18 = smov (!%p547_p4, %s2141_s18), 1  ;;  %vm585_vm0 = vcmask 261120   ;;  %v2062_v10 = vld [vmem:[%s2567_s4 + $0x8] sm:$0xff]   ;;  %v2151_v11 = vmov 0.0   ;;  %vm2580_vm1 = vmmov 0   ;;  %v2063_v12 = vld [vmem:[%s2567_s4] sm:$0xff]  }
   0xd   : > { %s1831_s22 = sshll.u32 %s2604_s18, 2  ;;  %s1832_s23 = sshll.u32 %s2604_s18, 3  ;;  %1951 = vmatprep.subr.bf16.mxu0 %v2151_v11  ;;  %1955 = vmatprep.mubr.msk.bf16.mxu0 %vm2580_vm1, %v2151_v11  ;;  %v1837_v17 = vld [vmem:[%s2565_s2] ss:$0 sm:$0xff]  ;;  %vm690_vm2 = vcmask 523264   ;;  %v2064_v23 = vld [vmem:[%s2570_s7 + $0x18] sm:$0xff]  }
   0xe   : > { %s553_s26 = scalar_lea.vmem %s2563_s0, %s1831_s22  ;;  %s560_s29 = scalar_lea.vmem %s2564_s1, %s1832_s23  ;;  %1952 = vmatpush3.bf16.msra.mxu0 %v2062_v10  ;;  %1959 = vmatprep.subr.bf16.mxu1 %v2151_v11  ;;  %v1838_v19 = vld [vmem:[%s2566_s3] ss:$0 sm:$0xff]  ;;  %693 = vst.msk [vmem:[#allocation2] sm:$0xff] %vm690_vm2, %v2151_v11  ;;  %v2065_v24 = vld [vmem:[%s2570_s7 + $0x10] sm:$0xff]   ;;  %v2066_v25 = vld [vmem:[%s2570_s7 + $0x8] sm:$0xff]   ;;  %vm841_vm3 = vcmask 1040384  }
   0xf   : > { %v581_v0 = vld [vmem:[%s553_s26] sm:$0xf]  ;;  %s574_s17 = scalar_lea.vmem %s2577_s14, %s1832_s23  ;;  %1953 = vmatprep.subr.bf16.mxu0 %v2151_v11  ;;  %1967 = vmatprep.mubr.msk.bf16.mxu1 %vm2580_vm1, %v2151_v11  ;;  %s2157_s23 = smov 48   ;;  %vm837_vm4 = vcmask 15360   ;;  %vm1440_vm5 = vcmask 130048   ;;  %vm1443_vm6 = vcmask 392192  }
  0x10   : > { %v583_v1 = vld [vmem:[%s560_s29] sm:$0xff]  ;;  %v582_v2 = vunpack.c.l.bf16 %v581_v0  ;;  %1960 = vmatpush3.bf16.msra.mxu1 %v2064_v23  ;;  %s2158_s26 = smov 64   ;;  %vm1446_vm7 = vcmask 654336   ;;  %vm2579_vm8 = vcmask 519168   ;;  %vm1448_vm9 = vcmask 785408   ;;  %s1900_s28 = sshll.u32 %s2604_s18, 4 }
  0x11   : > { %1961 = vmatprep.subr.bf16.mxu1 %v2151_v11  ;;  %v2067_v26 = vld [vmem:[%s2570_s7] sm:$0xff]   ;;  %vm1450_vm10 = vcmask 916480   ;;  %s567_s30 = scalar_lea.vmem %s2576_s13, %s1831_s22 }
  0x12   : > { %v584_v3 = vadd.f32 %v583_v1, %v582_v2  ;;  %1954 = vmatpush3.bf16.msra.mxu0 %v2063_v12  ;;  %v1843_v30 = vld [vmem:[%s2568_s5 + $0x3] ss:$0 sm:$0xff]  ;;  %v1844_v31 = vld [vmem:[%s2568_s5] ss:$0 sm:$0xff]  ;;  %v1845_v34 = vld [vmem:[%s2568_s5 + $0x1] ss:$0 sm:$0xff] }
  0x13   : > { %1971 = vmatprep.subr.bf16.mxu0 %v2151_v11  ;;  %v1846_v38 = vld [vmem:[%s2568_s5 + $0x2] ss:$0 sm:$0xff]  ;;  %v1847_v44 = vld [vmem:[%s2569_s6] ss:$0 sm:$0xff] }
  0x14   : > { %v587_v4 = vsel %vm585_vm0, %v584_v3, 0.0  ;;  %586 = vst.msk [vmem:[%s574_s17] sm:$0xff] %vm585_vm0, %v584_v3  ;;  %1962 = vmatpush3.bf16.msra.mxu1 %v2065_v24  ;;  %v826_v53 = vld [vmem:[%s2571_s8] sm:$0x1]  ;;  %s2154_s17 = smov 112  }
  0x15   : > { %588 = vadd.xlane.f32.xlu0 %v587_v4  ;;  %1963 = vmatprep.subr.bf16.mxu1 %v2151_v11  ;;  %v843_v54 = vsel %vm841_vm3, %v826_v53, 0 }
  0x18   : > { %1964 = vmatpush3.bf16.msra.mxu1 %v2066_v25 }
  0x19   : > { %1965 = vmatprep.subr.bf16.mxu1 %v2151_v11 }
  0x1c   : > { %1966 = vmatpush3.bf16.msra.mxu1 %v2067_v26 }
  0x1d   : > { %1995 = vmatprep.subr.bf16.mxu1 %v2151_v11 }
  0x9e   : > { %v589_v5 = vpop.xlane.xlu0 %588 }
  0x9f   : > { %v591_v6 = vmul.f32 0.03125, %v589_v5 }
  0xa1   : > { %v592_v7 = vsub.f32 %v584_v3, %v591_v6 }
  0xa3   : > { %v593_v8 = vmul.f32 %v592_v7, %v592_v7 }
  0xa5   : > { %v594_v9 = vsel %vm585_vm0, %v593_v8, 0.0 }
  0xa6   : > { %595 = vadd.xlane.f32.xlu0 %v594_v9 }
 0x12f   : > { %v596_v13 = vpop.xlane.xlu0 %595 }
 0x130   : > { %v597_v14 = vmul.f32 0.03125, %v596_v13 }
 0x132   : > { %v598_v15 = vadd.f32 1e-05, %v597_v14 }
 0x134   : > { %2081 = vrsqrt.f32 %v598_v15 }
 0x141   : > { %v2082_v16 = vpop.eup %2081 }
 0x142   : > { %v600_v18 = vmul.f32 %v2082_v16, %v592_v7 }
 0x144   : > { %v608_v20 = vmul.f32 %v1837_v17, %v600_v18  ;;  %v903_v17 = vlaneseq }
 0x146   : > { %v616_v21 = vadd.f32 %v1838_v19, %v608_v20  ;;  %v2351_v18 = vshrl.u32 %v903_v17, 7  ;;  %v2353_v19 = vand.u32 127, %v903_v17 }
 0x148   : > { %v617_v22 = vpack.c.bf16 %v616_v21, %v616_v21  ;;  %v939_v20 = vadd.s32 1, %v2353_v19  ;;  %v905_v21 = vadd.s32 8, %v2351_v18  ;;  %v906_v24 = vadd.s32 16, %v2351_v18 }
 0x149   : > { %v907_v25 = vadd.s32 24, %v2351_v18  ;;  %v908_v26 = vadd.s32 32, %v2351_v18 }
 0x14a   : > { %1956 = vmatmul.mubr.msk.bf16.vlgmr.msra.gmra.mxu0 %vm585_vm0, %v617_v22  ;;  %v2358_v22 = vmul.u32 16, %v2353_v19  ;;  %v2360_v23 = vmul.u32 16, %v939_v20 }
 0x14b   : > { %1973 = vmatprep.mubr.msk.bf16.mxu0 %vm2580_vm1, %v2151_v11  ;;  %1972 = vmatpush3.bf16.msra.mxu0 %v843_v54  ;;  %v919_v54 = vadd.s32 120, %v2351_v18 }
 0x14c   : > { %vm923_vm11 = vcmp.ge.s32.totalorder %v2351_v18, %v2358_v22  ;;  %vm924_vm12 = vcmp.ge.s32.totalorder %v905_v21, %v2358_v22  ;;  %vm941_vm13 = vcmp.lt.s32.totalorder %v2351_v18, %v2360_v23  ;;  %vm942_vm14 = vcmp.lt.s32.totalorder %v905_v21, %v2360_v23 }
 0x14d   : > { %vm957_vm15 = vmand %vm923_vm11, %vm941_vm13  ;;  %vm926_vm3 = vcmp.ge.s32.totalorder %v907_v25, %v2358_v22 }
 0x20a   : > { %v671_v27 = vpop.f32.mrf.mxu0 }
 0x20b   : > { %708 = vst.msk [vmem:[#allocation2 + $0x8] sm:$0xff] %vm690_vm2, %v671_v27  ;;  %v706_v36 = vmul.f32 %v1843_v30, %v671_v27  ;;  %v1901_v61 = vpack.c.bf16 %v671_v27, %v671_v27  ;;  %v909_v27 = vadd.s32 40, %v2351_v18  ;;  %v910_v30 = vadd.s32 48, %v2351_v18 }
 0x20c   : > { %v1957_v28 = vpop.f32.mrf.mxu0 }
 0x20d   : > { %vm928_vm11 = vcmp.ge.s32.totalorder %v909_v27, %v2358_v22  ;;  %vm946_vm13 = vcmp.lt.s32.totalorder %v909_v27, %v2360_v23 }
 0x20e   : > { %v674_v29 = vpop.f32.mrf.mxu0 }
 0x210   : > { %v1958_v32 = vpop.f32.mrf.mxu0 }
 0x212   : > { %v710_v33 = vld [vmem:[#allocation2 + $0x5] sm:$0xff] }
 0x213   : > { %v718_v35 = vld [vmem:[#allocation2 + $0x6] sm:$0xff]  ;;  %v715_v37 = vmul.f32 %v1844_v31, %v710_v33  ;;  %v911_v33 = vadd.s32 56, %v2351_v18 }
 0x214   : > { %v726_v39 = vld [vmem:[#allocation2 + $0x7] sm:$0xff]  ;;  %v723_v41 = vmul.f32 %v1845_v34, %v718_v35 }
 0x215   : > { %v716_v40 = vadd.f32 %v715_v37, %v706_v36  ;;  %v731_v43 = vmul.f32 %v1846_v38, %v726_v39  ;;  %v912_v38 = vadd.s32 64, %v2351_v18  ;;  %v913_v39 = vadd.s32 72, %v2351_v18 }
 0x217   : > { %v724_v42 = vadd.f32 %v723_v41, %v716_v40  ;;  %v914_v40 = vadd.s32 80, %v2351_v18 }
 0x219   : > { %v732_v45 = vadd.f32 %v731_v43, %v724_v42  ;;  %v915_v43 = vadd.s32 88, %v2351_v18 }
 0x21b   : > { %v740_v46 = vadd.f32 %v1847_v44, %v732_v45  ;;  %v916_v44 = vadd.s32 96, %v2351_v18 }
 0x21d   : > { %v1848_v47 = vmul.f32 -1.442695, %v740_v46 }
 0x21f   : > { %2083 = vpow2.f32 %v1848_v47 }
 0x22c   : > { %v2084_v48 = vpop.eup %2083 }
 0x22d   : > { %v744_v49 = vadd.f32 1.0, %v2084_v48  ;;  %v917_v48 = vadd.s32 104, %v2351_v18 }
 0x22f   : > { %2085 = vrcp.f32 %v744_v49 }
 0x23c   : > { %v2086_v50 = vpop.eup %2085 }
 0x23d   : > { %v747_v51 = vmul.f32 %v2086_v50, %v740_v46  ;;  %v918_v50 = vadd.s32 112, %v2351_v18 }
 0x23f   : > { %v748_v52 = vpack.c.bf16 %v747_v51, %v747_v51  ;;  %900 = vst.msk [vmem:[#allocation4] sm:$0xff] %vm690_vm2, %v747_v51 }
 0x241   : > { %1968 = vmatmul.mubr.msk.bf16.vlgmr.msra.gmra.mxu1 %vm690_vm2, %v748_v52 }
 0x242   : > { %2011 = vmatprep.mubr.msk.bf16.mxu1 %vm2580_vm1, %v2151_v11 }
 0x246   : > { %v2449_v21 = vld [vmem:[#allocation4] sm:$0xff] }
 0x301   : > { %v818_v55 = vpop.f32.mrf.mxu1 }
 0x302   : > { %824 = vst.msk [vmem:[#allocation5] sm:$0xff] %vm585_vm0, %v818_v55  ;;  %v825_v56 = vpack.c.bf16 %v818_v55, %v818_v55 }
 0x303   : > { %v1969_v57 = vpop.f32.mrf.mxu1 }
 0x304   : > { %835 = vrot.lane.b32.xlu1 %v825_v56, %s2153_s16 }
 0x305   : > { %v821_v58 = vpop.f32.mrf.mxu1 }
 0x307   : > { %v1970_v59 = vpop.f32.mrf.mxu1 }
 0x309   : > { %v983_v60 = vld [vmem:[#allocation5] sm:$0xff] }
 0x30a   : > { %1419 = vrot.lane.b32.xlu0 %v983_v60, %s2154_s17 }
 0x30e   : > { %1422 = vrot.lane.b32.xlu0 %v983_v60, %s2155_s24 }
 0x312   : > { %1425 = vrot.lane.b32.xlu0 %v983_v60, %s2156_s25 }
 0x316   : > { %1428 = vrot.lane.b32.xlu0 %v983_v60, %s2157_s23 }
 0x31a   : > { %1431 = vrot.lane.b32.xlu0 %v983_v60, %s2158_s26 }
 0x31e   : > { %1437 = vrot.lane.b32.xlu0 %v983_v60, %s2153_s16  ;;  %s2436_s16 = scalar_lea.vmem %s2578_s15, %s1900_s28 }
 0x31f   : > { %691 = vst.msk [vmem:[%s2436_s16] sm:$0xff] %vm690_vm2, %v2151_v11  ;;  %692 = vst.msk [vmem:[%s2436_s16 + $0x8] sm:$0xff] %vm690_vm2, %v2151_v11 }
 0x322   : > { %681 = vrot.lane.b32.xlu0 %v1901_v61, %s2158_s26 }
 0x32d   : > { %1124 = vxpose.xlu1.b32.start.end [1/1] (short) (narrow) %v983_v60, 16 }
 0x34f   : > { %1434 = vrot.lane.b32.xlu1 %v983_v60, %s2159_s27 }
 0x376   : > { %v836_v62 = vpop.permute.xlu1 %835 }
 0x377   : > { %1974 = vmatmul.mubr.msk.bf16.vlgmr.msra.gmra.mxu0 %vm837_vm4, %v836_v62  ;;  %vm943_vm4 = vcmp.lt.s32.totalorder %v906_v24, %v2360_v23  ;;  %v1854_v62 = vld [vmem:[%s2572_s9] ss:$0 sm:$0xff] }
 0x37c   : > { %v1420_v63 = vpop.permute.xlu0 %1419 }
 0x37d   : > { %v1441_v0 = vsel %vm1440_vm5, %v1420_v63, %v983_v60  ;;  %vm944_vm5 = vcmp.lt.s32.totalorder %v907_v25, %v2360_v23  ;;  %v2077_v25 = vld [vmem:[%s2575_s12 + $0x18] sm:$0xff]  }
 0x37e   : > { %vm960_vm1 = vmand %vm926_vm3, %vm944_vm5  ;;  %vm930_vm3 = vcmp.ge.s32.totalorder %v911_v33, %v2358_v22 }
 0x380   : > { %v1423_v1 = vpop.permute.xlu0 %1422 }
 0x381   : > { %v1442_v2 = vsel %vm585_vm0, %v1441_v0, %v1423_v1  ;;  %vm925_vm0 = vcmp.ge.s32.totalorder %v906_v24, %v2358_v22 }
 0x384   : > { %v1426_v3 = vpop.permute.xlu0 %1425 }
 0x385   : > { %v1444_v4 = vsel %vm1443_vm6, %v1442_v2, %v1426_v3  ;;  %vm958_vm6 = vmand %vm924_vm12, %vm942_vm14  ;;  %vm929_vm14 = vcmp.ge.s32.totalorder %v910_v30, %v2358_v22 }
 0x388   : > { %v1429_v5 = vpop.permute.xlu0 %1428 }
 0x389   : > { %v1445_v6 = vsel %vm690_vm2, %v1444_v4, %v1429_v5 }
 0x38c   : > { %v1432_v7 = vpop.permute.xlu0 %1431 }
 0x38d   : > { %v1447_v8 = vsel %vm1446_vm7, %v1445_v6, %v1432_v7  ;;  %vm927_vm7 = vcmp.ge.s32.totalorder %v908_v26, %v2358_v22 }
 0x390   : > { %v1438_v9 = vpop.permute.xlu0 %1437 }
 0x394   : > { %v682_v10 = vpop.permute.xlu0 %681 }
 0x395   : > { %685 = vst.msk [vmem:[#allocation7] sm:$0xf] %vm2579_vm8, %v682_v10  ;;  %vm1180_vm8 = vcmask 64512  }
 0x3a9   : > { %v2345_v12 = vpop.trf.xlu1 }
 0x3aa   : > { %v1156_v28 = vsel %vm957_vm15, %v2345_v12, 0.0  ;;  %vm947_vm15 = vcmp.lt.s32.totalorder %v910_v30, %v2360_v23 }
 0x3ab   : > { %vm963_vm5 = vmand %vm929_vm14, %vm947_vm15  ;;  %vm951_vm15 = vcmp.lt.s32.totalorder %v914_v40, %v2360_v23 }
 0x3ac   : > { %v1162_v42 = vsel %vm963_vm5, %v2345_v12, 0.0  ;;  %vm953_vm5 = vcmp.lt.s32.totalorder %v916_v44, %v2360_v23 }
 0x3ad   : > { %v2347_v13 = vpop.trf.xlu1 }
 0x3ae   : > { %v1157_v29 = vsel %vm958_vm6, %v2347_v13, 0.0  ;;  %v1159_v34 = vsel %vm960_vm1, %v2347_v13, 0.0  ;;  %vm931_vm6 = vcmp.ge.s32.totalorder %v912_v38, %v2358_v22 }
 0x3af   : > { %v1172_v31 = vpack.c.bf16 %v1157_v29, %v1156_v28 }
 0x3b1   : > { %1979 = vmatprep.mubr.msk.bf16.mxu0 %vm1180_vm8, %v1172_v31 }
 0x3c1   : > { %v1435_v14 = vpop.permute.xlu1 %1434 }
 0x3c2   : > { %v1449_v15 = vsel %vm1448_vm9, %v1447_v8, %v1435_v14  ;;  %vm945_vm9 = vcmp.lt.s32.totalorder %v908_v26, %v2360_v23  ;;  %v2160_v26 = vmov 1966171168  }
 0x3c3   : > { %v2349_v16 = vsel %vm1450_vm10, %v1449_v15, %v1438_v9  ;;  %vm959_vm10 = vmand %vm925_vm0, %vm943_vm4  ;;  %vm948_vm4 = vcmp.lt.s32.totalorder %v911_v33, %v2360_v23  ;;  %v989_v27 = vunpack.c.l.s4 %v2160_v26 }
 0x3c4   : > { %v1158_v32 = vsel %vm959_vm10, %v2345_v12, 0.0  ;;  %vm961_vm12 = vmand %vm927_vm7, %vm945_vm9  ;;  %vm932_vm7 = vcmp.ge.s32.totalorder %v913_v39, %v2358_v22  ;;  %vm949_vm9 = vcmp.lt.s32.totalorder %v912_v38, %v2360_v23  ;;  %vm950_vm10 = vcmp.lt.s32.totalorder %v913_v39, %v2360_v23  ;;  %v2480_v39 = vld [vmem:[%s2573_s10 + $0x8] sm:$0xff] }
 0x3c5   : > { %v2389_v35 = vpack.c.bf16 %v1159_v34, %v1158_v32  ;;  %vm962_vm0 = vmand %vm928_vm11, %vm946_vm13  ;;  %v1160_v36 = vsel %vm961_vm12, %v2345_v12, 0.0  ;;  %vm933_vm13 = vcmp.ge.s32.totalorder %v914_v40, %v2358_v22  ;;  %vm934_vm12 = vcmp.ge.s32.totalorder %v915_v43, %v2358_v22 }
 0x3c6   : > { %v1161_v37 = vsel %vm962_vm0, %v2347_v13, 0.0  ;;  %vm964_vm1 = vmand %vm930_vm3, %vm948_vm4  ;;  %vm952_vm0 = vcmp.lt.s32.totalorder %v915_v43, %v2360_v23  ;;  %vm935_vm4 = vcmp.ge.s32.totalorder %v916_v44, %v2358_v22  ;;  %v990_v28 = vunpack.c.0.s8 %v989_v27 }
 0x3c7   : > { %v2398_v41 = vpack.c.bf16 %v1161_v37, %v1160_v36  ;;  %v1163_v45 = vsel %vm964_vm1, %v2347_v13, 0.0  ;;  %vm965_vm11 = vmand %vm931_vm6, %vm949_vm9  ;;  %vm936_vm6 = vcmp.ge.s32.totalorder %v917_v48, %v2358_v22  ;;  %v1038_v32 = vsub.s32 0, %v2351_v18 }
 0x3c8   : > { %v2407_v46 = vpack.c.bf16 %v1163_v45, %v1162_v42  ;;  %vm966_vm14 = vmand %vm932_vm7, %vm950_vm10  ;;  %v1164_v47 = vsel %vm965_vm11, %v2345_v12, 0.0  ;;  %vm954_vm7 = vcmp.lt.s32.totalorder %v917_v48, %v2360_v23  ;;  %vm937_vm10 = vcmp.ge.s32.totalorder %v918_v50, %v2358_v22 }
 0x3c9   : > { %v1165_v49 = vsel %vm966_vm14, %v2347_v13, 0.0  ;;  %vm967_vm3 = vmand %vm933_vm13, %vm951_vm15  ;;  %vm955_vm11 = vcmp.lt.s32.totalorder %v918_v50, %v2360_v23  ;;  %vm956_vm14 = vcmp.lt.s32.totalorder %v919_v54, %v2360_v23  ;;  %v993_v29 = vsub.s32 %v990_v28, %v2351_v18 }
 0x3ca   : > { %v1176_v51 = vpack.c.bf16 %v1165_v49, %v1164_v47  ;;  %vm968_vm1 = vmand %vm934_vm12, %vm952_vm0  ;;  %v1166_v52 = vsel %vm967_vm3, %v2345_v12, 0.0  ;;  %vm938_vm12 = vcmp.ge.s32.totalorder %v919_v54, %v2358_v22 }
 0x3cb   : > { %v1167_v53 = vsel %vm968_vm1, %v2347_v13, 0.0  ;;  %vm969_vm9 = vmand %vm935_vm4, %vm953_vm5  ;;  %vm1205_vm5 = vcmask 1043456   ;;  %vm2581_vm1 = vmmov 0  }
 0x3cc   : > { %v1177_v55 = vpack.c.bf16 %v1167_v53, %v1166_v52  ;;  %vm970_vm13 = vmand %vm936_vm6, %vm954_vm7  ;;  %v1168_v56 = vsel %vm969_vm9, %v2345_v12, 0.0 }
 0x3cd   : > { %v1169_v57 = vsel %vm970_vm13, %v2347_v13, 0.0  ;;  %vm971_vm15 = vmand %vm937_vm10, %vm955_vm11 }
 0x3ce   : > { %v1178_v58 = vpack.c.bf16 %v1169_v57, %v1168_v56  ;;  %vm972_vm0 = vmand %vm938_vm12, %vm956_vm14  ;;  %v1170_v59 = vsel %vm971_vm15, %v2345_v12, 0.0 }
 0x3cf   : > { %v1171_v60 = vsel %vm972_vm0, %v2347_v13, 0.0 }
 0x3d0   : > { %v1179_v61 = vpack.c.bf16 %v1171_v60, %v1170_v59 }
 0x437   : > { %v879_v63 = vpop.f32.mrf.mxu0 }
 0x438   : > { %v880_v0 = vadd.f32 %v1854_v62, %v879_v63 }
 0x439   : > { %v1975_v1 = vpop.f32.mrf.mxu0 }
 0x43a   : > { %v886_v2 = vmin.f32 %v880_v0, 20.0  ;;  %vm885_vm4 = vcmp.gt.f32.partialorder %v880_v0, 20.0 }
 0x43b   : > { %v882_v3 = vpop.f32.mrf.mxu0 }
 0x43c   : > { %v887_v4 = vmul.f32 1.442695, %v886_v2 }
 0x43d   : > { %v1976_v5 = vpop.f32.mrf.mxu0 }
 0x43e   : > { %2087 = vpow2.f32 %v887_v4  ;;  %v979_v5 = vld [vmem:[%s2436_s16] sm:$0xff] }
 0x44b   : > { %v2088_v6 = vpop.eup %2087 }
 0x44c   : > { %v889_v7 = vadd.f32 1.0, %v2088_v6  ;;  %v892_v8 = vmul.f32 -0.5, %v2088_v6  ;;  %v895_v10 = vand.u32 2147483647, %v2088_v6 }
 0x44e   : > { %2089 = vlog2.f32 %v889_v7  ;;  %v893_v9 = vadd.f32 1.0, %v892_v8  ;;  %vm896_vm3 = vcmp.lt.f32.partialorder %v895_v10, 0.0004427343 }
 0x450   : > { %v894_v14 = vmul.f32 %v2088_v6, %v893_v9 }
 0x45b   : > { %v2090_v12 = vpop.eup %2089 }
 0x45c   : > { %v891_v13 = vmul.f32 0.6931472, %v2090_v12 }
 0x45e   : > { %v897_v15 = vsel %vm896_vm3, %v894_v14, %v891_v13 }
 0x45f   : > { %v898_v17 = vsel %vm885_vm4, %v880_v0, %v897_v15 }
 0x460   : > { %899 = vst.msk [vmem:[#allocation3] sm:$0xff] %vm690_vm2, %v898_v17  ;;  %v980_v17 = vld [vmem:[%s2436_s16 + $0x8] sm:$0xff] }
 0x467   : > { %v981_v20 = vld [vmem:[#allocation3] sm:$0xff] }
 0x468   : > { %v984_v22 = vmul.f32 %v2449_v21, %v981_v20  ;;  %v994_v30 = vrot.slane %v981_v20, %v993_v29  ;;  %v987_v38 = vcombine.high %v981_v20, %v981_v20 }
 0x46a   : > { %v985_v23 = vpack.c.bf16 %v984_v22, %v984_v22  ;;  %v1010_v31 = vrot.slane %v994_v30, %v993_v29  ;;  %v1002_v33 = vcombine.high %v994_v30, %v994_v30  ;;  %v1001_v44 = vrot.slane %v987_v38, %v993_v29 }
 0x46c   : > { %2027 = vmatprep.subr.msk.bf16.mxu0 %vm1205_vm5, %v985_v23  ;;  %v1207_v24 = vsel %vm1205_vm5, %v985_v23, 0  ;;  %v1039_v34 = vrot.slane %v1010_v31, %v1038_v32  ;;  %v1024_v36 = vrot.slane %v1002_v33, %v993_v29  ;;  %v1032_v40 = vcombine.high %v1010_v31, %v1010_v31 }
 0x46d   : > { %1978 = vmatpush3.bf16.msra.mxu0 %v1207_v24  ;;  %v1003_v49 = vcombine.high %v1001_v44, %v1001_v44  ;;  %v1017_v52 = vrot.slane %v1001_v44, %v993_v29 }
 0x46e   : > { %2015 = vmatprep.subr.bf16.mxu0 %v2151_v11  ;;  %v1077_v43 = vmul.f32 %v1039_v34, %v2480_v39  ;;  %v1034_v45 = vcombine.high %v1024_v36, %v1024_v36 }
 0x46f   : > { %v1033_v0 = vcombine.high %v1017_v52, %v1017_v52 }
 0x470   : > { %1980 = vmatmul.mubr.msk.bf16.vlgmr.msra.gmra.mxu0 %vm1180_vm8, %v2389_v35  ;;  %v2474_v35 = vld [vmem:[%s2573_s10] sm:$0xff]  ;;  %v1094_v48 = vmul.f32 1.442695, %v1077_v43 }
 0x471   : > { %1983 = vmatprep.mubr.msk.bf16.mxu0 %vm1180_vm8, %v2398_v41  ;;  %2016 = vmatpush3.bf16.msra.mxu0 %v2077_v25  ;;  %v1076_v37 = vmul.f32 %v1039_v34, %v2474_v35  ;;  %v1043_v41 = vrot.slane %v1024_v36, %v1038_v32  ;;  %v1063_v10 = vrot.slane %v1033_v0, %v1038_v32 }
 0x472   : > { %2017 = vmatprep.subr.bf16.mxu0 %v2151_v11 }
 0x473   : > { %v1092_v42 = vmul.f32 1.442695, %v1076_v37  ;;  %v1078_v47 = vmul.f32 %v1043_v41, %v2474_v35  ;;  %v1079_v50 = vmul.f32 %v1043_v41, %v2480_v39  ;;  %v1088_v26 = vmul.f32 %v1063_v10, %v2474_v35 }
 0x474   : > { %v1089_v37 = vmul.f32 %v1063_v10, %v2480_v39 }
 0x475   : > { %2091 = vpow2.f32 %v1092_v42  ;;  %v1096_v53 = vmul.f32 1.442695, %v1078_v47  ;;  %v1098_v56 = vmul.f32 1.442695, %v1079_v50  ;;  %v1116_v41 = vmul.f32 1.442695, %v1088_v26 }
 0x476   : > { %2093 = vpow2.f32 %v1094_v48 }
 0x477   : > { %2095 = vpow2.f32 %v1096_v53  ;;  %v1118_v53 = vmul.f32 1.442695, %v1089_v37 }
 0x478   : > { %1984 = vmatmul.mubr.msk.bf16.gmra.mxu0 %vm1180_vm8, %v2407_v46  ;;  %v1047_v46 = vrot.slane %v1032_v40, %v1038_v32  ;;  %2097 = vpow2.f32 %v1098_v56 }
 0x479   : > { %1987 = vmatprep.mubr.msk.bf16.mxu0 %vm1180_vm8, %v1176_v51  ;;  %v1051_v51 = vrot.slane %v1034_v45, %v1038_v32 }
 0x47a   : > { %v1080_v54 = vmul.f32 %v1047_v46, %v2474_v35  ;;  %v1081_v60 = vmul.f32 %v1047_v46, %v2480_v39 }
 0x47b   : > { %v1082_v57 = vmul.f32 %v1051_v51, %v2474_v35  ;;  %v1083_v62 = vmul.f32 %v1051_v51, %v2480_v39 }
 0x47c   : > { %v1100_v59 = vmul.f32 1.442695, %v1080_v54  ;;  %v1102_v1 = vmul.f32 1.442695, %v1081_v60 }
 0x47d   : > { %v1106_v6 = vmul.f32 1.442695, %v1083_v62 }
 0x47e   : > { %2099 = vpow2.f32 %v1100_v59 }
 0x480   : > { %1988 = vmatmul.mubr.msk.bf16.gmra.mxu0 %vm1180_vm8, %v1177_v55  ;;  %v1031_v55 = vrot.slane %v1003_v49, %v993_v29 }
 0x481   : > { %1991 = vmatprep.mubr.msk.bf16.mxu0 %vm1180_vm8, %v1178_v58  ;;  %v1055_v58 = vrot.slane %v1017_v52, %v1038_v32 }
 0x482   : > { %v1059_v63 = vrot.slane %v1031_v55, %v1038_v32  ;;  %v2092_v3 = vpop.eup %2091  ;;  %v1035_v4 = vcombine.high %v1031_v55, %v1031_v55 }
 0x483   : > { %v1084_v2 = vmul.f32 %v1055_v58, %v2474_v35  ;;  %v1085_v9 = vmul.f32 %v1055_v58, %v2480_v39  ;;  %v1306_v13 = vmul.f32 %v2092_v3, %v979_v5  ;;  %v2094_v14 = vpop.eup %2093 }
 0x484   : > { %v1086_v7 = vmul.f32 %v1059_v63, %v2474_v35  ;;  %v1087_v22 = vmul.f32 %v1059_v63, %v2480_v39  ;;  %v1067_v23 = vrot.slane %v1035_v4, %v1038_v32  ;;  %v2096_v27 = vpop.eup %2095  ;;  %v1307_v31 = vmul.f32 %v2094_v14, %v980_v17 }
 0x485   : > { %v1108_v8 = vmul.f32 1.442695, %v1084_v2  ;;  %v1110_v25 = vmul.f32 1.442695, %v1085_v9  ;;  %v2098_v38 = vpop.eup %2097 }
 0x486   : > { %v1112_v20 = vmul.f32 1.442695, %v1086_v7  ;;  %v1114_v34 = vmul.f32 1.442695, %v1087_v22  ;;  %v1090_v36 = vmul.f32 %v1067_v23, %v2474_v35  ;;  %v1091_v35 = vmul.f32 %v1067_v23, %v2480_v39 }
 0x488   : > { %1992 = vmatmul.mubr.msk.bf16.gmra.mxu0 %vm1180_vm8, %v1179_v61  ;;  %v1104_v61 = vmul.f32 1.442695, %v1082_v57  ;;  %vm2582_vm8 = vcmask 519168   ;;  %v1120_v49 = vmul.f32 1.442695, %v1090_v36 }
 0x489   : > { %2023 = vmatprep.mubr.msk.bf16.mxu0 %vm2581_vm1, %v2151_v11  ;;  %vm2583_vm6 = vmmov %vm2582_vm8  ;;  %v1122_v63 = vmul.f32 1.442695, %v1091_v35 }
 0x48a   : > { %2101 = vpow2.f32 %v1104_v61  ;;  %vm2584_vm7 = vmmov %vm2583_vm6 }
 0x48b   : > { %2103 = vpow2.f32 %v1102_v1  ;;  %v2100_v42 = vpop.eup %2099  ;;  %vm2585_vm9 = vmmov %vm2583_vm6 }
 0x48c   : > { %2105 = vpow2.f32 %v1106_v6  ;;  %vm2586_vm10 = vmmov %vm2583_vm6 }
 0x48d   : > { %2107 = vpow2.f32 %v1108_v8  ;;  %vm2587_vm11 = vmmov %vm2583_vm6 }
 0x48e   : > { %2109 = vpow2.f32 %v1112_v20  ;;  %vm2588_vm13 = vmmov %vm2583_vm6 }
 0x48f   : > { %2111 = vpow2.f32 %v1110_v25  ;;  %vm2589_vm12 = vmmov %vm2583_vm6 }
 0x490   : > { %2113 = vpow2.f32 %v1114_v34  ;;  %vm2590_vm14 = vmmov %vm2583_vm6 }
 0x491   : > { %2115 = vpow2.f32 %v1116_v41  ;;  %vm2591_vm15 = vmmov %vm2583_vm6 }
 0x492   : > { %2117 = vpow2.f32 %v1120_v49  ;;  %vm2592_vm0 = vmmov %vm2583_vm6 }
 0x493   : > { %2119 = vpow2.f32 %v1118_v53  ;;  %vm2593_vm3 = vmmov %vm2592_vm0 }
 0x494   : > { %2121 = vpow2.f32 %v1122_v63  ;;  %vm2594_vm4 = vmmov %vm2592_vm0 }
 0x495   : > { %vm2595_vm5 = vmmov %vm2592_vm0 }
 0x496   : > { %vm2596_vm1 = vmmov %vm2592_vm0 }
 0x497   : > { %v2102_v50 = vpop.eup %2101 }
 0x498   : > { %v2104_v54 = vpop.eup %2103 }
 0x499   : > { %v2106_v61 = vpop.eup %2105 }
 0x49a   : > { %v2108_v0 = vpop.eup %2107 }
 0x49b   : > { %v2110_v7 = vpop.eup %2109 }
 0x49c   : > { %v2112_v10 = vpop.eup %2111 }
 0x49d   : > { %v2114_v22 = vpop.eup %2113 }
 0x49e   : > { %v2116_v25 = vpop.eup %2115 }
 0x530   : > { %v1981_v12 = vpop.f32.mrf.mxu0 }
 0x532   : > { %v1243_v15 = vpop.f32.mrf.mxu0 }
 0x533   : > { %v1308_v24 = vadd.f32 %v1306_v13, %v1243_v15 }
 0x534   : > { %v1982_v28 = vpop.f32.mrf.mxu0 }
 0x535   : > { %v1902_v29 = vpack.c.bf16 %v1308_v24, %v1308_v24  ;;  %v1320_v30 = vmul.f32 %v2096_v27, %v1308_v24 }
 0x536   : > { %v1246_v33 = vpop.f32.mrf.mxu0 }
 0x537   : > { %1318 = vst.msk [vmem:[#allocation8] sm:$0xf] %vm2582_vm8, %v1902_v29  ;;  %v1309_v32 = vadd.f32 %v1307_v31, %v1246_v33  ;;  %v1322_v40 = vadd.f32 %v1981_v12, %v1320_v30  ;;  %v2118_v33 = vpop.eup %2117  ;;  %vm2597_vm8 = vmmov %vm2592_vm0 }
 0x538   : > { %v1985_v43 = vpop.f32.mrf.mxu0  ;;  %v2120_v37 = vpop.eup %2119 }
 0x539   : > { %v1903_v44 = vpack.c.bf16 %v1309_v32, %v1309_v32  ;;  %v1321_v45 = vmul.f32 %v2098_v38, %v1309_v32  ;;  %v1904_v46 = vpack.c.bf16 %v1322_v40, %v1322_v40  ;;  %v1334_v47 = vmul.f32 %v2100_v42, %v1322_v40 }
 0x53a   : > { %v1259_v48 = vpop.f32.mrf.mxu0 }
 0x53b   : > { %1319 = vst.msk [vmem:[#allocation8 + $0x4] sm:$0xf] %vm2583_vm6, %v1903_v44  ;;  %v1336_v51 = vadd.f32 %v1334_v47, %v1259_v48  ;;  %v1323_v52 = vadd.f32 %v1982_v28, %v1321_v45 }
 0x53c   : > { %1332 = vst.msk [vmem:[#allocation8 + $0x8] sm:$0xf] %vm2584_vm7, %v1904_v46  ;;  %v1986_v55 = vpop.f32.mrf.mxu0  ;;  %v2122_v46 = vpop.eup %2121 }
 0x53d   : > { %v1906_v56 = vpack.c.bf16 %v1336_v51, %v1336_v51  ;;  %v1348_v57 = vmul.f32 %v2102_v50, %v1336_v51  ;;  %v1905_v58 = vpack.c.bf16 %v1323_v52, %v1323_v52  ;;  %v1335_v59 = vmul.f32 %v2104_v54, %v1323_v52 }
 0x53e   : > { %v1262_v60 = vpop.f32.mrf.mxu0 }
 0x53f   : > { %1346 = vst.msk [vmem:[#allocation8 + $0x10] sm:$0xf] %vm2585_vm9, %v1906_v56  ;;  %v1337_v39 = vadd.f32 %v1335_v59, %v1262_v60  ;;  %v1350_v62 = vadd.f32 %v1985_v43, %v1348_v57  ;;  %v975_v56 = vadd.s32 1, %v2351_v18 }
 0x540   : > { %1333 = vst.msk [vmem:[#allocation8 + $0xc] sm:$0xf] %vm2586_vm10, %v1905_v58  ;;  %v1989_v1 = vpop.f32.mrf.mxu0  ;;  %v973_v58 = vmul.u32 16, %v2351_v18  ;;  %v2078_v18 = vld [vmem:[%s2575_s12 + $0x10] sm:$0xff]  }
 0x541   : > { %v1907_v2 = vpack.c.bf16 %v1337_v39, %v1337_v39  ;;  %v1349_v3 = vmul.f32 %v2106_v61, %v1337_v39  ;;  %v1908_v4 = vpack.c.bf16 %v1350_v62, %v1350_v62  ;;  %v1362_v5 = vmul.f32 %v2108_v0, %v1350_v62  ;;  %2018 = vmatpush3.bf16.msra.mxu0 %v2078_v18  ;;  %v2080_v62 = vld [vmem:[%s2575_s12] sm:$0xff]  }
 0x542   : > { %v1275_v6 = vpop.f32.mrf.mxu0  ;;  %v976_v59 = vmul.u32 16, %v975_v56  ;;  %vm974_vm6 = vcmp.ge.s32.totalorder %v2353_v19, %v973_v58  ;;  %v2076_v61 = vld [vmem:[#allocation8] sm:$0xff]   ;;  %v1889_v39 = vpack.c.bf16 %v2349_v16, %v2349_v16  ;;  %2019 = vmatprep.subr.bf16.mxu0 %v2151_v11  ;;  %v1574_v16 = vld [vmem:[#allocation7] sm:$0xf] }
 0x543   : > { %1347 = vst.msk [vmem:[#allocation8 + $0x14] sm:$0xf] %vm2587_vm11, %v1907_v2  ;;  %v1364_v8 = vadd.f32 %v1362_v5, %v1275_v6  ;;  %v1351_v9 = vadd.f32 %v1986_v55, %v1349_v3  ;;  %v1575_v63 = vunpack.c.l.bf16 %v1574_v16  ;;  %vm2598_vm11 = vmmov %vm2592_vm0 }
 0x544   : > { %1360 = vst.msk [vmem:[#allocation8 + $0x18] sm:$0xf] %vm2588_vm13, %v1908_v4  ;;  %v1990_v12 = vpop.f32.mrf.mxu0  ;;  %vm977_vm7 = vcmp.lt.s32.totalorder %v2353_v19, %v976_v59  ;;  %v2079_v19 = vld [vmem:[%s2575_s12 + $0x8] sm:$0xff]   ;;  %vm1661_vm13 = vcmask 257024  }
 0x545   : > { %v1910_v13 = vpack.c.bf16 %v1364_v8, %v1364_v8  ;;  %v1376_v14 = vmul.f32 %v2110_v7, %v1364_v8  ;;  %v1909_v15 = vpack.c.bf16 %v1351_v9, %v1351_v9  ;;  %v1363_v17 = vmul.f32 %v2112_v10, %v1351_v9  ;;  %vm978_vm9 = vmand %vm974_vm6, %vm977_vm7  ;;  %2020 = vmatpush3.bf16.msra.mxu0 %v2079_v19 }
 0x546   : > { %v1278_v20 = vpop.f32.mrf.mxu0  ;;  %vm1888_vm10 = vmpackc.low %vm978_vm9, %vm978_vm9  ;;  %2021 = vmatprep.subr.bf16.mxu0 %v2151_v11  ;;  %v1892_v0 = vmul.f32 -1.442695, %v1575_v63 }
 0x547   : > { %1374 = vst.msk [vmem:[#allocation8 + $0x20] sm:$0xf] %vm2589_vm12, %v1910_v13  ;;  %v1365_v23 = vadd.f32 %v1363_v17, %v1278_v20  ;;  %v1378_v24 = vadd.f32 %v1989_v1, %v1376_v14  ;;  %v2075_v60 = vld [vmem:[#allocation8 + $0x8] sm:$0xff]  }
 0x548   : > { %1361 = vst.msk [vmem:[#allocation8 + $0x1c] sm:$0xf] %vm2590_vm14, %v1909_v15  ;;  %v1993_v26 = vpop.f32.mrf.mxu0  ;;  %2123 = vpow2.f32 %v1892_v0 }
 0x549   : > { %v1911_v27 = vpack.c.bf16 %v1365_v23, %v1365_v23  ;;  %v1377_v28 = vmul.f32 %v2114_v22, %v1365_v23  ;;  %v1912_v29 = vpack.c.bf16 %v1378_v24, %v1378_v24  ;;  %v1390_v30 = vmul.f32 %v2116_v25, %v1378_v24  ;;  %2022 = vmatpush3.bf16.msra.mxu0 %v2080_v62 }
 0x54a   : > { %v1291_v31 = vpop.f32.mrf.mxu0  ;;  %v2074_v57 = vld [vmem:[#allocation8 + $0x10] sm:$0xff]  }
 0x54b   : > { %1375 = vst.msk [vmem:[#allocation8 + $0x24] sm:$0xf] %vm2591_vm15, %v1911_v27  ;;  %v1392_v34 = vadd.f32 %v1390_v30, %v1291_v31  ;;  %v1379_v36 = vadd.f32 %v1990_v12, %v1377_v28 }
 0x54c   : > { %1388 = vst.msk [vmem:[#allocation8 + $0x28] sm:$0xf] %vm2592_vm0, %v1912_v29  ;;  %v1994_v38 = vpop.f32.mrf.mxu0 }
 0x54d   : > { %v1914_v32 = vpack.c.bf16 %v1392_v34, %v1392_v34  ;;  %v1404_v40 = vmul.f32 %v2118_v33, %v1392_v34  ;;  %v1913_v41 = vpack.c.bf16 %v1379_v36, %v1379_v36  ;;  %v1391_v42 = vmul.f32 %v2120_v37, %v1379_v36 }
 0x54e   : > { %v1294_v43 = vpop.f32.mrf.mxu0 }
 0x54f   : > { %1402 = vst.msk [vmem:[#allocation8 + $0x30] sm:$0xf] %vm2593_vm3, %v1914_v32  ;;  %v1406_v44 = vadd.f32 %v1993_v26, %v1404_v40  ;;  %v1393_v45 = vadd.f32 %v1391_v42, %v1294_v43  ;;  %v2073_v55 = vld [vmem:[#allocation8 + $0x18] sm:$0xff]  }
 0x550   : > { %1389 = vst.msk [vmem:[#allocation8 + $0x2c] sm:$0xf] %vm2594_vm4, %v1913_v41 }
 0x551   : > { %v1916_v47 = vpack.c.bf16 %v1406_v44, %v1406_v44  ;;  %1560 = vst.msk [vmem:[%s2436_s16] sm:$0xff] %vm690_vm2, %v1406_v44  ;;  %v1915_v48 = vpack.c.bf16 %v1393_v45, %v1393_v45  ;;  %v1405_v49 = vmul.f32 %v2122_v46, %v1393_v45 }
 0x552   : > { %v2072_v54 = vld [vmem:[#allocation8 + $0x20] sm:$0xff]  }
 0x553   : > { %1416 = vst.msk [vmem:[#allocation8 + $0x38] sm:$0xf] %vm2595_vm5, %v1916_v47  ;;  %v1407_v35 = vadd.f32 %v1994_v38, %v1405_v49 }
 0x554   : > { %1403 = vst.msk [vmem:[#allocation8 + $0x34] sm:$0xf] %vm2596_vm1, %v1915_v48 }
 0x555   : > { %v1917_v50 = vpack.c.bf16 %v1407_v35, %v1407_v35  ;;  %1561 = vst.msk [vmem:[%s2436_s16 + $0x8] sm:$0xff] %vm690_vm2, %v1407_v35  ;;  %v2124_v1 = vpop.eup %2123 }
 0x556   : > { %v1579_v2 = vadd.f32 1.0, %v2124_v1 }
 0x557   : > { %1417 = vst.msk [vmem:[#allocation8 + $0x3c] sm:$0xf] %vm2597_vm8, %v1917_v50  ;;  %v2071_v53 = vld [vmem:[#allocation8 + $0x28] sm:$0xff]  }
 0x558   : > { %2125 = vrcp.f32 %v1579_v2 }
 0x55b   : > { %v2070_v52 = vld [vmem:[#allocation8 + $0x30] sm:$0xff]  }
 0x55e   : > { %v2069_v51 = vld [vmem:[#allocation8 + $0x38] sm:$0xff]  }
 0x55f   : > { %1996 = vmatpush3.bf16.msra.mxu1 %v2069_v51 }
 0x560   : > { %1997 = vmatprep.subr.bf16.mxu1 %v2151_v11 }
 0x563   : > { %1998 = vmatpush3.bf16.msra.mxu1 %v2070_v52 }
 0x564   : > { %1999 = vmatprep.subr.bf16.mxu1 %v2151_v11 }
 0x565   : > { %v2126_v8 = vpop.eup %2125 }
 0x566   : > { %v1582_v14 = vmul.f32 %v2126_v8, %v1575_v63 }
 0x567   : > { %2000 = vmatpush3.bf16.msra.mxu1 %v2071_v53 }
 0x568   : > { %2001 = vmatprep.subr.bf16.mxu1 %v2151_v11 }
 0x56b   : > { %2002 = vmatpush3.bf16.msra.mxu1 %v2072_v54 }
 0x56c   : > { %2003 = vmatprep.subr.bf16.mxu1 %v2151_v11 }
 0x56f   : > { %2004 = vmatpush3.bf16.msra.mxu1 %v2073_v55 }
 0x570   : > { %2005 = vmatprep.subr.bf16.mxu1 %v2151_v11 }
 0x573   : > { %2006 = vmatpush3.bf16.msra.mxu1 %v2074_v57 }
 0x574   : > { %2007 = vmatprep.subr.bf16.mxu1 %v2151_v11 }
 0x577   : > { %2008 = vmatpush3.bf16.msra.mxu1 %v2075_v60 }
 0x578   : > { %2009 = vmatprep.subr.bf16.mxu1 %v2151_v11  ;;  %v1891_v11 = vld [vmem:[%s2574_s11] ss:$0 sm:$0xff] }
 0x579   : > { %v1572_v12 = vmul.f32 %v1891_v11, %v2449_v21 }
 0x57b   : > { %2010 = vmatpush3.bf16.msra.mxu1 %v2076_v61 }
 0x57e   : > { %2012 = vmatmul.mubr.msk.bf16.vlgmr.msra.gmra.mxu1 %vm1888_vm10, %v1889_v39 }
 0x63e   : > { %v1552_v3 = vpop.f32.mrf.mxu1 }
 0x63f   : > { %v1558_v4 = vpack.c.bf16 %v1552_v3, %v1552_v3 }
 0x640   : > { %v2013_v5 = vpop.f32.mrf.mxu1 }
 0x641   : > { %1559 = vst.msk [vmem:[#allocation6] sm:$0xf] %vm2598_vm11, %v1558_v4 }
 0x642   : > { %v1555_v6 = vpop.f32.mrf.mxu1 }
 0x644   : > { %v2014_v7 = vpop.f32.mrf.mxu1 }
 0x648   : > { %v1562_v9 = vld [vmem:[#allocation6] sm:$0xf] }
 0x649   : > { %v1563_v10 = vunpack.c.l.bf16 %v1562_v9 }
 0x64b   : > { %v1573_v13 = vadd.f32 %v1572_v12, %v1563_v10 }
 0x64d   : > { %v1583_v15 = vmul.f32 %v1582_v14, %v1573_v13 }
 0x64f   : > { %v1584_v17 = vpack.c.bf16 %v1583_v15, %v1583_v15 }
 0x651   : > { %2024 = vmatmul.mubr.msk.bf16.vlgmr.msra.gmra.mxu0 %vm690_vm2, %v1584_v17 }
 0x711   : > { %v1654_v20 = vpop.f32.mrf.mxu0 }
 0x712   : > { %v1660_v22 = vpack.c.bf16 %v1654_v20, %v1654_v20 }
 0x713   : > { %v2025_v23 = vpop.f32.mrf.mxu0 }
 0x714   : > { %1662 = vst.msk [vmem:[%s567_s30] sm:$0xf] %vm1661_vm13, %v1660_v22 }
 0x715   : > { %v1657_v24 = vpop.f32.mrf.mxu0 }
 0x717   : > { %v2026_v25 = vpop.f32.mrf.mxu0 }
 0x718 PF: > { %s26_s20 = sadd.s32 1, %s2149_s20   ;;  %s2599_s18 = smov %s2145_s19 }
 0x719   : > { %p23_p5 = scmp.ge.s32.totalorder %s26_s20, 4   ;;  %s2600_s19 = smov %s2602_s21 }
 0x71b   :  { %25 = sbr.rel (!%p23_p5) target bundleno = 2 (0x2), region = 137 }

</bundles_post_ra>
